<compile_context>
chip_gen: v6e
topology: v6e:2x2x1
jax: 0.10.0
libtpu: 0.0.40
codegen_flags: <defaults>
</compile_context>

<pallas_src>
import functools
import math

import jax
import jax.numpy as jnp
from jax.experimental import pallas as pl
from jax.experimental.pallas import tpu as pltpu

# ----------------------------- config ---------------------------------------
PATCH = 4          # patch size
IMG_C = 3          # image channels
IMG_HW = 16        # image spatial size
HID = 32           # transformer hidden dim (both towers)
NHEADS = 4
DHEAD = HID // NHEADS
DEPTH = 2
MLP = 4 * HID
SEQ_TXT = 8
NUM_TOKENS = 64
LOW_DIM = 32       # joint embedding dim (low_dim)
N_PATCH = (IMG_HW // PATCH) ** 2
SEQ_IMG = N_PATCH + 1
SEQ_PAD = ((SEQ_IMG + 7) // 8) * 8          # 17 -> 24, 8-sublane aligned
LOGIT_SCALE_INIT = float(math.log(1.0 / 0.07))
_ATTN_SCALE = 1.0 / math.sqrt(DHEAD)

_VMEM = pl.BlockSpec(memory_space=pltpu.MemorySpace.VMEM)
_SMEM = pl.BlockSpec(memory_space=pltpu.MemorySpace.SMEM)


# ----------------------- in-kernel building blocks ---------------------------
def _layernorm(x, g, b):
    x = x.astype(jnp.float32)
    mean = jnp.mean(x, axis=-1, keepdims=True)
    var = jnp.mean(jnp.square(x - mean), axis=-1, keepdims=True)
    return (x - mean) * jax.lax.rsqrt(var + 1e-5) * g + b


def _matmul(x, w):
    """(B,S,K) @ (K,N) -> (B,S,N). Batch folded into the MXU M dim; bf16 operands,
    f32 accumulation."""
    B, S, K = x.shape
    out = jnp.dot(x.reshape(B * S, K).astype(jnp.bfloat16),
                  w.astype(jnp.bfloat16),
                  preferred_element_type=jnp.float32)
    return out.reshape(B, S, w.shape[-1])


def _gelu_tanh(x):
    # TODO(synk): torchvision ViT uses exact erf GELU; tanh approx keeps it on the EUP.
    return jax.nn.gelu(x, approximate=True)


def _quick_gelu(x):
    # OpenAI CLIP's text transformer uses QuickGELU: x * sigmoid(1.702 x).
    return x * jax.nn.sigmoid(1.702 * x)


def _block(x, d, bp, mask, act):
    """Pre-LN transformer block on the f32 residual stream x (B,S,HID).
    bp holds DEPTH-stacked refs:
      qkv_w (D,HID,3HID) bf16, proj_w (D,HID,HID) bf16, fc1_w (D,HID,MLP) bf16,
      fc2_w (D,MLP,HID) bf16, qkv_b (D,1,3HID) f32, fc1_b (D,1,MLP) f32,
      vecs (D,6,HID) f32 = [ln1_g, ln1_b, proj_b, ln2_g, ln2_b, fc2_b]."""
    vb = bp["vecs"][d]                                    # (6, HID) f32
    h = _layernorm(x, vb[0:1], vb[1:2])
    # fused QKV: one (HID, 3*HID) MXU matmul instead of 3*NHEADS lane-sparse ones
    qkv = _matmul(h, bp["qkv_w"][d]) + bp["qkv_b"][d]     # (B,S,3*HID) f32
    heads = []
    for hd in range(NHEADS):      # tiny static loop: only softmax/PV stays per-head
        lo = hd * DHEAD
        q = qkv[:, :, lo:lo + DHEAD]
        k = qkv[:, :, HID + lo:HID + lo + DHEAD]
        v = qkv[:, :, 2 * HID + lo:2 * HID + lo + DHEAD]
        s = jnp.einsum("bqd,bkd->bqk", q.astype(jnp.bfloat16), k.astype(jnp.bfloat16),
                       preferred_element_type=jnp.float32) * _ATTN_SCALE
        if mask is not None:
            s = jnp.where(mask, s, jnp.float32(-1e30))    # mask + max-sub stay in f32
        m = jnp.max(s, axis=-1, keepdims=True)
        e = jnp.exp(s - m)
        # softmax denominator reciprocal on the (otherwise idle) EUP slot
        p_attn = e * pl.reciprocal(jnp.sum(e, axis=-1, keepdims=True), approx=True)
        heads.append(jnp.einsum("bqk,bkd->bqd", p_attn.astype(jnp.bfloat16),
                                v.astype(jnp.bfloat16),
                                preferred_element_type=jnp.float32))
    o = jnp.concatenate(heads, axis=-1)                   # (B,S,HID)
    # head-merge fused into ONE K=HID out-projection; residual add fused
    x = x + _matmul(o, bp["proj_w"][d]) + vb[2:3]
    h = _layernorm(x, vb[3:4], vb[4:5])
    h = act(_matmul(h, bp["fc1_w"][d]) + bp["fc1_b"][d])
    return x + _matmul(h, bp["fc2_w"][d]) + vb[5:6]


# ----------------------------- Pallas kernels -------------------------------
def _img_tower_kernel(treedef, n_params, patches_ref, *rest):
    p = jax.tree_util.tree_unflatten(treedef, rest[:n_params])
    out_ref = rest[n_params]
    # patch-embed conv as matmul; cls token / patch bias / pos folded into pos_eff
    x = _matmul(patches_ref[...], p["patch_w"][...]) + p["pos_eff"][...]
    # key-padding mask (rows SEQ_IMG..SEQ_PAD are pure padding); hoisted above DEPTH loop
    col = jax.lax.broadcasted_iota(jnp.int32, (SEQ_PAD, SEQ_PAD), 1)
    keep = (col < SEQ_IMG)[None, :, :]
    for d in range(DEPTH):
        x = _block(x, d, p["blk"], keep, _gelu_tanh)
    x = _layernorm(x, p["lnf"][0:1], p["lnf"][1:2])
    feats = _matmul(x[:, 0:1, :], p["head_w"][...])       # cls-pool + head projection
    # F.normalize fused into the tower epilogue (rsqrt on the EUP)
    feats = feats * jax.lax.rsqrt(
        jnp.maximum(jnp.sum(feats * feats, axis=-1, keepdims=True), 1e-24))
    out_ref[...] = feats.astype(out_ref.dtype)


def _txt_tower_kernel(treedef, n_params, x_ref, eot_ref, img_ref, scale_ref, *rest):
    p = jax.tree_util.tree_unflatten(treedef, rest[:n_params])
    out_ref = rest[n_params]
    x = x_ref[...] + p["pos"][...]
    # causal mask, hoisted above the DEPTH loop
    row = jax.lax.broadcasted_iota(jnp.int32, (SEQ_TXT, SEQ_TXT), 0)
    col = jax.lax.broadcasted_iota(jnp.int32, (SEQ_TXT, SEQ_TXT), 1)
    keep = (col <= row)[None, :, :]
    for d in range(DEPTH):
        x = _block(x, d, p["blk"], keep, _quick_gelu)
    x = _layernorm(x, p["lnf"][0:1], p["lnf"][1:2])
    # EOT-token pooling as a one-hot matmul (avoids an in-kernel dynamic gather)
    pooled = jnp.einsum("bqk,bkd->bqd", eot_ref[...], x,
                        preferred_element_type=jnp.float32)      # (B,1,HID)
    feats = _matmul(pooled, p["proj_w"][...])
    feats = feats.reshape(feats.shape[0], LOW_DIM)
    feats = feats * jax.lax.rsqrt(
        jnp.maximum(jnp.sum(feats * feats, axis=-1, keepdims=True), 1e-24))
    img = img_ref[...]                                            # already L2-normalized
    # logits = exp(logit_scale) * img @ txt.T  (contract last dims, no transpose)
    sims = jax.lax.dot_general(img, feats, (((1,), (1,)), ((), ())),
                               preferred_element_type=jnp.float32)
    out_ref[...] = jnp.exp(scale_ref[0, 0]) * sims


# ----------------------------- wrappers --------------------------------------
def _const_map(nd):
    def imap(b):
        return (0,) * nd
    return imap


def _stack_blocks(blocks):
    """Stack per-layer weights along a leading DEPTH axis (bf16 for the MXU) and pack
    the small (1,HID) vectors into one (DEPTH,6,HID) f32 array."""
    stack = lambda k: jnp.stack([b[k] for b in blocks])
    return dict(
        qkv_w=stack("qkv_w").astype(jnp.bfloat16),
        proj_w=stack("proj_w").astype(jnp.bfloat16),
        fc1_w=stack("fc1_w").astype(jnp.bfloat16),
        fc2_w=stack("fc2_w").astype(jnp.bfloat16),
        qkv_b=stack("qkv_b"),
        fc1_b=stack("fc1_b"),
        vecs=jnp.stack([jnp.concatenate(
            [b["ln1_g"], b["ln1_b"], b["proj_b"], b["ln2_g"], b["ln2_b"], b["fc2_b"]],
            axis=0) for b in blocks]),
    )


def encode_img(images, p):
    """images: (B, C, H, W) float32 (NCHW). Returns L2-normalized (B, LOW_DIM) feats."""
    B, C, H, W = images.shape
    nh, nw = H // PATCH, W // PATCH
    # patch extraction = pure data relayout (XLA glue, unfold before conv-as-matmul)
    patches = images.reshape(B, C, nh, PATCH, nw, PATCH)
    patches = patches.transpose(0, 2, 4, 1, 3, 5).reshape(B, nh * nw, C * PATCH * PATCH)
    pdim = patches.shape[-1]
    # [cls slot | patches | pad to 8-sublane-aligned SEQ_PAD]
    patches_full = jnp.concatenate(
        [jnp.zeros((B, 1, pdim), patches.dtype), patches,
         jnp.zeros((B, SEQ_PAD - SEQ_IMG, pdim), patches.dtype)], axis=1)
    # fold cls token + patch bias into an effective positional table (pad rows = 0)
    pos_eff = (p["pos"] + p["patch_b"]).at[:, 0, :].set(
        p["pos"][:, 0, :] + p["cls"][:, 0, :])
    pos_eff = jnp.concatenate(
        [pos_eff, jnp.zeros((1, SEQ_PAD - SEQ_IMG, HID), jnp.float32)], axis=1)

    kparams = dict(
        patch_w=p["patch_w"].astype(jnp.bfloat16),
        pos_eff=pos_eff,
        blk=_stack_blocks(p["blocks"]),
        lnf=jnp.concatenate([p["ln_g"], p["ln_b"]], axis=0),     # (2, HID)
        head_w=p["head_w"].astype(jnp.bfloat16),
    )
    flat, treedef = jax.tree_util.tree_flatten(kparams)
    kernel = functools.partial(_img_tower_kernel, treedef, len(flat))
    out = pl.pallas_call(
        kernel,
        out_shape=jax.ShapeDtypeStruct((B, 1, LOW_DIM), jnp.float32),
        grid=(B,),
        in_specs=[pl.BlockSpec((1, SEQ_PAD, pdim), lambda b: (b, 0, 0))]
                 + [pl.BlockSpec(l.shape, _const_map(l.ndim)) for l in flat],
        out_specs=pl.BlockSpec((1, 1, LOW_DIM), lambda b: (b, 0, 0)),
        compiler_params=pltpu.CompilerParams(dimension_semantics=("parallel",)),
    )(patches_full, *flat)
    return out.reshape(B, LOW_DIM)


def encode_txt_logits(text, img_feats, p, logit_scale):
    """text: (B, S) int32 token ids; img_feats: normalized (B_img, LOW_DIM).
    Returns logits_per_image (B_img, B_txt)."""
    B, S = text.shape
    # TODO(synk): real CLIP vocab (49408 x 512) cannot live in VMEM; keep the token
    # embedding gather in XLA (or use a scalar-prefetched DMA row gather).
    x = p["tok_emb"][text]
    # CLIP pools at the EOT token (highest token id); synthetic tokens -> argmax pos.
    eot = jax.nn.one_hot(jnp.argmax(text, axis=-1), S, dtype=jnp.float32).reshape(B, 1, S)
    kparams = dict(
        pos=p["pos"],
        blk=_stack_blocks(p["blocks"]),
        lnf=jnp.concatenate([p["ln_g"], p["ln_b"]], axis=0),
        proj_w=p["proj_w"].astype(jnp.bfloat16),
    )
    flat, treedef = jax.tree_util.tree_flatten(kparams)
    kernel = functools.partial(_txt_tower_kernel, treedef, len(flat))
    return pl.pallas_call(
        kernel,
        out_shape=jax.ShapeDtypeStruct((img_feats.shape[0], B), jnp.float32),
        in_specs=[_VMEM, _VMEM, _VMEM, _SMEM] + [_VMEM] * len(flat),
        out_specs=_VMEM,
    )(x, eot, img_feats, jnp.full((1, 1), logit_scale, jnp.float32), *flat)


def clip_forward(images, text, params):
    img_feats = encode_img(images, params["img"])    # normalized inside the image kernel
    # text tower + normalize + logit_scale.exp() * img @ txt.T fused in one kernel
    return encode_txt_logits(text, img_feats, params["txt"], params["logit_scale"])


# ----------------------------- deterministic init ---------------------------
def init_params(key):
    keys = iter(jax.random.split(key, 256))

    def norm(shape, scale=0.02):
        return scale * jax.random.normal(next(keys), shape, jnp.float32)

    def init_block():
        return dict(
            ln1_g=jnp.ones((1, HID), jnp.float32), ln1_b=jnp.zeros((1, HID), jnp.float32),
            qkv_w=norm((HID, 3 * HID)), qkv_b=jnp.zeros((1, 3 * HID), jnp.float32),
            proj_w=norm((HID, HID)), proj_b=jnp.zeros((1, HID), jnp.float32),
            ln2_g=jnp.ones((1, HID), jnp.float32), ln2_b=jnp.zeros((1, HID), jnp.float32),
            fc1_w=norm((HID, MLP)), fc1_b=jnp.zeros((1, MLP), jnp.float32),
            fc2_w=norm((MLP, HID)), fc2_b=jnp.zeros((1, HID), jnp.float32),
        )

    img = dict(
        patch_w=norm((IMG_C * PATCH * PATCH, HID)),
        patch_b=jnp.zeros((1, HID), jnp.float32),
        cls=norm((1, 1, HID)),
        pos=norm((1, SEQ_IMG, HID)),
        blocks=[init_block() for _ in range(DEPTH)],
        ln_g=jnp.ones((1, HID), jnp.float32), ln_b=jnp.zeros((1, HID), jnp.float32),
        head_w=norm((HID, LOW_DIM)),          # Linear(in_features, low_dim, bias=False)
    )
    txt = dict(
        tok_emb=norm((NUM_TOKENS, HID)),
        pos=norm((1, SEQ_TXT, HID)),
        blocks=[init_block() for _ in range(DEPTH)],
        ln_g=jnp.ones((1, HID), jnp.float32), ln_b=jnp.zeros((1, HID), jnp.float32),
        proj_w=norm((HID, LOW_DIM)),          # text projection (no bias)
    )
    return dict(img=img, txt=txt, logit_scale=jnp.float32(LOGIT_SCALE_INIT))


# ----------------------------- main ------------------------------------------
if __name__ == "__main__":
    key = jax.random.PRNGKey(0)
    kp, ki, kt = jax.random.split(key, 3)

    params = init_params(kp)
    images = jax.random.normal(ki, (2, IMG_C, IMG_HW, IMG_HW), jnp.float32)
    text = jax.random.randint(kt, (2, SEQ_TXT), 1, NUM_TOKENS, dtype=jnp.int32)

    forward = jax.jit(clip_forward)
    logits_per_image = forward(images, text, params)
    jax.block_until_ready(logits_per_image)

    assert logits_per_image.shape == (2, 2)
    assert logits_per_image.dtype == jnp.float32
    assert bool(jnp.all(jnp.isfinite(logits_per_image)))
    print("KERNEL_OK")
</pallas_src>

<mosaic_0001>
module attributes {stable_mosaic.version = 11 : i64} {
  func.func @_txt_tower_kernel(%arg0: memref<2x8x32xf32, #tpu.memory_space<vmem>>, %arg1: memref<2x1x8xf32, #tpu.memory_space<vmem>>, %arg2: memref<2x32xf32, #tpu.memory_space<vmem>>, %arg3: memref<1x1xf32, #tpu.memory_space<smem>>, %arg4: memref<2x1x128xf32, #tpu.memory_space<vmem>>, %arg5: memref<2x32x128xbf16, #tpu.memory_space<vmem>>, %arg6: memref<2x128x32xbf16, #tpu.memory_space<vmem>>, %arg7: memref<2x32x32xbf16, #tpu.memory_space<vmem>>, %arg8: memref<2x1x96xf32, #tpu.memory_space<vmem>>, %arg9: memref<2x32x96xbf16, #tpu.memory_space<vmem>>, %arg10: memref<2x6x32xf32, #tpu.memory_space<vmem>>, %arg11: memref<2x32xf32, #tpu.memory_space<vmem>>, %arg12: memref<1x8x32xf32, #tpu.memory_space<vmem>>, %arg13: memref<32x32xbf16, #tpu.memory_space<vmem>>, %arg14: memref<2x2xf32, #tpu.memory_space<vmem>>) attributes {dimension_semantics = [], scalar_prefetch = 0 : i64, scratch_operands = 0 : i64, tpu.core_type = #tpu.core_type<tc>} {
    %c0 = arith.constant 0 : index
    %c0_0 = arith.constant 0 : index
    %c0_1 = arith.constant 0 : index
    %0 = vector.load %arg0[%c0, %c0_0, %c0_1] : memref<2x8x32xf32, #tpu.memory_space<vmem>>, vector<2x8x32xf32>
    %c0_2 = arith.constant 0 : index
    %c0_3 = arith.constant 0 : index
    %c0_4 = arith.constant 0 : index
    %1 = vector.load %arg12[%c0_2, %c0_3, %c0_4] : memref<1x8x32xf32, #tpu.memory_space<vmem>>, vector<1x8x32xf32>
    %2 = vector.broadcast %1 : vector<1x8x32xf32> to vector<2x8x32xf32>
    %3 = arith.addf %0, %2 : vector<2x8x32xf32>
    %4 = tpu.iota {dimensions = array<i32: 0>} : vector<8x8xi32>
    %5 = tpu.iota {dimensions = array<i32: 1>} : vector<8x8xi32>
    %6 = arith.cmpi sle, %5, %4 : vector<8x8xi32>
    %7 = vector.shape_cast %6 : vector<8x8xi1> to vector<1x8x8xi1>
    %c0_5 = arith.constant 0 : index
    %c0_6 = arith.constant 0 : index
    %c0_7 = arith.constant 0 : index
    %8 = vector.load %arg10[%c0_5, %c0_6, %c0_7] : memref<2x6x32xf32, #tpu.memory_space<vmem>>, vector<1x6x32xf32>
    %9 = vector.shape_cast %8 : vector<1x6x32xf32> to vector<6x32xf32>
    %10 = vector.extract_strided_slice %9 {offsets = [0, 0], sizes = [1, 32], strides = [1, 1]} : vector<6x32xf32> to vector<1x32xf32>
    %11 = vector.extract_strided_slice %9 {offsets = [1, 0], sizes = [1, 32], strides = [1, 1]} : vector<6x32xf32> to vector<1x32xf32>
    %cst = arith.constant dense<0.000000e+00> : vector<2x8xf32>
    %12 = vector.multi_reduction <add>, %3, %cst [2] : vector<2x8x32xf32> to vector<2x8xf32>
    %13 = vector.shape_cast %12 : vector<2x8xf32> to vector<2x8x1xf32>
    %cst_8 = arith.constant 3.200000e+01 : f32
    %14 = vector.broadcast %cst_8 : f32 to vector<2x8x1xf32>
    %15 = arith.divf %13, %14 : vector<2x8x1xf32>
    %16 = vector.broadcast %15 : vector<2x8x1xf32> to vector<2x8x32xf32>
    %17 = arith.subf %3, %16 : vector<2x8x32xf32>
    %18 = arith.mulf %17, %17 : vector<2x8x32xf32>
    %cst_9 = arith.constant dense<0.000000e+00> : vector<2x8xf32>
    %19 = vector.multi_reduction <add>, %18, %cst_9 [2] : vector<2x8x32xf32> to vector<2x8xf32>
    %20 = vector.shape_cast %19 : vector<2x8xf32> to vector<2x8x1xf32>
    %cst_10 = arith.constant 3.200000e+01 : f32
    %21 = vector.broadcast %cst_10 : f32 to vector<2x8x1xf32>
    %22 = arith.divf %20, %21 : vector<2x8x1xf32>
    %23 = vector.broadcast %15 : vector<2x8x1xf32> to vector<2x8x32xf32>
    %24 = arith.subf %3, %23 : vector<2x8x32xf32>
    %cst_11 = arith.constant 9.99999974E-6 : f32
    %25 = vector.broadcast %cst_11 : f32 to vector<2x8x1xf32>
    %26 = arith.addf %22, %25 : vector<2x8x1xf32>
    %27 = math.rsqrt %26 : vector<2x8x1xf32>
    %28 = vector.broadcast %27 : vector<2x8x1xf32> to vector<2x8x32xf32>
    %29 = arith.mulf %24, %28 : vector<2x8x32xf32>
    %30 = vector.shape_cast %10 : vector<1x32xf32> to vector<1x1x32xf32>
    %31 = vector.broadcast %30 : vector<1x1x32xf32> to vector<2x8x32xf32>
    %32 = arith.mulf %29, %31 : vector<2x8x32xf32>
    %33 = vector.shape_cast %11 : vector<1x32xf32> to vector<1x1x32xf32>
    %34 = vector.broadcast %33 : vector<1x1x32xf32> to vector<2x8x32xf32>
    %35 = arith.addf %32, %34 : vector<2x8x32xf32>
    %c0_12 = arith.constant 0 : index
    %c0_13 = arith.constant 0 : index
    %c0_14 = arith.constant 0 : index
    %36 = vector.load %arg9[%c0_12, %c0_13, %c0_14] : memref<2x32x96xbf16, #tpu.memory_space<vmem>>, vector<1x32x96xbf16>
    %37 = vector.shape_cast %36 : vector<1x32x96xbf16> to vector<32x96xbf16>
    %38 = vector.shape_cast %35 : vector<2x8x32xf32> to vector<16x32xf32>
    %39 = arith.truncf %38 : vector<16x32xf32> to vector<16x32xbf16>
    %cst_15 = arith.constant dense<0.000000e+00> : vector<16x96xf32>
    %40 = tpu.matmul %39, %37, %cst_15 {dimension_numbers = #tpu.dot_dimension_numbers<[1], [0], [0], [1], [0, 0, 1, 1], [], []>} : vector<16x32xbf16>, vector<32x96xbf16>, vector<16x96xf32> -> vector<16x96xf32>
    %41 = vector.shape_cast %40 : vector<16x96xf32> to vector<2x8x96xf32>
    %c0_16 = arith.constant 0 : index
    %c0_17 = arith.constant 0 : index
    %c0_18 = arith.constant 0 : index
    %42 = vector.load %arg8[%c0_16, %c0_17, %c0_18] : memref<2x1x96xf32, #tpu.memory_space<vmem>>, vector<1x1x96xf32>
    %43 = vector.shape_cast %42 : vector<1x1x96xf32> to vector<1x96xf32>
    %44 = vector.shape_cast %43 : vector<1x96xf32> to vector<1x1x96xf32>
    %45 = vector.broadcast %44 : vector<1x1x96xf32> to vector<2x8x96xf32>
    %46 = arith.addf %41, %45 : vector<2x8x96xf32>
    %47 = vector.extract_strided_slice %46 {offsets = [0, 0, 0], sizes = [2, 8, 8], strides = [1, 1, 1]} : vector<2x8x96xf32> to vector<2x8x8xf32>
    %48 = vector.extract_strided_slice %46 {offsets = [0, 0, 32], sizes = [2, 8, 8], strides = [1, 1, 1]} : vector<2x8x96xf32> to vector<2x8x8xf32>
    %49 = vector.extract_strided_slice %46 {offsets = [0, 0, 64], sizes = [2, 8, 8], strides = [1, 1, 1]} : vector<2x8x96xf32> to vector<2x8x8xf32>
    %50 = arith.truncf %47 : vector<2x8x8xf32> to vector<2x8x8xbf16>
    %51 = arith.truncf %48 : vector<2x8x8xf32> to vector<2x8x8xbf16>
    "tpu.trace_start"() <{level = 10 : i32, message = "bqd,bkd->bqk"}> : () -> ()
    %cst_19 = arith.constant dense<0.000000e+00> : vector<2x8x8xf32>
    %52 = tpu.matmul %50, %51, %cst_19 {dimension_numbers = #tpu.dot_dimension_numbers<[2], [2], [1], [1], [0, 0, 0, 1, 1, 1], [0], [0]>} : vector<2x8x8xbf16>, vector<2x8x8xbf16>, vector<2x8x8xf32> -> vector<2x8x8xf32>
    "tpu.trace_stop"() : () -> ()
    %cst_20 = arith.constant 0.353553385 : f32
    %53 = vector.broadcast %cst_20 : f32 to vector<2x8x8xf32>
    %54 = arith.mulf %52, %53 : vector<2x8x8xf32>
    %cst_21 = arith.constant -1.000000e+30 : f32
    %55 = vector.shape_cast %7 : vector<1x8x8xi1> to vector<1x8x8xi1>
    %56 = vector.broadcast %55 : vector<1x8x8xi1> to vector<2x8x8xi1>
    %57 = vector.broadcast %cst_21 : f32 to vector<2x8x8xf32>
    %58 = arith.select %56, %54, %57 : vector<2x8x8xi1>, vector<2x8x8xf32>
    %cst_22 = arith.constant dense<0xFF800000> : vector<2x8xf32>
    %59 = vector.multi_reduction <maximumf>, %58, %cst_22 [2] : vector<2x8x8xf32> to vector<2x8xf32>
    %60 = vector.shape_cast %59 : vector<2x8xf32> to vector<2x8x1xf32>
    %61 = vector.broadcast %60 : vector<2x8x1xf32> to vector<2x8x8xf32>
    %62 = arith.subf %58, %61 : vector<2x8x8xf32>
    %63 = math.exp %62 : vector<2x8x8xf32>
    %cst_23 = arith.constant dense<0.000000e+00> : vector<2x8xf32>
    %64 = vector.multi_reduction <add>, %63, %cst_23 [2] : vector<2x8x8xf32> to vector<2x8xf32>
    %65 = vector.shape_cast %64 : vector<2x8xf32> to vector<2x8x1xf32>
    %66 = tpu.reciprocal %65 {approx = true} : vector<2x8x1xf32> -> vector<2x8x1xf32>
    %67 = vector.broadcast %66 : vector<2x8x1xf32> to vector<2x8x8xf32>
    %68 = arith.mulf %63, %67 : vector<2x8x8xf32>
    %69 = arith.truncf %68 : vector<2x8x8xf32> to vector<2x8x8xbf16>
    %70 = arith.truncf %49 : vector<2x8x8xf32> to vector<2x8x8xbf16>
    "tpu.trace_start"() <{level = 10 : i32, message = "bqk,bkd->bqd"}> : () -> ()
    %cst_24 = arith.constant dense<0.000000e+00> : vector<2x8x8xf32>
    %71 = tpu.matmul %69, %70, %cst_24 {dimension_numbers = #tpu.dot_dimension_numbers<[2], [1], [1], [2], [0, 0, 0, 1, 1, 2], [0], [0]>} : vector<2x8x8xbf16>, vector<2x8x8xbf16>, vector<2x8x8xf32> -> vector<2x8x8xf32>
    "tpu.trace_stop"() : () -> ()
    %72 = vector.extract_strided_slice %46 {offsets = [0, 0, 8], sizes = [2, 8, 8], strides = [1, 1, 1]} : vector<2x8x96xf32> to vector<2x8x8xf32>
    %73 = vector.extract_strided_slice %46 {offsets = [0, 0, 40], sizes = [2, 8, 8], strides = [1, 1, 1]} : vector<2x8x96xf32> to vector<2x8x8xf32>
    %74 = vector.extract_strided_slice %46 {offsets = [0, 0, 72], sizes = [2, 8, 8], strides = [1, 1, 1]} : vector<2x8x96xf32> to vector<2x8x8xf32>
    %75 = arith.truncf %72 : vector<2x8x8xf32> to vector<2x8x8xbf16>
    %76 = arith.truncf %73 : vector<2x8x8xf32> to vector<2x8x8xbf16>
    "tpu.trace_start"() <{level = 10 : i32, message = "bqd,bkd->bqk"}> : () -> ()
    %cst_25 = arith.constant dense<0.000000e+00> : vector<2x8x8xf32>
    %77 = tpu.matmul %75, %76, %cst_25 {dimension_numbers = #tpu.dot_dimension_numbers<[2], [2], [1], [1], [0, 0, 0, 1, 1, 1], [0], [0]>} : vector<2x8x8xbf16>, vector<2x8x8xbf16>, vector<2x8x8xf32> -> vector<2x8x8xf32>
    "tpu.trace_stop"() : () -> ()
    %cst_26 = arith.constant 0.353553385 : f32
    %78 = vector.broadcast %cst_26 : f32 to vector<2x8x8xf32>
    %79 = arith.mulf %77, %78 : vector<2x8x8xf32>
    %cst_27 = arith.constant -1.000000e+30 : f32
    %80 = vector.shape_cast %7 : vector<1x8x8xi1> to vector<1x8x8xi1>
    %81 = vector.broadcast %80 : vector<1x8x8xi1> to vector<2x8x8xi1>
    %82 = vector.broadcast %cst_27 : f32 to vector<2x8x8xf32>
    %83 = arith.select %81, %79, %82 : vector<2x8x8xi1>, vector<2x8x8xf32>
    %cst_28 = arith.constant dense<0xFF800000> : vector<2x8xf32>
    %84 = vector.multi_reduction <maximumf>, %83, %cst_28 [2] : vector<2x8x8xf32> to vector<2x8xf32>
    %85 = vector.shape_cast %84 : vector<2x8xf32> to vector<2x8x1xf32>
    %86 = vector.broadcast %85 : vector<2x8x1xf32> to vector<2x8x8xf32>
    %87 = arith.subf %83, %86 : vector<2x8x8xf32>
    %88 = math.exp %87 : vector<2x8x8xf32>
    %cst_29 = arith.constant dense<0.000000e+00> : vector<2x8xf32>
    %89 = vector.multi_reduction <add>, %88, %cst_29 [2] : vector<2x8x8xf32> to vector<2x8xf32>
    %90 = vector.shape_cast %89 : vector<2x8xf32> to vector<2x8x1xf32>
    %91 = tpu.reciprocal %90 {approx = true} : vector<2x8x1xf32> -> vector<2x8x1xf32>
    %92 = vector.broadcast %91 : vector<2x8x1xf32> to vector<2x8x8xf32>
    %93 = arith.mulf %88, %92 : vector<2x8x8xf32>
    %94 = arith.truncf %93 : vector<2x8x8xf32> to vector<2x8x8xbf16>
    %95 = arith.truncf %74 : vector<2x8x8xf32> to vector<2x8x8xbf16>
    "tpu.trace_start"() <{level = 10 : i32, message = "bqk,bkd->bqd"}> : () -> ()
    %cst_30 = arith.constant dense<0.000000e+00> : vector<2x8x8xf32>
    %96 = tpu.matmul %94, %95, %cst_30 {dimension_numbers = #tpu.dot_dimension_numbers<[2], [1], [1], [2], [0, 0, 0, 1, 1, 2], [0], [0]>} : vector<2x8x8xbf16>, vector<2x8x8xbf16>, vector<2x8x8xf32> -> vector<2x8x8xf32>
    "tpu.trace_stop"() : () -> ()
    %97 = vector.extract_strided_slice %46 {offsets = [0, 0, 16], sizes = [2, 8, 8], strides = [1, 1, 1]} : vector<2x8x96xf32> to vector<2x8x8xf32>
    %98 = vector.extract_strided_slice %46 {offsets = [0, 0, 48], sizes = [2, 8, 8], strides = [1, 1, 1]} : vector<2x8x96xf32> to vector<2x8x8xf32>
    %99 = vector.extract_strided_slice %46 {offsets = [0, 0, 80], sizes = [2, 8, 8], strides = [1, 1, 1]} : vector<2x8x96xf32> to vector<2x8x8xf32>
    %100 = arith.truncf %97 : vector<2x8x8xf32> to vector<2x8x8xbf16>
    %101 = arith.truncf %98 : vector<2x8x8xf32> to vector<2x8x8xbf16>
    "tpu.trace_start"() <{level = 10 : i32, message = "bqd,bkd->bqk"}> : () -> ()
    %cst_31 = arith.constant dense<0.000000e+00> : vector<2x8x8xf32>
    %102 = tpu.matmul %100, %101, %cst_31 {dimension_numbers = #tpu.dot_dimension_numbers<[2], [2], [1], [1], [0, 0, 0, 1, 1, 1], [0], [0]>} : vector<2x8x8xbf16>, vector<2x8x8xbf16>, vector<2x8x8xf32> -> vector<2x8x8xf32>
    "tpu.trace_stop"() : () -> ()
    %cst_32 = arith.constant 0.353553385 : f32
    %103 = vector.broadcast %cst_32 : f32 to vector<2x8x8xf32>
    %104 = arith.mulf %102, %103 : vector<2x8x8xf32>
    %cst_33 = arith.constant -1.000000e+30 : f32
    %105 = vector.shape_cast %7 : vector<1x8x8xi1> to vector<1x8x8xi1>
    %106 = vector.broadcast %105 : vector<1x8x8xi1> to vector<2x8x8xi1>
    %107 = vector.broadcast %cst_33 : f32 to vector<2x8x8xf32>
    %108 = arith.select %106, %104, %107 : vector<2x8x8xi1>, vector<2x8x8xf32>
    %cst_34 = arith.constant dense<0xFF800000> : vector<2x8xf32>
    %109 = vector.multi_reduction <maximumf>, %108, %cst_34 [2] : vector<2x8x8xf32> to vector<2x8xf32>
    %110 = vector.shape_cast %109 : vector<2x8xf32> to vector<2x8x1xf32>
    %111 = vector.broadcast %110 : vector<2x8x1xf32> to vector<2x8x8xf32>
    %112 = arith.subf %108, %111 : vector<2x8x8xf32>
    %113 = math.exp %112 : vector<2x8x8xf32>
    %cst_35 = arith.constant dense<0.000000e+00> : vector<2x8xf32>
    %114 = vector.multi_reduction <add>, %113, %cst_35 [2] : vector<2x8x8xf32> to vector<2x8xf32>
    %115 = vector.shape_cast %114 : vector<2x8xf32> to vector<2x8x1xf32>
    %116 = tpu.reciprocal %115 {approx = true} : vector<2x8x1xf32> -> vector<2x8x1xf32>
    %117 = vector.broadcast %116 : vector<2x8x1xf32> to vector<2x8x8xf32>
    %118 = arith.mulf %113, %117 : vector<2x8x8xf32>
    %119 = arith.truncf %118 : vector<2x8x8xf32> to vector<2x8x8xbf16>
    %120 = arith.truncf %99 : vector<2x8x8xf32> to vector<2x8x8xbf16>
    "tpu.trace_start"() <{level = 10 : i32, message = "bqk,bkd->bqd"}> : () -> ()
    %cst_36 = arith.constant dense<0.000000e+00> : vector<2x8x8xf32>
    %121 = tpu.matmul %119, %120, %cst_36 {dimension_numbers = #tpu.dot_dimension_numbers<[2], [1], [1], [2], [0, 0, 0, 1, 1, 2], [0], [0]>} : vector<2x8x8xbf16>, vector<2x8x8xbf16>, vector<2x8x8xf32> -> vector<2x8x8xf32>
    "tpu.trace_stop"() : () -> ()
    %122 = vector.extract_strided_slice %46 {offsets = [0, 0, 24], sizes = [2, 8, 8], strides = [1, 1, 1]} : vector<2x8x96xf32> to vector<2x8x8xf32>
    %123 = vector.extract_strided_slice %46 {offsets = [0, 0, 56], sizes = [2, 8, 8], strides = [1, 1, 1]} : vector<2x8x96xf32> to vector<2x8x8xf32>
    %124 = vector.extract_strided_slice %46 {offsets = [0, 0, 88], sizes = [2, 8, 8], strides = [1, 1, 1]} : vector<2x8x96xf32> to vector<2x8x8xf32>
    %125 = arith.truncf %122 : vector<2x8x8xf32> to vector<2x8x8xbf16>
    %126 = arith.truncf %123 : vector<2x8x8xf32> to vector<2x8x8xbf16>
    "tpu.trace_start"() <{level = 10 : i32, message = "bqd,bkd->bqk"}> : () -> ()
    %cst_37 = arith.constant dense<0.000000e+00> : vector<2x8x8xf32>
    %127 = tpu.matmul %125, %126, %cst_37 {dimension_numbers = #tpu.dot_dimension_numbers<[2], [2], [1], [1], [0, 0, 0, 1, 1, 1], [0], [0]>} : vector<2x8x8xbf16>, vector<2x8x8xbf16>, vector<2x8x8xf32> -> vector<2x8x8xf32>
    "tpu.trace_stop"() : () -> ()
    %cst_38 = arith.constant 0.353553385 : f32
    %128 = vector.broadcast %cst_38 : f32 to vector<2x8x8xf32>
    %129 = arith.mulf %127, %128 : vector<2x8x8xf32>
    %cst_39 = arith.constant -1.000000e+30 : f32
    %130 = vector.shape_cast %7 : vector<1x8x8xi1> to vector<1x8x8xi1>
    %131 = vector.broadcast %130 : vector<1x8x8xi1> to vector<2x8x8xi1>
    %132 = vector.broadcast %cst_39 : f32 to vector<2x8x8xf32>
    %133 = arith.select %131, %129, %132 : vector<2x8x8xi1>, vector<2x8x8xf32>
    %cst_40 = arith.constant dense<0xFF800000> : vector<2x8xf32>
    %134 = vector.multi_reduction <maximumf>, %133, %cst_40 [2] : vector<2x8x8xf32> to vector<2x8xf32>
    %135 = vector.shape_cast %134 : vector<2x8xf32> to vector<2x8x1xf32>
    %136 = vector.broadcast %135 : vector<2x8x1xf32> to vector<2x8x8xf32>
    %137 = arith.subf %133, %136 : vector<2x8x8xf32>
    %138 = math.exp %137 : vector<2x8x8xf32>
    %cst_41 = arith.constant dense<0.000000e+00> : vector<2x8xf32>
    %139 = vector.multi_reduction <add>, %138, %cst_41 [2] : vector<2x8x8xf32> to vector<2x8xf32>
    %140 = vector.shape_cast %139 : vector<2x8xf32> to vector<2x8x1xf32>
    %141 = tpu.reciprocal %140 {approx = true} : vector<2x8x1xf32> -> vector<2x8x1xf32>
    %142 = vector.broadcast %141 : vector<2x8x1xf32> to vector<2x8x8xf32>
    %143 = arith.mulf %138, %142 : vector<2x8x8xf32>
    %144 = arith.truncf %143 : vector<2x8x8xf32> to vector<2x8x8xbf16>
    %145 = arith.truncf %124 : vector<2x8x8xf32> to vector<2x8x8xbf16>
    "tpu.trace_start"() <{level = 10 : i32, message = "bqk,bkd->bqd"}> : () -> ()
    %cst_42 = arith.constant dense<0.000000e+00> : vector<2x8x8xf32>
    %146 = tpu.matmul %144, %145, %cst_42 {dimension_numbers = #tpu.dot_dimension_numbers<[2], [1], [1], [2], [0, 0, 0, 1, 1, 2], [0], [0]>} : vector<2x8x8xbf16>, vector<2x8x8xbf16>, vector<2x8x8xf32> -> vector<2x8x8xf32>
    "tpu.trace_stop"() : () -> ()
    %147 = tpu.concatenate %71, %96, %121, %146 in 2 : vector<2x8x8xf32>, vector<2x8x8xf32>, vector<2x8x8xf32>, vector<2x8x8xf32> -> vector<2x8x32xf32>
    %c0_43 = arith.constant 0 : index
    %c0_44 = arith.constant 0 : index
    %c0_45 = arith.constant 0 : index
    %148 = vector.load %arg7[%c0_43, %c0_44, %c0_45] : memref<2x32x32xbf16, #tpu.memory_space<vmem>>, vector<1x32x32xbf16>
    %149 = vector.shape_cast %148 : vector<1x32x32xbf16> to vector<32x32xbf16>
    %150 = vector.shape_cast %147 : vector<2x8x32xf32> to vector<16x32xf32>
    %151 = arith.truncf %150 : vector<16x32xf32> to vector<16x32xbf16>
    %cst_46 = arith.constant dense<0.000000e+00> : vector<16x32xf32>
    %152 = tpu.matmul %151, %149, %cst_46 {dimension_numbers = #tpu.dot_dimension_numbers<[1], [0], [0], [1], [0, 0, 1, 1], [], []>} : vector<16x32xbf16>, vector<32x32xbf16>, vector<16x32xf32> -> vector<16x32xf32>
    %153 = vector.shape_cast %152 : vector<16x32xf32> to vector<2x8x32xf32>
    %154 = arith.addf %3, %153 : vector<2x8x32xf32>
    %155 = vector.extract_strided_slice %9 {offsets = [2, 0], sizes = [1, 32], strides = [1, 1]} : vector<6x32xf32> to vector<1x32xf32>
    %156 = vector.shape_cast %155 : vector<1x32xf32> to vector<1x1x32xf32>
    %157 = vector.broadcast %156 : vector<1x1x32xf32> to vector<2x8x32xf32>
    %158 = arith.addf %154, %157 : vector<2x8x32xf32>
    %159 = vector.extract_strided_slice %9 {offsets = [3, 0], sizes = [1, 32], strides = [1, 1]} : vector<6x32xf32> to vector<1x32xf32>
    %160 = vector.extract_strided_slice %9 {offsets = [4, 0], sizes = [1, 32], strides = [1, 1]} : vector<6x32xf32> to vector<1x32xf32>
    %cst_47 = arith.constant dense<0.000000e+00> : vector<2x8xf32>
    %161 = vector.multi_reduction <add>, %158, %cst_47 [2] : vector<2x8x32xf32> to vector<2x8xf32>
    %162 = vector.shape_cast %161 : vector<2x8xf32> to vector<2x8x1xf32>
    %cst_48 = arith.constant 3.200000e+01 : f32
    %163 = vector.broadcast %cst_48 : f32 to vector<2x8x1xf32>
    %164 = arith.divf %162, %163 : vector<2x8x1xf32>
    %165 = vector.broadcast %164 : vector<2x8x1xf32> to vector<2x8x32xf32>
    %166 = arith.subf %158, %165 : vector<2x8x32xf32>
    %167 = arith.mulf %166, %166 : vector<2x8x32xf32>
    %cst_49 = arith.constant dense<0.000000e+00> : vector<2x8xf32>
    %168 = vector.multi_reduction <add>, %167, %cst_49 [2] : vector<2x8x32xf32> to vector<2x8xf32>
    %169 = vector.shape_cast %168 : vector<2x8xf32> to vector<2x8x1xf32>
    %cst_50 = arith.constant 3.200000e+01 : f32
    %170 = vector.broadcast %cst_50 : f32 to vector<2x8x1xf32>
    %171 = arith.divf %169, %170 : vector<2x8x1xf32>
    %172 = vector.broadcast %164 : vector<2x8x1xf32> to vector<2x8x32xf32>
    %173 = arith.subf %158, %172 : vector<2x8x32xf32>
    %cst_51 = arith.constant 9.99999974E-6 : f32
    %174 = vector.broadcast %cst_51 : f32 to vector<2x8x1xf32>
    %175 = arith.addf %171, %174 : vector<2x8x1xf32>
    %176 = math.rsqrt %175 : vector<2x8x1xf32>
    %177 = vector.broadcast %176 : vector<2x8x1xf32> to vector<2x8x32xf32>
    %178 = arith.mulf %173, %177 : vector<2x8x32xf32>
    %179 = vector.shape_cast %159 : vector<1x32xf32> to vector<1x1x32xf32>
    %180 = vector.broadcast %179 : vector<1x1x32xf32> to vector<2x8x32xf32>
    %181 = arith.mulf %178, %180 : vector<2x8x32xf32>
    %182 = vector.shape_cast %160 : vector<1x32xf32> to vector<1x1x32xf32>
    %183 = vector.broadcast %182 : vector<1x1x32xf32> to vector<2x8x32xf32>
    %184 = arith.addf %181, %183 : vector<2x8x32xf32>
    %c0_52 = arith.constant 0 : index
    %c0_53 = arith.constant 0 : index
    %c0_54 = arith.constant 0 : index
    %185 = vector.load %arg5[%c0_52, %c0_53, %c0_54] : memref<2x32x128xbf16, #tpu.memory_space<vmem>>, vector<1x32x128xbf16>
    %186 = vector.shape_cast %185 : vector<1x32x128xbf16> to vector<32x128xbf16>
    %187 = vector.shape_cast %184 : vector<2x8x32xf32> to vector<16x32xf32>
    %188 = arith.truncf %187 : vector<16x32xf32> to vector<16x32xbf16>
    %cst_55 = arith.constant dense<0.000000e+00> : vector<16x128xf32>
    %189 = tpu.matmul %188, %186, %cst_55 {dimension_numbers = #tpu.dot_dimension_numbers<[1], [0], [0], [1], [0, 0, 1, 1], [], []>} : vector<16x32xbf16>, vector<32x128xbf16>, vector<16x128xf32> -> vector<16x128xf32>
    %190 = vector.shape_cast %189 : vector<16x128xf32> to vector<2x8x128xf32>
    %c0_56 = arith.constant 0 : index
    %c0_57 = arith.constant 0 : index
    %c0_58 = arith.constant 0 : index
    %191 = vector.load %arg4[%c0_56, %c0_57, %c0_58] : memref<2x1x128xf32, #tpu.memory_space<vmem>>, vector<1x1x128xf32>
    %192 = vector.shape_cast %191 : vector<1x1x128xf32> to vector<1x128xf32>
    %193 = vector.shape_cast %192 : vector<1x128xf32> to vector<1x1x128xf32>
    %194 = vector.broadcast %193 : vector<1x1x128xf32> to vector<2x8x128xf32>
    %195 = arith.addf %190, %194 : vector<2x8x128xf32>
    %cst_59 = arith.constant 1.702000e+00 : f32
    %196 = vector.broadcast %cst_59 : f32 to vector<2x8x128xf32>
    %197 = arith.mulf %196, %195 : vector<2x8x128xf32>
    %198 = arith.negf %197 : vector<2x8x128xf32>
    %199 = math.exp %198 : vector<2x8x128xf32>
    %cst_60 = arith.constant 1.000000e+00 : f32
    %200 = vector.broadcast %cst_60 : f32 to vector<2x8x128xf32>
    %201 = arith.addf %200, %199 : vector<2x8x128xf32>
    %202 = arith.divf %200, %201 : vector<2x8x128xf32>
    %203 = arith.mulf %195, %202 : vector<2x8x128xf32>
    %c0_61 = arith.constant 0 : index
    %c0_62 = arith.constant 0 : index
    %c0_63 = arith.constant 0 : index
    %204 = vector.load %arg6[%c0_61, %c0_62, %c0_63] : memref<2x128x32xbf16, #tpu.memory_space<vmem>>, vector<1x128x32xbf16>
    %205 = vector.shape_cast %204 : vector<1x128x32xbf16> to vector<128x32xbf16>
    %206 = vector.shape_cast %203 : vector<2x8x128xf32> to vector<16x128xf32>
    %207 = arith.truncf %206 : vector<16x128xf32> to vector<16x128xbf16>
    %cst_64 = arith.constant dense<0.000000e+00> : vector<16x32xf32>
    %208 = tpu.matmul %207, %205, %cst_64 {dimension_numbers = #tpu.dot_dimension_numbers<[1], [0], [0], [1], [0, 0, 1, 1], [], []>} : vector<16x128xbf16>, vector<128x32xbf16>, vector<16x32xf32> -> vector<16x32xf32>
    %209 = vector.shape_cast %208 : vector<16x32xf32> to vector<2x8x32xf32>
    %210 = arith.addf %158, %209 : vector<2x8x32xf32>
    %211 = vector.extract_strided_slice %9 {offsets = [5, 0], sizes = [1, 32], strides = [1, 1]} : vector<6x32xf32> to vector<1x32xf32>
    %212 = vector.shape_cast %211 : vector<1x32xf32> to vector<1x1x32xf32>
    %213 = vector.broadcast %212 : vector<1x1x32xf32> to vector<2x8x32xf32>
    %214 = arith.addf %210, %213 : vector<2x8x32xf32>
    %c1 = arith.constant 1 : index
    %c0_65 = arith.constant 0 : index
    %c0_66 = arith.constant 0 : index
    %215 = vector.load %arg10[%c1, %c0_65, %c0_66] : memref<2x6x32xf32, #tpu.memory_space<vmem>>, vector<1x6x32xf32>
    %216 = vector.shape_cast %215 : vector<1x6x32xf32> to vector<6x32xf32>
    %217 = vector.extract_strided_slice %216 {offsets = [0, 0], sizes = [1, 32], strides = [1, 1]} : vector<6x32xf32> to vector<1x32xf32>
    %218 = vector.extract_strided_slice %216 {offsets = [1, 0], sizes = [1, 32], strides = [1, 1]} : vector<6x32xf32> to vector<1x32xf32>
    %cst_67 = arith.constant dense<0.000000e+00> : vector<2x8xf32>
    %219 = vector.multi_reduction <add>, %214, %cst_67 [2] : vector<2x8x32xf32> to vector<2x8xf32>
    %220 = vector.shape_cast %219 : vector<2x8xf32> to vector<2x8x1xf32>
    %cst_68 = arith.constant 3.200000e+01 : f32
    %221 = vector.broadcast %cst_68 : f32 to vector<2x8x1xf32>
    %222 = arith.divf %220, %221 : vector<2x8x1xf32>
    %223 = vector.broadcast %222 : vector<2x8x1xf32> to vector<2x8x32xf32>
    %224 = arith.subf %214, %223 : vector<2x8x32xf32>
    %225 = arith.mulf %224, %224 : vector<2x8x32xf32>
    %cst_69 = arith.constant dense<0.000000e+00> : vector<2x8xf32>
    %226 = vector.multi_reduction <add>, %225, %cst_69 [2] : vector<2x8x32xf32> to vector<2x8xf32>
    %227 = vector.shape_cast %226 : vector<2x8xf32> to vector<2x8x1xf32>
    %cst_70 = arith.constant 3.200000e+01 : f32
    %228 = vector.broadcast %cst_70 : f32 to vector<2x8x1xf32>
    %229 = arith.divf %227, %228 : vector<2x8x1xf32>
    %230 = vector.broadcast %222 : vector<2x8x1xf32> to vector<2x8x32xf32>
    %231 = arith.subf %214, %230 : vector<2x8x32xf32>
    %cst_71 = arith.constant 9.99999974E-6 : f32
    %232 = vector.broadcast %cst_71 : f32 to vector<2x8x1xf32>
    %233 = arith.addf %229, %232 : vector<2x8x1xf32>
    %234 = math.rsqrt %233 : vector<2x8x1xf32>
    %235 = vector.broadcast %234 : vector<2x8x1xf32> to vector<2x8x32xf32>
    %236 = arith.mulf %231, %235 : vector<2x8x32xf32>
    %237 = vector.shape_cast %217 : vector<1x32xf32> to vector<1x1x32xf32>
    %238 = vector.broadcast %237 : vector<1x1x32xf32> to vector<2x8x32xf32>
    %239 = arith.mulf %236, %238 : vector<2x8x32xf32>
    %240 = vector.shape_cast %218 : vector<1x32xf32> to vector<1x1x32xf32>
    %241 = vector.broadcast %240 : vector<1x1x32xf32> to vector<2x8x32xf32>
    %242 = arith.addf %239, %241 : vector<2x8x32xf32>
    %c1_72 = arith.constant 1 : index
    %c0_73 = arith.constant 0 : index
    %c0_74 = arith.constant 0 : index
    %243 = vector.load %arg9[%c1_72, %c0_73, %c0_74] : memref<2x32x96xbf16, #tpu.memory_space<vmem>>, vector<1x32x96xbf16>
    %244 = vector.shape_cast %243 : vector<1x32x96xbf16> to vector<32x96xbf16>
    %245 = vector.shape_cast %242 : vector<2x8x32xf32> to vector<16x32xf32>
    %246 = arith.truncf %245 : vector<16x32xf32> to vector<16x32xbf16>
    %cst_75 = arith.constant dense<0.000000e+00> : vector<16x96xf32>
    %247 = tpu.matmul %246, %244, %cst_75 {dimension_numbers = #tpu.dot_dimension_numbers<[1], [0], [0], [1], [0, 0, 1, 1], [], []>} : vector<16x32xbf16>, vector<32x96xbf16>, vector<16x96xf32> -> vector<16x96xf32>
    %248 = vector.shape_cast %247 : vector<16x96xf32> to vector<2x8x96xf32>
    %c1_76 = arith.constant 1 : index
    %c0_77 = arith.constant 0 : index
    %c0_78 = arith.constant 0 : index
    %249 = vector.load %arg8[%c1_76, %c0_77, %c0_78] : memref<2x1x96xf32, #tpu.memory_space<vmem>>, vector<1x1x96xf32>
    %250 = vector.shape_cast %249 : vector<1x1x96xf32> to vector<1x96xf32>
    %251 = vector.shape_cast %250 : vector<1x96xf32> to vector<1x1x96xf32>
    %252 = vector.broadcast %251 : vector<1x1x96xf32> to vector<2x8x96xf32>
    %253 = arith.addf %248, %252 : vector<2x8x96xf32>
    %254 = vector.extract_strided_slice %253 {offsets = [0, 0, 0], sizes = [2, 8, 8], strides = [1, 1, 1]} : vector<2x8x96xf32> to vector<2x8x8xf32>
    %255 = vector.extract_strided_slice %253 {offsets = [0, 0, 32], sizes = [2, 8, 8], strides = [1, 1, 1]} : vector<2x8x96xf32> to vector<2x8x8xf32>
    %256 = vector.extract_strided_slice %253 {offsets = [0, 0, 64], sizes = [2, 8, 8], strides = [1, 1, 1]} : vector<2x8x96xf32> to vector<2x8x8xf32>
    %257 = arith.truncf %254 : vector<2x8x8xf32> to vector<2x8x8xbf16>
    %258 = arith.truncf %255 : vector<2x8x8xf32> to vector<2x8x8xbf16>
    "tpu.trace_start"() <{level = 10 : i32, message = "bqd,bkd->bqk"}> : () -> ()
    %cst_79 = arith.constant dense<0.000000e+00> : vector<2x8x8xf32>
    %259 = tpu.matmul %257, %258, %cst_79 {dimension_numbers = #tpu.dot_dimension_numbers<[2], [2], [1], [1], [0, 0, 0, 1, 1, 1], [0], [0]>} : vector<2x8x8xbf16>, vector<2x8x8xbf16>, vector<2x8x8xf32> -> vector<2x8x8xf32>
    "tpu.trace_stop"() : () -> ()
    %cst_80 = arith.constant 0.353553385 : f32
    %260 = vector.broadcast %cst_80 : f32 to vector<2x8x8xf32>
    %261 = arith.mulf %259, %260 : vector<2x8x8xf32>
    %cst_81 = arith.constant -1.000000e+30 : f32
    %262 = vector.shape_cast %7 : vector<1x8x8xi1> to vector<1x8x8xi1>
    %263 = vector.broadcast %262 : vector<1x8x8xi1> to vector<2x8x8xi1>
    %264 = vector.broadcast %cst_81 : f32 to vector<2x8x8xf32>
    %265 = arith.select %263, %261, %264 : vector<2x8x8xi1>, vector<2x8x8xf32>
    %cst_82 = arith.constant dense<0xFF800000> : vector<2x8xf32>
    %266 = vector.multi_reduction <maximumf>, %265, %cst_82 [2] : vector<2x8x8xf32> to vector<2x8xf32>
    %267 = vector.shape_cast %266 : vector<2x8xf32> to vector<2x8x1xf32>
    %268 = vector.broadcast %267 : vector<2x8x1xf32> to vector<2x8x8xf32>
    %269 = arith.subf %265, %268 : vector<2x8x8xf32>
    %270 = math.exp %269 : vector<2x8x8xf32>
    %cst_83 = arith.constant dense<0.000000e+00> : vector<2x8xf32>
    %271 = vector.multi_reduction <add>, %270, %cst_83 [2] : vector<2x8x8xf32> to vector<2x8xf32>
    %272 = vector.shape_cast %271 : vector<2x8xf32> to vector<2x8x1xf32>
    %273 = tpu.reciprocal %272 {approx = true} : vector<2x8x1xf32> -> vector<2x8x1xf32>
    %274 = vector.broadcast %273 : vector<2x8x1xf32> to vector<2x8x8xf32>
    %275 = arith.mulf %270, %274 : vector<2x8x8xf32>
    %276 = arith.truncf %275 : vector<2x8x8xf32> to vector<2x8x8xbf16>
    %277 = arith.truncf %256 : vector<2x8x8xf32> to vector<2x8x8xbf16>
    "tpu.trace_start"() <{level = 10 : i32, message = "bqk,bkd->bqd"}> : () -> ()
    %cst_84 = arith.constant dense<0.000000e+00> : vector<2x8x8xf32>
    %278 = tpu.matmul %276, %277, %cst_84 {dimension_numbers = #tpu.dot_dimension_numbers<[2], [1], [1], [2], [0, 0, 0, 1, 1, 2], [0], [0]>} : vector<2x8x8xbf16>, vector<2x8x8xbf16>, vector<2x8x8xf32> -> vector<2x8x8xf32>
    "tpu.trace_stop"() : () -> ()
    %279 = vector.extract_strided_slice %253 {offsets = [0, 0, 8], sizes = [2, 8, 8], strides = [1, 1, 1]} : vector<2x8x96xf32> to vector<2x8x8xf32>
    %280 = vector.extract_strided_slice %253 {offsets = [0, 0, 40], sizes = [2, 8, 8], strides = [1, 1, 1]} : vector<2x8x96xf32> to vector<2x8x8xf32>
    %281 = vector.extract_strided_slice %253 {offsets = [0, 0, 72], sizes = [2, 8, 8], strides = [1, 1, 1]} : vector<2x8x96xf32> to vector<2x8x8xf32>
    %282 = arith.truncf %279 : vector<2x8x8xf32> to vector<2x8x8xbf16>
    %283 = arith.truncf %280 : vector<2x8x8xf32> to vector<2x8x8xbf16>
    "tpu.trace_start"() <{level = 10 : i32, message = "bqd,bkd->bqk"}> : () -> ()
    %cst_85 = arith.constant dense<0.000000e+00> : vector<2x8x8xf32>
    %284 = tpu.matmul %282, %283, %cst_85 {dimension_numbers = #tpu.dot_dimension_numbers<[2], [2], [1], [1], [0, 0, 0, 1, 1, 1], [0], [0]>} : vector<2x8x8xbf16>, vector<2x8x8xbf16>, vector<2x8x8xf32> -> vector<2x8x8xf32>
    "tpu.trace_stop"() : () -> ()
    %cst_86 = arith.constant 0.353553385 : f32
    %285 = vector.broadcast %cst_86 : f32 to vector<2x8x8xf32>
    %286 = arith.mulf %284, %285 : vector<2x8x8xf32>
    %cst_87 = arith.constant -1.000000e+30 : f32
    %287 = vector.shape_cast %7 : vector<1x8x8xi1> to vector<1x8x8xi1>
    %288 = vector.broadcast %287 : vector<1x8x8xi1> to vector<2x8x8xi1>
    %289 = vector.broadcast %cst_87 : f32 to vector<2x8x8xf32>
    %290 = arith.select %288, %286, %289 : vector<2x8x8xi1>, vector<2x8x8xf32>
    %cst_88 = arith.constant dense<0xFF800000> : vector<2x8xf32>
    %291 = vector.multi_reduction <maximumf>, %290, %cst_88 [2] : vector<2x8x8xf32> to vector<2x8xf32>
    %292 = vector.shape_cast %291 : vector<2x8xf32> to vector<2x8x1xf32>
    %293 = vector.broadcast %292 : vector<2x8x1xf32> to vector<2x8x8xf32>
    %294 = arith.subf %290, %293 : vector<2x8x8xf32>
    %295 = math.exp %294 : vector<2x8x8xf32>
    %cst_89 = arith.constant dense<0.000000e+00> : vector<2x8xf32>
    %296 = vector.multi_reduction <add>, %295, %cst_89 [2] : vector<2x8x8xf32> to vector<2x8xf32>
    %297 = vector.shape_cast %296 : vector<2x8xf32> to vector<2x8x1xf32>
    %298 = tpu.reciprocal %297 {approx = true} : vector<2x8x1xf32> -> vector<2x8x1xf32>
    %299 = vector.broadcast %298 : vector<2x8x1xf32> to vector<2x8x8xf32>
    %300 = arith.mulf %295, %299 : vector<2x8x8xf32>
    %301 = arith.truncf %300 : vector<2x8x8xf32> to vector<2x8x8xbf16>
    %302 = arith.truncf %281 : vector<2x8x8xf32> to vector<2x8x8xbf16>
    "tpu.trace_start"() <{level = 10 : i32, message = "bqk,bkd->bqd"}> : () -> ()
    %cst_90 = arith.constant dense<0.000000e+00> : vector<2x8x8xf32>
    %303 = tpu.matmul %301, %302, %cst_90 {dimension_numbers = #tpu.dot_dimension_numbers<[2], [1], [1], [2], [0, 0, 0, 1, 1, 2], [0], [0]>} : vector<2x8x8xbf16>, vector<2x8x8xbf16>, vector<2x8x8xf32> -> vector<2x8x8xf32>
    "tpu.trace_stop"() : () -> ()
    %304 = vector.extract_strided_slice %253 {offsets = [0, 0, 16], sizes = [2, 8, 8], strides = [1, 1, 1]} : vector<2x8x96xf32> to vector<2x8x8xf32>
    %305 = vector.extract_strided_slice %253 {offsets = [0, 0, 48], sizes = [2, 8, 8], strides = [1, 1, 1]} : vector<2x8x96xf32> to vector<2x8x8xf32>
    %306 = vector.extract_strided_slice %253 {offsets = [0, 0, 80], sizes = [2, 8, 8], strides = [1, 1, 1]} : vector<2x8x96xf32> to vector<2x8x8xf32>
    %307 = arith.truncf %304 : vector<2x8x8xf32> to vector<2x8x8xbf16>
    %308 = arith.truncf %305 : vector<2x8x8xf32> to vector<2x8x8xbf16>
    "tpu.trace_start"() <{level = 10 : i32, message = "bqd,bkd->bqk"}> : () -> ()
    %cst_91 = arith.constant dense<0.000000e+00> : vector<2x8x8xf32>
    %309 = tpu.matmul %307, %308, %cst_91 {dimension_numbers = #tpu.dot_dimension_numbers<[2], [2], [1], [1], [0, 0, 0, 1, 1, 1], [0], [0]>} : vector<2x8x8xbf16>, vector<2x8x8xbf16>, vector<2x8x8xf32> -> vector<2x8x8xf32>
    "tpu.trace_stop"() : () -> ()
    %cst_92 = arith.constant 0.353553385 : f32
    %310 = vector.broadcast %cst_92 : f32 to vector<2x8x8xf32>
    %311 = arith.mulf %309, %310 : vector<2x8x8xf32>
    %cst_93 = arith.constant -1.000000e+30 : f32
    %312 = vector.shape_cast %7 : vector<1x8x8xi1> to vector<1x8x8xi1>
    %313 = vector.broadcast %312 : vector<1x8x8xi1> to vector<2x8x8xi1>
    %314 = vector.broadcast %cst_93 : f32 to vector<2x8x8xf32>
    %315 = arith.select %313, %311, %314 : vector<2x8x8xi1>, vector<2x8x8xf32>
    %cst_94 = arith.constant dense<0xFF800000> : vector<2x8xf32>
    %316 = vector.multi_reduction <maximumf>, %315, %cst_94 [2] : vector<2x8x8xf32> to vector<2x8xf32>
    %317 = vector.shape_cast %316 : vector<2x8xf32> to vector<2x8x1xf32>
    %318 = vector.broadcast %317 : vector<2x8x1xf32> to vector<2x8x8xf32>
    %319 = arith.subf %315, %318 : vector<2x8x8xf32>
    %320 = math.exp %319 : vector<2x8x8xf32>
    %cst_95 = arith.constant dense<0.000000e+00> : vector<2x8xf32>
    %321 = vector.multi_reduction <add>, %320, %cst_95 [2] : vector<2x8x8xf32> to vector<2x8xf32>
    %322 = vector.shape_cast %321 : vector<2x8xf32> to vector<2x8x1xf32>
    %323 = tpu.reciprocal %322 {approx = true} : vector<2x8x1xf32> -> vector<2x8x1xf32>
    %324 = vector.broadcast %323 : vector<2x8x1xf32> to vector<2x8x8xf32>
    %325 = arith.mulf %320, %324 : vector<2x8x8xf32>
    %326 = arith.truncf %325 : vector<2x8x8xf32> to vector<2x8x8xbf16>
    %327 = arith.truncf %306 : vector<2x8x8xf32> to vector<2x8x8xbf16>
    "tpu.trace_start"() <{level = 10 : i32, message = "bqk,bkd->bqd"}> : () -> ()
    %cst_96 = arith.constant dense<0.000000e+00> : vector<2x8x8xf32>
    %328 = tpu.matmul %326, %327, %cst_96 {dimension_numbers = #tpu.dot_dimension_numbers<[2], [1], [1], [2], [0, 0, 0, 1, 1, 2], [0], [0]>} : vector<2x8x8xbf16>, vector<2x8x8xbf16>, vector<2x8x8xf32> -> vector<2x8x8xf32>
    "tpu.trace_stop"() : () -> ()
    %329 = vector.extract_strided_slice %253 {offsets = [0, 0, 24], sizes = [2, 8, 8], strides = [1, 1, 1]} : vector<2x8x96xf32> to vector<2x8x8xf32>
    %330 = vector.extract_strided_slice %253 {offsets = [0, 0, 56], sizes = [2, 8, 8], strides = [1, 1, 1]} : vector<2x8x96xf32> to vector<2x8x8xf32>
    %331 = vector.extract_strided_slice %253 {offsets = [0, 0, 88], sizes = [2, 8, 8], strides = [1, 1, 1]} : vector<2x8x96xf32> to vector<2x8x8xf32>
    %332 = arith.truncf %329 : vector<2x8x8xf32> to vector<2x8x8xbf16>
    %333 = arith.truncf %330 : vector<2x8x8xf32> to vector<2x8x8xbf16>
    "tpu.trace_start"() <{level = 10 : i32, message = "bqd,bkd->bqk"}> : () -> ()
    %cst_97 = arith.constant dense<0.000000e+00> : vector<2x8x8xf32>
    %334 = tpu.matmul %332, %333, %cst_97 {dimension_numbers = #tpu.dot_dimension_numbers<[2], [2], [1], [1], [0, 0, 0, 1, 1, 1], [0], [0]>} : vector<2x8x8xbf16>, vector<2x8x8xbf16>, vector<2x8x8xf32> -> vector<2x8x8xf32>
    "tpu.trace_stop"() : () -> ()
    %cst_98 = arith.constant 0.353553385 : f32
    %335 = vector.broadcast %cst_98 : f32 to vector<2x8x8xf32>
    %336 = arith.mulf %334, %335 : vector<2x8x8xf32>
    %cst_99 = arith.constant -1.000000e+30 : f32
    %337 = vector.shape_cast %7 : vector<1x8x8xi1> to vector<1x8x8xi1>
    %338 = vector.broadcast %337 : vector<1x8x8xi1> to vector<2x8x8xi1>
    %339 = vector.broadcast %cst_99 : f32 to vector<2x8x8xf32>
    %340 = arith.select %338, %336, %339 : vector<2x8x8xi1>, vector<2x8x8xf32>
    %cst_100 = arith.constant dense<0xFF800000> : vector<2x8xf32>
    %341 = vector.multi_reduction <maximumf>, %340, %cst_100 [2] : vector<2x8x8xf32> to vector<2x8xf32>
    %342 = vector.shape_cast %341 : vector<2x8xf32> to vector<2x8x1xf32>
    %343 = vector.broadcast %342 : vector<2x8x1xf32> to vector<2x8x8xf32>
    %344 = arith.subf %340, %343 : vector<2x8x8xf32>
    %345 = math.exp %344 : vector<2x8x8xf32>
    %cst_101 = arith.constant dense<0.000000e+00> : vector<2x8xf32>
    %346 = vector.multi_reduction <add>, %345, %cst_101 [2] : vector<2x8x8xf32> to vector<2x8xf32>
    %347 = vector.shape_cast %346 : vector<2x8xf32> to vector<2x8x1xf32>
    %348 = tpu.reciprocal %347 {approx = true} : vector<2x8x1xf32> -> vector<2x8x1xf32>
    %349 = vector.broadcast %348 : vector<2x8x1xf32> to vector<2x8x8xf32>
    %350 = arith.mulf %345, %349 : vector<2x8x8xf32>
    %351 = arith.truncf %350 : vector<2x8x8xf32> to vector<2x8x8xbf16>
    %352 = arith.truncf %331 : vector<2x8x8xf32> to vector<2x8x8xbf16>
    "tpu.trace_start"() <{level = 10 : i32, message = "bqk,bkd->bqd"}> : () -> ()
    %cst_102 = arith.constant dense<0.000000e+00> : vector<2x8x8xf32>
    %353 = tpu.matmul %351, %352, %cst_102 {dimension_numbers = #tpu.dot_dimension_numbers<[2], [1], [1], [2], [0, 0, 0, 1, 1, 2], [0], [0]>} : vector<2x8x8xbf16>, vector<2x8x8xbf16>, vector<2x8x8xf32> -> vector<2x8x8xf32>
    "tpu.trace_stop"() : () -> ()
    %354 = tpu.concatenate %278, %303, %328, %353 in 2 : vector<2x8x8xf32>, vector<2x8x8xf32>, vector<2x8x8xf32>, vector<2x8x8xf32> -> vector<2x8x32xf32>
    %c1_103 = arith.constant 1 : index
    %c0_104 = arith.constant 0 : index
    %c0_105 = arith.constant 0 : index
    %355 = vector.load %arg7[%c1_103, %c0_104, %c0_105] : memref<2x32x32xbf16, #tpu.memory_space<vmem>>, vector<1x32x32xbf16>
    %356 = vector.shape_cast %355 : vector<1x32x32xbf16> to vector<32x32xbf16>
    %357 = vector.shape_cast %354 : vector<2x8x32xf32> to vector<16x32xf32>
    %358 = arith.truncf %357 : vector<16x32xf32> to vector<16x32xbf16>
    %cst_106 = arith.constant dense<0.000000e+00> : vector<16x32xf32>
    %359 = tpu.matmul %358, %356, %cst_106 {dimension_numbers = #tpu.dot_dimension_numbers<[1], [0], [0], [1], [0, 0, 1, 1], [], []>} : vector<16x32xbf16>, vector<32x32xbf16>, vector<16x32xf32> -> vector<16x32xf32>
    %360 = vector.shape_cast %359 : vector<16x32xf32> to vector<2x8x32xf32>
    %361 = arith.addf %214, %360 : vector<2x8x32xf32>
    %362 = vector.extract_strided_slice %216 {offsets = [2, 0], sizes = [1, 32], strides = [1, 1]} : vector<6x32xf32> to vector<1x32xf32>
    %363 = vector.shape_cast %362 : vector<1x32xf32> to vector<1x1x32xf32>
    %364 = vector.broadcast %363 : vector<1x1x32xf32> to vector<2x8x32xf32>
    %365 = arith.addf %361, %364 : vector<2x8x32xf32>
    %366 = vector.extract_strided_slice %216 {offsets = [3, 0], sizes = [1, 32], strides = [1, 1]} : vector<6x32xf32> to vector<1x32xf32>
    %367 = vector.extract_strided_slice %216 {offsets = [4, 0], sizes = [1, 32], strides = [1, 1]} : vector<6x32xf32> to vector<1x32xf32>
    %cst_107 = arith.constant dense<0.000000e+00> : vector<2x8xf32>
    %368 = vector.multi_reduction <add>, %365, %cst_107 [2] : vector<2x8x32xf32> to vector<2x8xf32>
    %369 = vector.shape_cast %368 : vector<2x8xf32> to vector<2x8x1xf32>
    %cst_108 = arith.constant 3.200000e+01 : f32
    %370 = vector.broadcast %cst_108 : f32 to vector<2x8x1xf32>
    %371 = arith.divf %369, %370 : vector<2x8x1xf32>
    %372 = vector.broadcast %371 : vector<2x8x1xf32> to vector<2x8x32xf32>
    %373 = arith.subf %365, %372 : vector<2x8x32xf32>
    %374 = arith.mulf %373, %373 : vector<2x8x32xf32>
    %cst_109 = arith.constant dense<0.000000e+00> : vector<2x8xf32>
    %375 = vector.multi_reduction <add>, %374, %cst_109 [2] : vector<2x8x32xf32> to vector<2x8xf32>
    %376 = vector.shape_cast %375 : vector<2x8xf32> to vector<2x8x1xf32>
    %cst_110 = arith.constant 3.200000e+01 : f32
    %377 = vector.broadcast %cst_110 : f32 to vector<2x8x1xf32>
    %378 = arith.divf %376, %377 : vector<2x8x1xf32>
    %379 = vector.broadcast %371 : vector<2x8x1xf32> to vector<2x8x32xf32>
    %380 = arith.subf %365, %379 : vector<2x8x32xf32>
    %cst_111 = arith.constant 9.99999974E-6 : f32
    %381 = vector.broadcast %cst_111 : f32 to vector<2x8x1xf32>
    %382 = arith.addf %378, %381 : vector<2x8x1xf32>
    %383 = math.rsqrt %382 : vector<2x8x1xf32>
    %384 = vector.broadcast %383 : vector<2x8x1xf32> to vector<2x8x32xf32>
    %385 = arith.mulf %380, %384 : vector<2x8x32xf32>
    %386 = vector.shape_cast %366 : vector<1x32xf32> to vector<1x1x32xf32>
    %387 = vector.broadcast %386 : vector<1x1x32xf32> to vector<2x8x32xf32>
    %388 = arith.mulf %385, %387 : vector<2x8x32xf32>
    %389 = vector.shape_cast %367 : vector<1x32xf32> to vector<1x1x32xf32>
    %390 = vector.broadcast %389 : vector<1x1x32xf32> to vector<2x8x32xf32>
    %391 = arith.addf %388, %390 : vector<2x8x32xf32>
    %c1_112 = arith.constant 1 : index
    %c0_113 = arith.constant 0 : index
    %c0_114 = arith.constant 0 : index
    %392 = vector.load %arg5[%c1_112, %c0_113, %c0_114] : memref<2x32x128xbf16, #tpu.memory_space<vmem>>, vector<1x32x128xbf16>
    %393 = vector.shape_cast %392 : vector<1x32x128xbf16> to vector<32x128xbf16>
    %394 = vector.shape_cast %391 : vector<2x8x32xf32> to vector<16x32xf32>
    %395 = arith.truncf %394 : vector<16x32xf32> to vector<16x32xbf16>
    %cst_115 = arith.constant dense<0.000000e+00> : vector<16x128xf32>
    %396 = tpu.matmul %395, %393, %cst_115 {dimension_numbers = #tpu.dot_dimension_numbers<[1], [0], [0], [1], [0, 0, 1, 1], [], []>} : vector<16x32xbf16>, vector<32x128xbf16>, vector<16x128xf32> -> vector<16x128xf32>
    %397 = vector.shape_cast %396 : vector<16x128xf32> to vector<2x8x128xf32>
    %c1_116 = arith.constant 1 : index
    %c0_117 = arith.constant 0 : index
    %c0_118 = arith.constant 0 : index
    %398 = vector.load %arg4[%c1_116, %c0_117, %c0_118] : memref<2x1x128xf32, #tpu.memory_space<vmem>>, vector<1x1x128xf32>
    %399 = vector.shape_cast %398 : vector<1x1x128xf32> to vector<1x128xf32>
    %400 = vector.shape_cast %399 : vector<1x128xf32> to vector<1x1x128xf32>
    %401 = vector.broadcast %400 : vector<1x1x128xf32> to vector<2x8x128xf32>
    %402 = arith.addf %397, %401 : vector<2x8x128xf32>
    %cst_119 = arith.constant 1.702000e+00 : f32
    %403 = vector.broadcast %cst_119 : f32 to vector<2x8x128xf32>
    %404 = arith.mulf %403, %402 : vector<2x8x128xf32>
    %405 = arith.negf %404 : vector<2x8x128xf32>
    %406 = math.exp %405 : vector<2x8x128xf32>
    %cst_120 = arith.constant 1.000000e+00 : f32
    %407 = vector.broadcast %cst_120 : f32 to vector<2x8x128xf32>
    %408 = arith.addf %407, %406 : vector<2x8x128xf32>
    %409 = arith.divf %407, %408 : vector<2x8x128xf32>
    %410 = arith.mulf %402, %409 : vector<2x8x128xf32>
    %c1_121 = arith.constant 1 : index
    %c0_122 = arith.constant 0 : index
    %c0_123 = arith.constant 0 : index
    %411 = vector.load %arg6[%c1_121, %c0_122, %c0_123] : memref<2x128x32xbf16, #tpu.memory_space<vmem>>, vector<1x128x32xbf16>
    %412 = vector.shape_cast %411 : vector<1x128x32xbf16> to vector<128x32xbf16>
    %413 = vector.shape_cast %410 : vector<2x8x128xf32> to vector<16x128xf32>
    %414 = arith.truncf %413 : vector<16x128xf32> to vector<16x128xbf16>
    %cst_124 = arith.constant dense<0.000000e+00> : vector<16x32xf32>
    %415 = tpu.matmul %414, %412, %cst_124 {dimension_numbers = #tpu.dot_dimension_numbers<[1], [0], [0], [1], [0, 0, 1, 1], [], []>} : vector<16x128xbf16>, vector<128x32xbf16>, vector<16x32xf32> -> vector<16x32xf32>
    %416 = vector.shape_cast %415 : vector<16x32xf32> to vector<2x8x32xf32>
    %417 = arith.addf %365, %416 : vector<2x8x32xf32>
    %418 = vector.extract_strided_slice %216 {offsets = [5, 0], sizes = [1, 32], strides = [1, 1]} : vector<6x32xf32> to vector<1x32xf32>
    %419 = vector.shape_cast %418 : vector<1x32xf32> to vector<1x1x32xf32>
    %420 = vector.broadcast %419 : vector<1x1x32xf32> to vector<2x8x32xf32>
    %421 = arith.addf %417, %420 : vector<2x8x32xf32>
    %c0_125 = arith.constant 0 : index
    %c0_126 = arith.constant 0 : index
    %422 = vector.load %arg11[%c0_125, %c0_126] : memref<2x32xf32, #tpu.memory_space<vmem>>, vector<1x32xf32>
    %c1_127 = arith.constant 1 : index
    %c0_128 = arith.constant 0 : index
    %423 = vector.load %arg11[%c1_127, %c0_128] : memref<2x32xf32, #tpu.memory_space<vmem>>, vector<1x32xf32>
    %cst_129 = arith.constant dense<0.000000e+00> : vector<2x8xf32>
    %424 = vector.multi_reduction <add>, %421, %cst_129 [2] : vector<2x8x32xf32> to vector<2x8xf32>
    %425 = vector.shape_cast %424 : vector<2x8xf32> to vector<2x8x1xf32>
    %cst_130 = arith.constant 3.200000e+01 : f32
    %426 = vector.broadcast %cst_130 : f32 to vector<2x8x1xf32>
    %427 = arith.divf %425, %426 : vector<2x8x1xf32>
    %428 = vector.broadcast %427 : vector<2x8x1xf32> to vector<2x8x32xf32>
    %429 = arith.subf %421, %428 : vector<2x8x32xf32>
    %430 = arith.mulf %429, %429 : vector<2x8x32xf32>
    %cst_131 = arith.constant dense<0.000000e+00> : vector<2x8xf32>
    %431 = vector.multi_reduction <add>, %430, %cst_131 [2] : vector<2x8x32xf32> to vector<2x8xf32>
    %432 = vector.shape_cast %431 : vector<2x8xf32> to vector<2x8x1xf32>
    %cst_132 = arith.constant 3.200000e+01 : f32
    %433 = vector.broadcast %cst_132 : f32 to vector<2x8x1xf32>
    %434 = arith.divf %432, %433 : vector<2x8x1xf32>
    %435 = vector.broadcast %427 : vector<2x8x1xf32> to vector<2x8x32xf32>
    %436 = arith.subf %421, %435 : vector<2x8x32xf32>
    %cst_133 = arith.constant 9.99999974E-6 : f32
    %437 = vector.broadcast %cst_133 : f32 to vector<2x8x1xf32>
    %438 = arith.addf %434, %437 : vector<2x8x1xf32>
    %439 = math.rsqrt %438 : vector<2x8x1xf32>
    %440 = vector.broadcast %439 : vector<2x8x1xf32> to vector<2x8x32xf32>
    %441 = arith.mulf %436, %440 : vector<2x8x32xf32>
    %442 = vector.shape_cast %422 : vector<1x32xf32> to vector<1x1x32xf32>
    %443 = vector.broadcast %442 : vector<1x1x32xf32> to vector<2x8x32xf32>
    %444 = arith.mulf %441, %443 : vector<2x8x32xf32>
    %445 = vector.shape_cast %423 : vector<1x32xf32> to vector<1x1x32xf32>
    %446 = vector.broadcast %445 : vector<1x1x32xf32> to vector<2x8x32xf32>
    %447 = arith.addf %444, %446 : vector<2x8x32xf32>
    %c0_134 = arith.constant 0 : index
    %c0_135 = arith.constant 0 : index
    %c0_136 = arith.constant 0 : index
    %448 = vector.load %arg1[%c0_134, %c0_135, %c0_136] : memref<2x1x8xf32, #tpu.memory_space<vmem>>, vector<2x1x8xf32>
    "tpu.trace_start"() <{level = 10 : i32, message = "bqk,bkd->bqd"}> : () -> ()
    %cst_137 = arith.constant dense<0.000000e+00> : vector<2x1x32xf32>
    %449 = tpu.matmul %448, %447, %cst_137 {dimension_numbers = #tpu.dot_dimension_numbers<[2], [1], [1], [2], [0, 0, 0, 1, 1, 2], [0], [0]>} : vector<2x1x8xf32>, vector<2x8x32xf32>, vector<2x1x32xf32> -> vector<2x1x32xf32>
    "tpu.trace_stop"() : () -> ()
    %c0_138 = arith.constant 0 : index
    %c0_139 = arith.constant 0 : index
    %450 = vector.load %arg13[%c0_138, %c0_139] : memref<32x32xbf16, #tpu.memory_space<vmem>>, vector<32x32xbf16>
    %451 = vector.shape_cast %449 : vector<2x1x32xf32> to vector<2x32xf32>
    %452 = arith.truncf %451 : vector<2x32xf32> to vector<2x32xbf16>
    %cst_140 = arith.constant dense<0.000000e+00> : vector<2x32xf32>
    %453 = tpu.matmul %452, %450, %cst_140 {dimension_numbers = #tpu.dot_dimension_numbers<[1], [0], [0], [1], [0, 0, 1, 1], [], []>} : vector<2x32xbf16>, vector<32x32xbf16>, vector<2x32xf32> -> vector<2x32xf32>
    %454 = vector.shape_cast %453 : vector<2x32xf32> to vector<2x1x32xf32>
    %455 = vector.shape_cast %454 : vector<2x1x32xf32> to vector<2x32xf32>
    %456 = arith.mulf %455, %455 : vector<2x32xf32>
    %cst_141 = arith.constant dense<0.000000e+00> : vector<2xf32>
    %457 = vector.multi_reduction <add>, %456, %cst_141 [1] : vector<2x32xf32> to vector<2xf32>
    %458 = vector.shape_cast %457 : vector<2xf32> to vector<2x1xf32>
    %cst_142 = arith.constant 1.000000e-24 : f32
    %459 = vector.broadcast %cst_142 : f32 to vector<2x1xf32>
    %460 = arith.maximumf %458, %459 : vector<2x1xf32>
    %461 = math.rsqrt %460 : vector<2x1xf32>
    %462 = vector.broadcast %461 : vector<2x1xf32> to vector<2x32xf32>
    %463 = arith.mulf %455, %462 : vector<2x32xf32>
    %c0_143 = arith.constant 0 : index
    %c0_144 = arith.constant 0 : index
    %464 = vector.load %arg2[%c0_143, %c0_144] : memref<2x32xf32, #tpu.memory_space<vmem>>, vector<2x32xf32>
    %cst_145 = arith.constant dense<0.000000e+00> : vector<2x2xf32>
    %465 = tpu.matmul %464, %463, %cst_145 {dimension_numbers = #tpu.dot_dimension_numbers<[1], [1], [0], [0], [0, 0, 1, 0], [], []>} : vector<2x32xf32>, vector<2x32xf32>, vector<2x2xf32> -> vector<2x2xf32>
    %c0_146 = arith.constant 0 : index
    %c0_147 = arith.constant 0 : index
    %466 = memref.load %arg3[%c0_146, %c0_147] : memref<1x1xf32, #tpu.memory_space<smem>>
    %467 = math.exp %466 : f32
    %468 = vector.broadcast %467 : f32 to vector<2x2xf32>
    %469 = arith.mulf %468, %465 : vector<2x2xf32>
    %c0_148 = arith.constant 0 : index
    %c0_149 = arith.constant 0 : index
    %470 = vector.load %arg14[%c0_148, %c0_149] : memref<2x2xf32, #tpu.memory_space<vmem>>, vector<2x2xf32>
    tpu.vector_store %arg14[%c0_148, %c0_149], %469 {strides = array<i32>} : memref<2x2xf32, #tpu.memory_space<vmem>>, vector<2x2xf32>,
    return
  }
}

module attributes {stable_mosaic.version = 11 : i64} {
  func.func @_img_tower_kernel(%arg0: i32, %arg1: memref<1x24x48xf32, #tpu.memory_space<vmem>>, %arg2: memref<2x1x128xf32, #tpu.memory_space<vmem>>, %arg3: memref<2x32x128xbf16, #tpu.memory_space<vmem>>, %arg4: memref<2x128x32xbf16, #tpu.memory_space<vmem>>, %arg5: memref<2x32x32xbf16, #tpu.memory_space<vmem>>, %arg6: memref<2x1x96xf32, #tpu.memory_space<vmem>>, %arg7: memref<2x32x96xbf16, #tpu.memory_space<vmem>>, %arg8: memref<2x6x32xf32, #tpu.memory_space<vmem>>, %arg9: memref<32x32xbf16, #tpu.memory_space<vmem>>, %arg10: memref<2x32xf32, #tpu.memory_space<vmem>>, %arg11: memref<48x32xbf16, #tpu.memory_space<vmem>>, %arg12: memref<1x24x32xf32, #tpu.memory_space<vmem>>, %arg13: memref<1x1x32xf32, #tpu.memory_space<vmem>>) attributes {dimension_semantics = [#tpu.dimension_semantics<parallel>], iteration_bounds = array<i64: 2>, scalar_prefetch = 0 : i64, scratch_operands = 0 : i64, tpu.core_type = #tpu.core_type<tc>, window_params = [{transform_indices = @transform_0, window_bounds = array<i64: 1, 24, 48>}, {pipeline_mode = #tpu.pipeline_mode<synchronous>, transform_indices = @transform_1, window_bounds = array<i64: 2, 1, 128>}, {pipeline_mode = #tpu.pipeline_mode<synchronous>, transform_indices = @transform_2, window_bounds = array<i64: 2, 32, 128>}, {pipeline_mode = #tpu.pipeline_mode<synchronous>, transform_indices = @transform_3, window_bounds = array<i64: 2, 128, 32>}, {pipeline_mode = #tpu.pipeline_mode<synchronous>, transform_indices = @transform_4, window_bounds = array<i64: 2, 32, 32>}, {pipeline_mode = #tpu.pipeline_mode<synchronous>, transform_indices = @transform_5, window_bounds = array<i64: 2, 1, 96>}, {pipeline_mode = #tpu.pipeline_mode<synchronous>, transform_indices = @transform_6, window_bounds = array<i64: 2, 32, 96>}, {pipeline_mode = #tpu.pipeline_mode<synchronous>, transform_indices = @transform_7, window_bounds = array<i64: 2, 6, 32>}, {pipeline_mode = #tpu.pipeline_mode<synchronous>, transform_indices = @transform_8, window_bounds = array<i64: 32, 32>}, {pipeline_mode = #tpu.pipeline_mode<synchronous>, transform_indices = @transform_9, window_bounds = array<i64: 2, 32>}, {pipeline_mode = #tpu.pipeline_mode<synchronous>, transform_indices = @transform_10, window_bounds = array<i64: 48, 32>}, {pipeline_mode = #tpu.pipeline_mode<synchronous>, transform_indices = @transform_11, window_bounds = array<i64: 1, 24, 32>}, {transform_indices = @transform_12, window_bounds = array<i64: 1, 1, 32>}]} {
    %c0 = arith.constant 0 : index
    %c0_0 = arith.constant 0 : index
    %c0_1 = arith.constant 0 : index
    %0 = vector.load %arg1[%c0, %c0_0, %c0_1] : memref<1x24x48xf32, #tpu.memory_space<vmem>>, vector<1x24x48xf32>
    %c0_2 = arith.constant 0 : index
    %c0_3 = arith.constant 0 : index
    %1 = vector.load %arg11[%c0_2, %c0_3] : memref<48x32xbf16, #tpu.memory_space<vmem>>, vector<48x32xbf16>
    %2 = vector.shape_cast %0 : vector<1x24x48xf32> to vector<24x48xf32>
    %3 = arith.truncf %2 : vector<24x48xf32> to vector<24x48xbf16>
    %cst = arith.constant dense<0.000000e+00> : vector<24x32xf32>
    %4 = tpu.matmul %3, %1, %cst {dimension_numbers = #tpu.dot_dimension_numbers<[1], [0], [0], [1], [0, 0, 1, 1], [], []>} : vector<24x48xbf16>, vector<48x32xbf16>, vector<24x32xf32> -> vector<24x32xf32>
    %5 = vector.shape_cast %4 : vector<24x32xf32> to vector<1x24x32xf32>
    %c0_4 = arith.constant 0 : index
    %c0_5 = arith.constant 0 : index
    %c0_6 = arith.constant 0 : index
    %6 = vector.load %arg12[%c0_4, %c0_5, %c0_6] : memref<1x24x32xf32, #tpu.memory_space<vmem>>, vector<1x24x32xf32>
    %7 = arith.addf %5, %6 : vector<1x24x32xf32>
    %8 = tpu.iota {dimensions = array<i32: 1>} : vector<24x24xi32>
    %c17_i32 = arith.constant 17 : i32
    %9 = vector.broadcast %c17_i32 : i32 to vector<24x24xi32>
    %10 = arith.cmpi slt, %8, %9 : vector<24x24xi32>
    %11 = vector.shape_cast %10 : vector<24x24xi1> to vector<1x24x24xi1>
    %c0_7 = arith.constant 0 : index
    %c0_8 = arith.constant 0 : index
    %c0_9 = arith.constant 0 : index
    %12 = vector.load %arg8[%c0_7, %c0_8, %c0_9] : memref<2x6x32xf32, #tpu.memory_space<vmem>>, vector<1x6x32xf32>
    %13 = vector.shape_cast %12 : vector<1x6x32xf32> to vector<6x32xf32>
    %14 = vector.extract_strided_slice %13 {offsets = [0, 0], sizes = [1, 32], strides = [1, 1]} : vector<6x32xf32> to vector<1x32xf32>
    %15 = vector.extract_strided_slice %13 {offsets = [1, 0], sizes = [1, 32], strides = [1, 1]} : vector<6x32xf32> to vector<1x32xf32>
    %cst_10 = arith.constant dense<0.000000e+00> : vector<1x24xf32>
    %16 = vector.multi_reduction <add>, %7, %cst_10 [2] : vector<1x24x32xf32> to vector<1x24xf32>
    %17 = vector.shape_cast %16 : vector<1x24xf32> to vector<1x24x1xf32>
    %cst_11 = arith.constant 3.200000e+01 : f32
    %18 = vector.broadcast %cst_11 : f32 to vector<1x24x1xf32>
    %19 = arith.divf %17, %18 : vector<1x24x1xf32>
    %20 = vector.broadcast %19 : vector<1x24x1xf32> to vector<1x24x32xf32>
    %21 = arith.subf %7, %20 : vector<1x24x32xf32>
    %22 = arith.mulf %21, %21 : vector<1x24x32xf32>
    %cst_12 = arith.constant dense<0.000000e+00> : vector<1x24xf32>
    %23 = vector.multi_reduction <add>, %22, %cst_12 [2] : vector<1x24x32xf32> to vector<1x24xf32>
    %24 = vector.shape_cast %23 : vector<1x24xf32> to vector<1x24x1xf32>
    %cst_13 = arith.constant 3.200000e+01 : f32
    %25 = vector.broadcast %cst_13 : f32 to vector<1x24x1xf32>
    %26 = arith.divf %24, %25 : vector<1x24x1xf32>
    %27 = vector.broadcast %19 : vector<1x24x1xf32> to vector<1x24x32xf32>
    %28 = arith.subf %7, %27 : vector<1x24x32xf32>
    %cst_14 = arith.constant 9.99999974E-6 : f32
    %29 = vector.broadcast %cst_14 : f32 to vector<1x24x1xf32>
    %30 = arith.addf %26, %29 : vector<1x24x1xf32>
    %31 = math.rsqrt %30 : vector<1x24x1xf32>
    %32 = vector.broadcast %31 : vector<1x24x1xf32> to vector<1x24x32xf32>
    %33 = arith.mulf %28, %32 : vector<1x24x32xf32>
    %34 = vector.shape_cast %14 : vector<1x32xf32> to vector<1x1x32xf32>
    %35 = vector.broadcast %34 : vector<1x1x32xf32> to vector<1x24x32xf32>
    %36 = arith.mulf %33, %35 : vector<1x24x32xf32>
    %37 = vector.shape_cast %15 : vector<1x32xf32> to vector<1x1x32xf32>
    %38 = vector.broadcast %37 : vector<1x1x32xf32> to vector<1x24x32xf32>
    %39 = arith.addf %36, %38 : vector<1x24x32xf32>
    %c0_15 = arith.constant 0 : index
    %c0_16 = arith.constant 0 : index
    %c0_17 = arith.constant 0 : index
    %40 = vector.load %arg7[%c0_15, %c0_16, %c0_17] : memref<2x32x96xbf16, #tpu.memory_space<vmem>>, vector<1x32x96xbf16>
    %41 = vector.shape_cast %40 : vector<1x32x96xbf16> to vector<32x96xbf16>
    %42 = vector.shape_cast %39 : vector<1x24x32xf32> to vector<24x32xf32>
    %43 = arith.truncf %42 : vector<24x32xf32> to vector<24x32xbf16>
    %cst_18 = arith.constant dense<0.000000e+00> : vector<24x96xf32>
    %44 = tpu.matmul %43, %41, %cst_18 {dimension_numbers = #tpu.dot_dimension_numbers<[1], [0], [0], [1], [0, 0, 1, 1], [], []>} : vector<24x32xbf16>, vector<32x96xbf16>, vector<24x96xf32> -> vector<24x96xf32>
    %45 = vector.shape_cast %44 : vector<24x96xf32> to vector<1x24x96xf32>
    %c0_19 = arith.constant 0 : index
    %c0_20 = arith.constant 0 : index
    %c0_21 = arith.constant 0 : index
    %46 = vector.load %arg6[%c0_19, %c0_20, %c0_21] : memref<2x1x96xf32, #tpu.memory_space<vmem>>, vector<1x1x96xf32>
    %47 = vector.shape_cast %46 : vector<1x1x96xf32> to vector<1x96xf32>
    %48 = vector.shape_cast %47 : vector<1x96xf32> to vector<1x1x96xf32>
    %49 = vector.broadcast %48 : vector<1x1x96xf32> to vector<1x24x96xf32>
    %50 = arith.addf %45, %49 : vector<1x24x96xf32>
    %51 = vector.extract_strided_slice %50 {offsets = [0, 0, 0], sizes = [1, 24, 8], strides = [1, 1, 1]} : vector<1x24x96xf32> to vector<1x24x8xf32>
    %52 = vector.extract_strided_slice %50 {offsets = [0, 0, 32], sizes = [1, 24, 8], strides = [1, 1, 1]} : vector<1x24x96xf32> to vector<1x24x8xf32>
    %53 = vector.extract_strided_slice %50 {offsets = [0, 0, 64], sizes = [1, 24, 8], strides = [1, 1, 1]} : vector<1x24x96xf32> to vector<1x24x8xf32>
    %54 = arith.truncf %51 : vector<1x24x8xf32> to vector<1x24x8xbf16>
    %55 = arith.truncf %52 : vector<1x24x8xf32> to vector<1x24x8xbf16>
    "tpu.trace_start"() <{level = 10 : i32, message = "bqd,bkd->bqk"}> : () -> ()
    %cst_22 = arith.constant dense<0.000000e+00> : vector<1x24x24xf32>
    %56 = tpu.matmul %54, %55, %cst_22 {dimension_numbers = #tpu.dot_dimension_numbers<[2], [2], [1], [1], [0, 0, 0, 1, 1, 1], [0], [0]>} : vector<1x24x8xbf16>, vector<1x24x8xbf16>, vector<1x24x24xf32> -> vector<1x24x24xf32>
    "tpu.trace_stop"() : () -> ()
    %cst_23 = arith.constant 0.353553385 : f32
    %57 = vector.broadcast %cst_23 : f32 to vector<1x24x24xf32>
    %58 = arith.mulf %56, %57 : vector<1x24x24xf32>
    %cst_24 = arith.constant -1.000000e+30 : f32
    %59 = vector.broadcast %cst_24 : f32 to vector<1x24x24xf32>
    %60 = arith.select %11, %58, %59 : vector<1x24x24xi1>, vector<1x24x24xf32>
    %cst_25 = arith.constant dense<0xFF800000> : vector<1x24xf32>
    %61 = vector.multi_reduction <maximumf>, %60, %cst_25 [2] : vector<1x24x24xf32> to vector<1x24xf32>
    %62 = vector.shape_cast %61 : vector<1x24xf32> to vector<1x24x1xf32>
    %63 = vector.broadcast %62 : vector<1x24x1xf32> to vector<1x24x24xf32>
    %64 = arith.subf %60, %63 : vector<1x24x24xf32>
    %65 = math.exp %64 : vector<1x24x24xf32>
    %cst_26 = arith.constant dense<0.000000e+00> : vector<1x24xf32>
    %66 = vector.multi_reduction <add>, %65, %cst_26 [2] : vector<1x24x24xf32> to vector<1x24xf32>
    %67 = vector.shape_cast %66 : vector<1x24xf32> to vector<1x24x1xf32>
    %68 = tpu.reciprocal %67 {approx = true} : vector<1x24x1xf32> -> vector<1x24x1xf32>
    %69 = vector.broadcast %68 : vector<1x24x1xf32> to vector<1x24x24xf32>
    %70 = arith.mulf %65, %69 : vector<1x24x24xf32>
    %71 = arith.truncf %70 : vector<1x24x24xf32> to vector<1x24x24xbf16>
    %72 = arith.truncf %53 : vector<1x24x8xf32> to vector<1x24x8xbf16>
    "tpu.trace_start"() <{level = 10 : i32, message = "bqk,bkd->bqd"}> : () -> ()
    %cst_27 = arith.constant dense<0.000000e+00> : vector<1x24x8xf32>
    %73 = tpu.matmul %71, %72, %cst_27 {dimension_numbers = #tpu.dot_dimension_numbers<[2], [1], [1], [2], [0, 0, 0, 1, 1, 2], [0], [0]>} : vector<1x24x24xbf16>, vector<1x24x8xbf16>, vector<1x24x8xf32> -> vector<1x24x8xf32>
    "tpu.trace_stop"() : () -> ()
    %74 = vector.extract_strided_slice %50 {offsets = [0, 0, 8], sizes = [1, 24, 8], strides = [1, 1, 1]} : vector<1x24x96xf32> to vector<1x24x8xf32>
    %75 = vector.extract_strided_slice %50 {offsets = [0, 0, 40], sizes = [1, 24, 8], strides = [1, 1, 1]} : vector<1x24x96xf32> to vector<1x24x8xf32>
    %76 = vector.extract_strided_slice %50 {offsets = [0, 0, 72], sizes = [1, 24, 8], strides = [1, 1, 1]} : vector<1x24x96xf32> to vector<1x24x8xf32>
    %77 = arith.truncf %74 : vector<1x24x8xf32> to vector<1x24x8xbf16>
    %78 = arith.truncf %75 : vector<1x24x8xf32> to vector<1x24x8xbf16>
    "tpu.trace_start"() <{level = 10 : i32, message = "bqd,bkd->bqk"}> : () -> ()
    %cst_28 = arith.constant dense<0.000000e+00> : vector<1x24x24xf32>
    %79 = tpu.matmul %77, %78, %cst_28 {dimension_numbers = #tpu.dot_dimension_numbers<[2], [2], [1], [1], [0, 0, 0, 1, 1, 1], [0], [0]>} : vector<1x24x8xbf16>, vector<1x24x8xbf16>, vector<1x24x24xf32> -> vector<1x24x24xf32>
    "tpu.trace_stop"() : () -> ()
    %cst_29 = arith.constant 0.353553385 : f32
    %80 = vector.broadcast %cst_29 : f32 to vector<1x24x24xf32>
    %81 = arith.mulf %79, %80 : vector<1x24x24xf32>
    %cst_30 = arith.constant -1.000000e+30 : f32
    %82 = vector.broadcast %cst_30 : f32 to vector<1x24x24xf32>
    %83 = arith.select %11, %81, %82 : vector<1x24x24xi1>, vector<1x24x24xf32>
    %cst_31 = arith.constant dense<0xFF800000> : vector<1x24xf32>
    %84 = vector.multi_reduction <maximumf>, %83, %cst_31 [2] : vector<1x24x24xf32> to vector<1x24xf32>
    %85 = vector.shape_cast %84 : vector<1x24xf32> to vector<1x24x1xf32>
    %86 = vector.broadcast %85 : vector<1x24x1xf32> to vector<1x24x24xf32>
    %87 = arith.subf %83, %86 : vector<1x24x24xf32>
    %88 = math.exp %87 : vector<1x24x24xf32>
    %cst_32 = arith.constant dense<0.000000e+00> : vector<1x24xf32>
    %89 = vector.multi_reduction <add>, %88, %cst_32 [2] : vector<1x24x24xf32> to vector<1x24xf32>
    %90 = vector.shape_cast %89 : vector<1x24xf32> to vector<1x24x1xf32>
    %91 = tpu.reciprocal %90 {approx = true} : vector<1x24x1xf32> -> vector<1x24x1xf32>
    %92 = vector.broadcast %91 : vector<1x24x1xf32> to vector<1x24x24xf32>
    %93 = arith.mulf %88, %92 : vector<1x24x24xf32>
    %94 = arith.truncf %93 : vector<1x24x24xf32> to vector<1x24x24xbf16>
    %95 = arith.truncf %76 : vector<1x24x8xf32> to vector<1x24x8xbf16>
    "tpu.trace_start"() <{level = 10 : i32, message = "bqk,bkd->bqd"}> : () -> ()
    %cst_33 = arith.constant dense<0.000000e+00> : vector<1x24x8xf32>
    %96 = tpu.matmul %94, %95, %cst_33 {dimension_numbers = #tpu.dot_dimension_numbers<[2], [1], [1], [2], [0, 0, 0, 1, 1, 2], [0], [0]>} : vector<1x24x24xbf16>, vector<1x24x8xbf16>, vector<1x24x8xf32> -> vector<1x24x8xf32>
    "tpu.trace_stop"() : () -> ()
    %97 = vector.extract_strided_slice %50 {offsets = [0, 0, 16], sizes = [1, 24, 8], strides = [1, 1, 1]} : vector<1x24x96xf32> to vector<1x24x8xf32>
    %98 = vector.extract_strided_slice %50 {offsets = [0, 0, 48], sizes = [1, 24, 8], strides = [1, 1, 1]} : vector<1x24x96xf32> to vector<1x24x8xf32>
    %99 = vector.extract_strided_slice %50 {offsets = [0, 0, 80], sizes = [1, 24, 8], strides = [1, 1, 1]} : vector<1x24x96xf32> to vector<1x24x8xf32>
    %100 = arith.truncf %97 : vector<1x24x8xf32> to vector<1x24x8xbf16>
    %101 = arith.truncf %98 : vector<1x24x8xf32> to vector<1x24x8xbf16>
    "tpu.trace_start"() <{level = 10 : i32, message = "bqd,bkd->bqk"}> : () -> ()
    %cst_34 = arith.constant dense<0.000000e+00> : vector<1x24x24xf32>
    %102 = tpu.matmul %100, %101, %cst_34 {dimension_numbers = #tpu.dot_dimension_numbers<[2], [2], [1], [1], [0, 0, 0, 1, 1, 1], [0], [0]>} : vector<1x24x8xbf16>, vector<1x24x8xbf16>, vector<1x24x24xf32> -> vector<1x24x24xf32>
    "tpu.trace_stop"() : () -> ()
    %cst_35 = arith.constant 0.353553385 : f32
    %103 = vector.broadcast %cst_35 : f32 to vector<1x24x24xf32>
    %104 = arith.mulf %102, %103 : vector<1x24x24xf32>
    %cst_36 = arith.constant -1.000000e+30 : f32
    %105 = vector.broadcast %cst_36 : f32 to vector<1x24x24xf32>
    %106 = arith.select %11, %104, %105 : vector<1x24x24xi1>, vector<1x24x24xf32>
    %cst_37 = arith.constant dense<0xFF800000> : vector<1x24xf32>
    %107 = vector.multi_reduction <maximumf>, %106, %cst_37 [2] : vector<1x24x24xf32> to vector<1x24xf32>
    %108 = vector.shape_cast %107 : vector<1x24xf32> to vector<1x24x1xf32>
    %109 = vector.broadcast %108 : vector<1x24x1xf32> to vector<1x24x24xf32>
    %110 = arith.subf %106, %109 : vector<1x24x24xf32>
    %111 = math.exp %110 : vector<1x24x24xf32>
    %cst_38 = arith.constant dense<0.000000e+00> : vector<1x24xf32>
    %112 = vector.multi_reduction <add>, %111, %cst_38 [2] : vector<1x24x24xf32> to vector<1x24xf32>
    %113 = vector.shape_cast %112 : vector<1x24xf32> to vector<1x24x1xf32>
    %114 = tpu.reciprocal %113 {approx = true} : vector<1x24x1xf32> -> vector<1x24x1xf32>
    %115 = vector.broadcast %114 : vector<1x24x1xf32> to vector<1x24x24xf32>
    %116 = arith.mulf %111, %115 : vector<1x24x24xf32>
    %117 = arith.truncf %116 : vector<1x24x24xf32> to vector<1x24x24xbf16>
    %118 = arith.truncf %99 : vector<1x24x8xf32> to vector<1x24x8xbf16>
    "tpu.trace_start"() <{level = 10 : i32, message = "bqk,bkd->bqd"}> : () -> ()
    %cst_39 = arith.constant dense<0.000000e+00> : vector<1x24x8xf32>
    %119 = tpu.matmul %117, %118, %cst_39 {dimension_numbers = #tpu.dot_dimension_numbers<[2], [1], [1], [2], [0, 0, 0, 1, 1, 2], [0], [0]>} : vector<1x24x24xbf16>, vector<1x24x8xbf16>, vector<1x24x8xf32> -> vector<1x24x8xf32>
    "tpu.trace_stop"() : () -> ()
    %120 = vector.extract_strided_slice %50 {offsets = [0, 0, 24], sizes = [1, 24, 8], strides = [1, 1, 1]} : vector<1x24x96xf32> to vector<1x24x8xf32>
    %121 = vector.extract_strided_slice %50 {offsets = [0, 0, 56], sizes = [1, 24, 8], strides = [1, 1, 1]} : vector<1x24x96xf32> to vector<1x24x8xf32>
    %122 = vector.extract_strided_slice %50 {offsets = [0, 0, 88], sizes = [1, 24, 8], strides = [1, 1, 1]} : vector<1x24x96xf32> to vector<1x24x8xf32>
    %123 = arith.truncf %120 : vector<1x24x8xf32> to vector<1x24x8xbf16>
    %124 = arith.truncf %121 : vector<1x24x8xf32> to vector<1x24x8xbf16>
    "tpu.trace_start"() <{level = 10 : i32, message = "bqd,bkd->bqk"}> : () -> ()
    %cst_40 = arith.constant dense<0.000000e+00> : vector<1x24x24xf32>
    %125 = tpu.matmul %123, %124, %cst_40 {dimension_numbers = #tpu.dot_dimension_numbers<[2], [2], [1], [1], [0, 0, 0, 1, 1, 1], [0], [0]>} : vector<1x24x8xbf16>, vector<1x24x8xbf16>, vector<1x24x24xf32> -> vector<1x24x24xf32>
    "tpu.trace_stop"() : () -> ()
    %cst_41 = arith.constant 0.353553385 : f32
    %126 = vector.broadcast %cst_41 : f32 to vector<1x24x24xf32>
    %127 = arith.mulf %125, %126 : vector<1x24x24xf32>
    %cst_42 = arith.constant -1.000000e+30 : f32
    %128 = vector.broadcast %cst_42 : f32 to vector<1x24x24xf32>
    %129 = arith.select %11, %127, %128 : vector<1x24x24xi1>, vector<1x24x24xf32>
    %cst_43 = arith.constant dense<0xFF800000> : vector<1x24xf32>
    %130 = vector.multi_reduction <maximumf>, %129, %cst_43 [2] : vector<1x24x24xf32> to vector<1x24xf32>
    %131 = vector.shape_cast %130 : vector<1x24xf32> to vector<1x24x1xf32>
    %132 = vector.broadcast %131 : vector<1x24x1xf32> to vector<1x24x24xf32>
    %133 = arith.subf %129, %132 : vector<1x24x24xf32>
    %134 = math.exp %133 : vector<1x24x24xf32>
    %cst_44 = arith.constant dense<0.000000e+00> : vector<1x24xf32>
    %135 = vector.multi_reduction <add>, %134, %cst_44 [2] : vector<1x24x24xf32> to vector<1x24xf32>
    %136 = vector.shape_cast %135 : vector<1x24xf32> to vector<1x24x1xf32>
    %137 = tpu.reciprocal %136 {approx = true} : vector<1x24x1xf32> -> vector<1x24x1xf32>
    %138 = vector.broadcast %137 : vector<1x24x1xf32> to vector<1x24x24xf32>
    %139 = arith.mulf %134, %138 : vector<1x24x24xf32>
    %140 = arith.truncf %139 : vector<1x24x24xf32> to vector<1x24x24xbf16>
    %141 = arith.truncf %122 : vector<1x24x8xf32> to vector<1x24x8xbf16>
    "tpu.trace_start"() <{level = 10 : i32, message = "bqk,bkd->bqd"}> : () -> ()
    %cst_45 = arith.constant dense<0.000000e+00> : vector<1x24x8xf32>
    %142 = tpu.matmul %140, %141, %cst_45 {dimension_numbers = #tpu.dot_dimension_numbers<[2], [1], [1], [2], [0, 0, 0, 1, 1, 2], [0], [0]>} : vector<1x24x24xbf16>, vector<1x24x8xbf16>, vector<1x24x8xf32> -> vector<1x24x8xf32>
    "tpu.trace_stop"() : () -> ()
    %143 = tpu.concatenate %73, %96, %119, %142 in 2 : vector<1x24x8xf32>, vector<1x24x8xf32>, vector<1x24x8xf32>, vector<1x24x8xf32> -> vector<1x24x32xf32>
    %c0_46 = arith.constant 0 : index
    %c0_47 = arith.constant 0 : index
    %c0_48 = arith.constant 0 : index
    %144 = vector.load %arg5[%c0_46, %c0_47, %c0_48] : memref<2x32x32xbf16, #tpu.memory_space<vmem>>, vector<1x32x32xbf16>
    %145 = vector.shape_cast %144 : vector<1x32x32xbf16> to vector<32x32xbf16>
    %146 = vector.shape_cast %143 : vector<1x24x32xf32> to vector<24x32xf32>
    %147 = arith.truncf %146 : vector<24x32xf32> to vector<24x32xbf16>
    %cst_49 = arith.constant dense<0.000000e+00> : vector<24x32xf32>
    %148 = tpu.matmul %147, %145, %cst_49 {dimension_numbers = #tpu.dot_dimension_numbers<[1], [0], [0], [1], [0, 0, 1, 1], [], []>} : vector<24x32xbf16>, vector<32x32xbf16>, vector<24x32xf32> -> vector<24x32xf32>
    %149 = vector.shape_cast %148 : vector<24x32xf32> to vector<1x24x32xf32>
    %150 = arith.addf %7, %149 : vector<1x24x32xf32>
    %151 = vector.extract_strided_slice %13 {offsets = [2, 0], sizes = [1, 32], strides = [1, 1]} : vector<6x32xf32> to vector<1x32xf32>
    %152 = vector.shape_cast %151 : vector<1x32xf32> to vector<1x1x32xf32>
    %153 = vector.broadcast %152 : vector<1x1x32xf32> to vector<1x24x32xf32>
    %154 = arith.addf %150, %153 : vector<1x24x32xf32>
    %155 = vector.extract_strided_slice %13 {offsets = [3, 0], sizes = [1, 32], strides = [1, 1]} : vector<6x32xf32> to vector<1x32xf32>
    %156 = vector.extract_strided_slice %13 {offsets = [4, 0], sizes = [1, 32], strides = [1, 1]} : vector<6x32xf32> to vector<1x32xf32>
    %cst_50 = arith.constant dense<0.000000e+00> : vector<1x24xf32>
    %157 = vector.multi_reduction <add>, %154, %cst_50 [2] : vector<1x24x32xf32> to vector<1x24xf32>
    %158 = vector.shape_cast %157 : vector<1x24xf32> to vector<1x24x1xf32>
    %cst_51 = arith.constant 3.200000e+01 : f32
    %159 = vector.broadcast %cst_51 : f32 to vector<1x24x1xf32>
    %160 = arith.divf %158, %159 : vector<1x24x1xf32>
    %161 = vector.broadcast %160 : vector<1x24x1xf32> to vector<1x24x32xf32>
    %162 = arith.subf %154, %161 : vector<1x24x32xf32>
    %163 = arith.mulf %162, %162 : vector<1x24x32xf32>
    %cst_52 = arith.constant dense<0.000000e+00> : vector<1x24xf32>
    %164 = vector.multi_reduction <add>, %163, %cst_52 [2] : vector<1x24x32xf32> to vector<1x24xf32>
    %165 = vector.shape_cast %164 : vector<1x24xf32> to vector<1x24x1xf32>
    %cst_53 = arith.constant 3.200000e+01 : f32
    %166 = vector.broadcast %cst_53 : f32 to vector<1x24x1xf32>
    %167 = arith.divf %165, %166 : vector<1x24x1xf32>
    %168 = vector.broadcast %160 : vector<1x24x1xf32> to vector<1x24x32xf32>
    %169 = arith.subf %154, %168 : vector<1x24x32xf32>
    %cst_54 = arith.constant 9.99999974E-6 : f32
    %170 = vector.broadcast %cst_54 : f32 to vector<1x24x1xf32>
    %171 = arith.addf %167, %170 : vector<1x24x1xf32>
    %172 = math.rsqrt %171 : vector<1x24x1xf32>
    %173 = vector.broadcast %172 : vector<1x24x1xf32> to vector<1x24x32xf32>
    %174 = arith.mulf %169, %173 : vector<1x24x32xf32>
    %175 = vector.shape_cast %155 : vector<1x32xf32> to vector<1x1x32xf32>
    %176 = vector.broadcast %175 : vector<1x1x32xf32> to vector<1x24x32xf32>
    %177 = arith.mulf %174, %176 : vector<1x24x32xf32>
    %178 = vector.shape_cast %156 : vector<1x32xf32> to vector<1x1x32xf32>
    %179 = vector.broadcast %178 : vector<1x1x32xf32> to vector<1x24x32xf32>
    %180 = arith.addf %177, %179 : vector<1x24x32xf32>
    %c0_55 = arith.constant 0 : index
    %c0_56 = arith.constant 0 : index
    %c0_57 = arith.constant 0 : index
    %181 = vector.load %arg3[%c0_55, %c0_56, %c0_57] : memref<2x32x128xbf16, #tpu.memory_space<vmem>>, vector<1x32x128xbf16>
    %182 = vector.shape_cast %181 : vector<1x32x128xbf16> to vector<32x128xbf16>
    %183 = vector.shape_cast %180 : vector<1x24x32xf32> to vector<24x32xf32>
    %184 = arith.truncf %183 : vector<24x32xf32> to vector<24x32xbf16>
    %cst_58 = arith.constant dense<0.000000e+00> : vector<24x128xf32>
    %185 = tpu.matmul %184, %182, %cst_58 {dimension_numbers = #tpu.dot_dimension_numbers<[1], [0], [0], [1], [0, 0, 1, 1], [], []>} : vector<24x32xbf16>, vector<32x128xbf16>, vector<24x128xf32> -> vector<24x128xf32>
    %186 = vector.shape_cast %185 : vector<24x128xf32> to vector<1x24x128xf32>
    %c0_59 = arith.constant 0 : index
    %c0_60 = arith.constant 0 : index
    %c0_61 = arith.constant 0 : index
    %187 = vector.load %arg2[%c0_59, %c0_60, %c0_61] : memref<2x1x128xf32, #tpu.memory_space<vmem>>, vector<1x1x128xf32>
    %188 = vector.shape_cast %187 : vector<1x1x128xf32> to vector<1x128xf32>
    %189 = vector.shape_cast %188 : vector<1x128xf32> to vector<1x1x128xf32>
    %190 = vector.broadcast %189 : vector<1x1x128xf32> to vector<1x24x128xf32>
    %191 = arith.addf %186, %190 : vector<1x24x128xf32>
    %192 = arith.mulf %191, %191 : vector<1x24x128xf32>
    %193 = arith.mulf %191, %192 : vector<1x24x128xf32>
    %cst_62 = arith.constant 4.471500e-02 : f32
    %194 = vector.broadcast %cst_62 : f32 to vector<1x24x128xf32>
    %195 = arith.mulf %194, %193 : vector<1x24x128xf32>
    %196 = arith.addf %191, %195 : vector<1x24x128xf32>
    %cst_63 = arith.constant 0.797884583 : f32
    %197 = vector.broadcast %cst_63 : f32 to vector<1x24x128xf32>
    %198 = arith.mulf %197, %196 : vector<1x24x128xf32>
    %199 = math.tanh %198 : vector<1x24x128xf32>
    %cst_64 = arith.constant 1.000000e+00 : f32
    %200 = vector.broadcast %cst_64 : f32 to vector<1x24x128xf32>
    %201 = arith.addf %200, %199 : vector<1x24x128xf32>
    %cst_65 = arith.constant 5.000000e-01 : f32
    %202 = vector.broadcast %cst_65 : f32 to vector<1x24x128xf32>
    %203 = arith.mulf %202, %201 : vector<1x24x128xf32>
    %204 = arith.mulf %191, %203 : vector<1x24x128xf32>
    %c0_66 = arith.constant 0 : index
    %c0_67 = arith.constant 0 : index
    %c0_68 = arith.constant 0 : index
    %205 = vector.load %arg4[%c0_66, %c0_67, %c0_68] : memref<2x128x32xbf16, #tpu.memory_space<vmem>>, vector<1x128x32xbf16>
    %206 = vector.shape_cast %205 : vector<1x128x32xbf16> to vector<128x32xbf16>
    %207 = vector.shape_cast %204 : vector<1x24x128xf32> to vector<24x128xf32>
    %208 = arith.truncf %207 : vector<24x128xf32> to vector<24x128xbf16>
    %cst_69 = arith.constant dense<0.000000e+00> : vector<24x32xf32>
    %209 = tpu.matmul %208, %206, %cst_69 {dimension_numbers = #tpu.dot_dimension_numbers<[1], [0], [0], [1], [0, 0, 1, 1], [], []>} : vector<24x128xbf16>, vector<128x32xbf16>, vector<24x32xf32> -> vector<24x32xf32>
    %210 = vector.shape_cast %209 : vector<24x32xf32> to vector<1x24x32xf32>
    %211 = arith.addf %154, %210 : vector<1x24x32xf32>
    %212 = vector.extract_strided_slice %13 {offsets = [5, 0], sizes = [1, 32], strides = [1, 1]} : vector<6x32xf32> to vector<1x32xf32>
    %213 = vector.shape_cast %212 : vector<1x32xf32> to vector<1x1x32xf32>
    %214 = vector.broadcast %213 : vector<1x1x32xf32> to vector<1x24x32xf32>
    %215 = arith.addf %211, %214 : vector<1x24x32xf32>
    %c1 = arith.constant 1 : index
    %c0_70 = arith.constant 0 : index
    %c0_71 = arith.constant 0 : index
    %216 = vector.load %arg8[%c1, %c0_70, %c0_71] : memref<2x6x32xf32, #tpu.memory_space<vmem>>, vector<1x6x32xf32>
    %217 = vector.shape_cast %216 : vector<1x6x32xf32> to vector<6x32xf32>
    %218 = vector.extract_strided_slice %217 {offsets = [0, 0], sizes = [1, 32], strides = [1, 1]} : vector<6x32xf32> to vector<1x32xf32>
    %219 = vector.extract_strided_slice %217 {offsets = [1, 0], sizes = [1, 32], strides = [1, 1]} : vector<6x32xf32> to vector<1x32xf32>
    %cst_72 = arith.constant dense<0.000000e+00> : vector<1x24xf32>
    %220 = vector.multi_reduction <add>, %215, %cst_72 [2] : vector<1x24x32xf32> to vector<1x24xf32>
    %221 = vector.shape_cast %220 : vector<1x24xf32> to vector<1x24x1xf32>
    %cst_73 = arith.constant 3.200000e+01 : f32
    %222 = vector.broadcast %cst_73 : f32 to vector<1x24x1xf32>
    %223 = arith.divf %221, %222 : vector<1x24x1xf32>
    %224 = vector.broadcast %223 : vector<1x24x1xf32> to vector<1x24x32xf32>
    %225 = arith.subf %215, %224 : vector<1x24x32xf32>
    %226 = arith.mulf %225, %225 : vector<1x24x32xf32>
    %cst_74 = arith.constant dense<0.000000e+00> : vector<1x24xf32>
    %227 = vector.multi_reduction <add>, %226, %cst_74 [2] : vector<1x24x32xf32> to vector<1x24xf32>
    %228 = vector.shape_cast %227 : vector<1x24xf32> to vector<1x24x1xf32>
    %cst_75 = arith.constant 3.200000e+01 : f32
    %229 = vector.broadcast %cst_75 : f32 to vector<1x24x1xf32>
    %230 = arith.divf %228, %229 : vector<1x24x1xf32>
    %231 = vector.broadcast %223 : vector<1x24x1xf32> to vector<1x24x32xf32>
    %232 = arith.subf %215, %231 : vector<1x24x32xf32>
    %cst_76 = arith.constant 9.99999974E-6 : f32
    %233 = vector.broadcast %cst_76 : f32 to vector<1x24x1xf32>
    %234 = arith.addf %230, %233 : vector<1x24x1xf32>
    %235 = math.rsqrt %234 : vector<1x24x1xf32>
    %236 = vector.broadcast %235 : vector<1x24x1xf32> to vector<1x24x32xf32>
    %237 = arith.mulf %232, %236 : vector<1x24x32xf32>
    %238 = vector.shape_cast %218 : vector<1x32xf32> to vector<1x1x32xf32>
    %239 = vector.broadcast %238 : vector<1x1x32xf32> to vector<1x24x32xf32>
    %240 = arith.mulf %237, %239 : vector<1x24x32xf32>
    %241 = vector.shape_cast %219 : vector<1x32xf32> to vector<1x1x32xf32>
    %242 = vector.broadcast %241 : vector<1x1x32xf32> to vector<1x24x32xf32>
    %243 = arith.addf %240, %242 : vector<1x24x32xf32>
    %c1_77 = arith.constant 1 : index
    %c0_78 = arith.constant 0 : index
    %c0_79 = arith.constant 0 : index
    %244 = vector.load %arg7[%c1_77, %c0_78, %c0_79] : memref<2x32x96xbf16, #tpu.memory_space<vmem>>, vector<1x32x96xbf16>
    %245 = vector.shape_cast %244 : vector<1x32x96xbf16> to vector<32x96xbf16>
    %246 = vector.shape_cast %243 : vector<1x24x32xf32> to vector<24x32xf32>
    %247 = arith.truncf %246 : vector<24x32xf32> to vector<24x32xbf16>
    %cst_80 = arith.constant dense<0.000000e+00> : vector<24x96xf32>
    %248 = tpu.matmul %247, %245, %cst_80 {dimension_numbers = #tpu.dot_dimension_numbers<[1], [0], [0], [1], [0, 0, 1, 1], [], []>} : vector<24x32xbf16>, vector<32x96xbf16>, vector<24x96xf32> -> vector<24x96xf32>
    %249 = vector.shape_cast %248 : vector<24x96xf32> to vector<1x24x96xf32>
    %c1_81 = arith.constant 1 : index
    %c0_82 = arith.constant 0 : index
    %c0_83 = arith.constant 0 : index
    %250 = vector.load %arg6[%c1_81, %c0_82, %c0_83] : memref<2x1x96xf32, #tpu.memory_space<vmem>>, vector<1x1x96xf32>
    %251 = vector.shape_cast %250 : vector<1x1x96xf32> to vector<1x96xf32>
    %252 = vector.shape_cast %251 : vector<1x96xf32> to vector<1x1x96xf32>
    %253 = vector.broadcast %252 : vector<1x1x96xf32> to vector<1x24x96xf32>
    %254 = arith.addf %249, %253 : vector<1x24x96xf32>
    %255 = vector.extract_strided_slice %254 {offsets = [0, 0, 0], sizes = [1, 24, 8], strides = [1, 1, 1]} : vector<1x24x96xf32> to vector<1x24x8xf32>
    %256 = vector.extract_strided_slice %254 {offsets = [0, 0, 32], sizes = [1, 24, 8], strides = [1, 1, 1]} : vector<1x24x96xf32> to vector<1x24x8xf32>
    %257 = vector.extract_strided_slice %254 {offsets = [0, 0, 64], sizes = [1, 24, 8], strides = [1, 1, 1]} : vector<1x24x96xf32> to vector<1x24x8xf32>
    %258 = arith.truncf %255 : vector<1x24x8xf32> to vector<1x24x8xbf16>
    %259 = arith.truncf %256 : vector<1x24x8xf32> to vector<1x24x8xbf16>
    "tpu.trace_start"() <{level = 10 : i32, message = "bqd,bkd->bqk"}> : () -> ()
    %cst_84 = arith.constant dense<0.000000e+00> : vector<1x24x24xf32>
    %260 = tpu.matmul %258, %259, %cst_84 {dimension_numbers = #tpu.dot_dimension_numbers<[2], [2], [1], [1], [0, 0, 0, 1, 1, 1], [0], [0]>} : vector<1x24x8xbf16>, vector<1x24x8xbf16>, vector<1x24x24xf32> -> vector<1x24x24xf32>
    "tpu.trace_stop"() : () -> ()
    %cst_85 = arith.constant 0.353553385 : f32
    %261 = vector.broadcast %cst_85 : f32 to vector<1x24x24xf32>
    %262 = arith.mulf %260, %261 : vector<1x24x24xf32>
    %cst_86 = arith.constant -1.000000e+30 : f32
    %263 = vector.broadcast %cst_86 : f32 to vector<1x24x24xf32>
    %264 = arith.select %11, %262, %263 : vector<1x24x24xi1>, vector<1x24x24xf32>
    %cst_87 = arith.constant dense<0xFF800000> : vector<1x24xf32>
    %265 = vector.multi_reduction <maximumf>, %264, %cst_87 [2] : vector<1x24x24xf32> to vector<1x24xf32>
    %266 = vector.shape_cast %265 : vector<1x24xf32> to vector<1x24x1xf32>
    %267 = vector.broadcast %266 : vector<1x24x1xf32> to vector<1x24x24xf32>
    %268 = arith.subf %264, %267 : vector<1x24x24xf32>
    %269 = math.exp %268 : vector<1x24x24xf32>
    %cst_88 = arith.constant dense<0.000000e+00> : vector<1x24xf32>
    %270 = vector.multi_reduction <add>, %269, %cst_88 [2] : vector<1x24x24xf32> to vector<1x24xf32>
    %271 = vector.shape_cast %270 : vector<1x24xf32> to vector<1x24x1xf32>
    %272 = tpu.reciprocal %271 {approx = true} : vector<1x24x1xf32> -> vector<1x24x1xf32>
    %273 = vector.broadcast %272 : vector<1x24x1xf32> to vector<1x24x24xf32>
    %274 = arith.mulf %269, %273 : vector<1x24x24xf32>
    %275 = arith.truncf %274 : vector<1x24x24xf32> to vector<1x24x24xbf16>
    %276 = arith.truncf %257 : vector<1x24x8xf32> to vector<1x24x8xbf16>
    "tpu.trace_start"() <{level = 10 : i32, message = "bqk,bkd->bqd"}> : () -> ()
    %cst_89 = arith.constant dense<0.000000e+00> : vector<1x24x8xf32>
    %277 = tpu.matmul %275, %276, %cst_89 {dimension_numbers = #tpu.dot_dimension_numbers<[2], [1], [1], [2], [0, 0, 0, 1, 1, 2], [0], [0]>} : vector<1x24x24xbf16>, vector<1x24x8xbf16>, vector<1x24x8xf32> -> vector<1x24x8xf32>
    "tpu.trace_stop"() : () -> ()
    %278 = vector.extract_strided_slice %254 {offsets = [0, 0, 8], sizes = [1, 24, 8], strides = [1, 1, 1]} : vector<1x24x96xf32> to vector<1x24x8xf32>
    %279 = vector.extract_strided_slice %254 {offsets = [0, 0, 40], sizes = [1, 24, 8], strides = [1, 1, 1]} : vector<1x24x96xf32> to vector<1x24x8xf32>
    %280 = vector.extract_strided_slice %254 {offsets = [0, 0, 72], sizes = [1, 24, 8], strides = [1, 1, 1]} : vector<1x24x96xf32> to vector<1x24x8xf32>
    %281 = arith.truncf %278 : vector<1x24x8xf32> to vector<1x24x8xbf16>
    %282 = arith.truncf %279 : vector<1x24x8xf32> to vector<1x24x8xbf16>
    "tpu.trace_start"() <{level = 10 : i32, message = "bqd,bkd->bqk"}> : () -> ()
    %cst_90 = arith.constant dense<0.000000e+00> : vector<1x24x24xf32>
    %283 = tpu.matmul %281, %282, %cst_90 {dimension_numbers = #tpu.dot_dimension_numbers<[2], [2], [1], [1], [0, 0, 0, 1, 1, 1], [0], [0]>} : vector<1x24x8xbf16>, vector<1x24x8xbf16>, vector<1x24x24xf32> -> vector<1x24x24xf32>
    "tpu.trace_stop"() : () -> ()
    %cst_91 = arith.constant 0.353553385 : f32
    %284 = vector.broadcast %cst_91 : f32 to vector<1x24x24xf32>
    %285 = arith.mulf %283, %284 : vector<1x24x24xf32>
    %cst_92 = arith.constant -1.000000e+30 : f32
    %286 = vector.broadcast %cst_92 : f32 to vector<1x24x24xf32>
    %287 = arith.select %11, %285, %286 : vector<1x24x24xi1>, vector<1x24x24xf32>
    %cst_93 = arith.constant dense<0xFF800000> : vector<1x24xf32>
    %288 = vector.multi_reduction <maximumf>, %287, %cst_93 [2] : vector<1x24x24xf32> to vector<1x24xf32>
    %289 = vector.shape_cast %288 : vector<1x24xf32> to vector<1x24x1xf32>
    %290 = vector.broadcast %289 : vector<1x24x1xf32> to vector<1x24x24xf32>
    %291 = arith.subf %287, %290 : vector<1x24x24xf32>
    %292 = math.exp %291 : vector<1x24x24xf32>
    %cst_94 = arith.constant dense<0.000000e+00> : vector<1x24xf32>
    %293 = vector.multi_reduction <add>, %292, %cst_94 [2] : vector<1x24x24xf32> to vector<1x24xf32>
    %294 = vector.shape_cast %293 : vector<1x24xf32> to vector<1x24x1xf32>
    %295 = tpu.reciprocal %294 {approx = true} : vector<1x24x1xf32> -> vector<1x24x1xf32>
    %296 = vector.broadcast %295 : vector<1x24x1xf32> to vector<1x24x24xf32>
    %297 = arith.mulf %292, %296 : vector<1x24x24xf32>
    %298 = arith.truncf %297 : vector<1x24x24xf32> to vector<1x24x24xbf16>
    %299 = arith.truncf %280 : vector<1x24x8xf32> to vector<1x24x8xbf16>
    "tpu.trace_start"() <{level = 10 : i32, message = "bqk,bkd->bqd"}> : () -> ()
    %cst_95 = arith.constant dense<0.000000e+00> : vector<1x24x8xf32>
    %300 = tpu.matmul %298, %299, %cst_95 {dimension_numbers = #tpu.dot_dimension_numbers<[2], [1], [1], [2], [0, 0, 0, 1, 1, 2], [0], [0]>} : vector<1x24x24xbf16>, vector<1x24x8xbf16>, vector<1x24x8xf32> -> vector<1x24x8xf32>
    "tpu.trace_stop"() : () -> ()
    %301 = vector.extract_strided_slice %254 {offsets = [0, 0, 16], sizes = [1, 24, 8], strides = [1, 1, 1]} : vector<1x24x96xf32> to vector<1x24x8xf32>
    %302 = vector.extract_strided_slice %254 {offsets = [0, 0, 48], sizes = [1, 24, 8], strides = [1, 1, 1]} : vector<1x24x96xf32> to vector<1x24x8xf32>
    %303 = vector.extract_strided_slice %254 {offsets = [0, 0, 80], sizes = [1, 24, 8], strides = [1, 1, 1]} : vector<1x24x96xf32> to vector<1x24x8xf32>
    %304 = arith.truncf %301 : vector<1x24x8xf32> to vector<1x24x8xbf16>
    %305 = arith.truncf %302 : vector<1x24x8xf32> to vector<1x24x8xbf16>
    "tpu.trace_start"() <{level = 10 : i32, message = "bqd,bkd->bqk"}> : () -> ()
    %cst_96 = arith.constant dense<0.000000e+00> : vector<1x24x24xf32>
    %306 = tpu.matmul %304, %305, %cst_96 {dimension_numbers = #tpu.dot_dimension_numbers<[2], [2], [1], [1], [0, 0, 0, 1, 1, 1], [0], [0]>} : vector<1x24x8xbf16>, vector<1x24x8xbf16>, vector<1x24x24xf32> -> vector<1x24x24xf32>
    "tpu.trace_stop"() : () -> ()
    %cst_97 = arith.constant 0.353553385 : f32
    %307 = vector.broadcast %cst_97 : f32 to vector<1x24x24xf32>
    %308 = arith.mulf %306, %307 : vector<1x24x24xf32>
    %cst_98 = arith.constant -1.000000e+30 : f32
    %309 = vector.broadcast %cst_98 : f32 to vector<1x24x24xf32>
    %310 = arith.select %11, %308, %309 : vector<1x24x24xi1>, vector<1x24x24xf32>
    %cst_99 = arith.constant dense<0xFF800000> : vector<1x24xf32>
    %311 = vector.multi_reduction <maximumf>, %310, %cst_99 [2] : vector<1x24x24xf32> to vector<1x24xf32>
    %312 = vector.shape_cast %311 : vector<1x24xf32> to vector<1x24x1xf32>
    %313 = vector.broadcast %312 : vector<1x24x1xf32> to vector<1x24x24xf32>
    %314 = arith.subf %310, %313 : vector<1x24x24xf32>
    %315 = math.exp %314 : vector<1x24x24xf32>
    %cst_100 = arith.constant dense<0.000000e+00> : vector<1x24xf32>
    %316 = vector.multi_reduction <add>, %315, %cst_100 [2] : vector<1x24x24xf32> to vector<1x24xf32>
    %317 = vector.shape_cast %316 : vector<1x24xf32> to vector<1x24x1xf32>
    %318 = tpu.reciprocal %317 {approx = true} : vector<1x24x1xf32> -> vector<1x24x1xf32>
    %319 = vector.broadcast %318 : vector<1x24x1xf32> to vector<1x24x24xf32>
    %320 = arith.mulf %315, %319 : vector<1x24x24xf32>
    %321 = arith.truncf %320 : vector<1x24x24xf32> to vector<1x24x24xbf16>
    %322 = arith.truncf %303 : vector<1x24x8xf32> to vector<1x24x8xbf16>
    "tpu.trace_start"() <{level = 10 : i32, message = "bqk,bkd->bqd"}> : () -> ()
    %cst_101 = arith.constant dense<0.000000e+00> : vector<1x24x8xf32>
    %323 = tpu.matmul %321, %322, %cst_101 {dimension_numbers = #tpu.dot_dimension_numbers<[2], [1], [1], [2], [0, 0, 0, 1, 1, 2], [0], [0]>} : vector<1x24x24xbf16>, vector<1x24x8xbf16>, vector<1x24x8xf32> -> vector<1x24x8xf32>
    "tpu.trace_stop"() : () -> ()
    %324 = vector.extract_strided_slice %254 {offsets = [0, 0, 24], sizes = [1, 24, 8], strides = [1, 1, 1]} : vector<1x24x96xf32> to vector<1x24x8xf32>
    %325 = vector.extract_strided_slice %254 {offsets = [0, 0, 56], sizes = [1, 24, 8], strides = [1, 1, 1]} : vector<1x24x96xf32> to vector<1x24x8xf32>
    %326 = vector.extract_strided_slice %254 {offsets = [0, 0, 88], sizes = [1, 24, 8], strides = [1, 1, 1]} : vector<1x24x96xf32> to vector<1x24x8xf32>
    %327 = arith.truncf %324 : vector<1x24x8xf32> to vector<1x24x8xbf16>
    %328 = arith.truncf %325 : vector<1x24x8xf32> to vector<1x24x8xbf16>
    "tpu.trace_start"() <{level = 10 : i32, message = "bqd,bkd->bqk"}> : () -> ()
    %cst_102 = arith.constant dense<0.000000e+00> : vector<1x24x24xf32>
    %329 = tpu.matmul %327, %328, %cst_102 {dimension_numbers = #tpu.dot_dimension_numbers<[2], [2], [1], [1], [0, 0, 0, 1, 1, 1], [0], [0]>} : vector<1x24x8xbf16>, vector<1x24x8xbf16>, vector<1x24x24xf32> -> vector<1x24x24xf32>
    "tpu.trace_stop"() : () -> ()
    %cst_103 = arith.constant 0.353553385 : f32
    %330 = vector.broadcast %cst_103 : f32 to vector<1x24x24xf32>
    %331 = arith.mulf %329, %330 : vector<1x24x24xf32>
    %cst_104 = arith.constant -1.000000e+30 : f32
    %332 = vector.broadcast %cst_104 : f32 to vector<1x24x24xf32>
    %333 = arith.select %11, %331, %332 : vector<1x24x24xi1>, vector<1x24x24xf32>
    %cst_105 = arith.constant dense<0xFF800000> : vector<1x24xf32>
    %334 = vector.multi_reduction <maximumf>, %333, %cst_105 [2] : vector<1x24x24xf32> to vector<1x24xf32>
    %335 = vector.shape_cast %334 : vector<1x24xf32> to vector<1x24x1xf32>
    %336 = vector.broadcast %335 : vector<1x24x1xf32> to vector<1x24x24xf32>
    %337 = arith.subf %333, %336 : vector<1x24x24xf32>
    %338 = math.exp %337 : vector<1x24x24xf32>
    %cst_106 = arith.constant dense<0.000000e+00> : vector<1x24xf32>
    %339 = vector.multi_reduction <add>, %338, %cst_106 [2] : vector<1x24x24xf32> to vector<1x24xf32>
    %340 = vector.shape_cast %339 : vector<1x24xf32> to vector<1x24x1xf32>
    %341 = tpu.reciprocal %340 {approx = true} : vector<1x24x1xf32> -> vector<1x24x1xf32>
    %342 = vector.broadcast %341 : vector<1x24x1xf32> to vector<1x24x24xf32>
    %343 = arith.mulf %338, %342 : vector<1x24x24xf32>
    %344 = arith.truncf %343 : vector<1x24x24xf32> to vector<1x24x24xbf16>
    %345 = arith.truncf %326 : vector<1x24x8xf32> to vector<1x24x8xbf16>
    "tpu.trace_start"() <{level = 10 : i32, message = "bqk,bkd->bqd"}> : () -> ()
    %cst_107 = arith.constant dense<0.000000e+00> : vector<1x24x8xf32>
    %346 = tpu.matmul %344, %345, %cst_107 {dimension_numbers = #tpu.dot_dimension_numbers<[2], [1], [1], [2], [0, 0, 0, 1, 1, 2], [0], [0]>} : vector<1x24x24xbf16>, vector<1x24x8xbf16>, vector<1x24x8xf32> -> vector<1x24x8xf32>
    "tpu.trace_stop"() : () -> ()
    %347 = tpu.concatenate %277, %300, %323, %346 in 2 : vector<1x24x8xf32>, vector<1x24x8xf32>, vector<1x24x8xf32>, vector<1x24x8xf32> -> vector<1x24x32xf32>
    %c1_108 = arith.constant 1 : index
    %c0_109 = arith.constant 0 : index
    %c0_110 = arith.constant 0 : index
    %348 = vector.load %arg5[%c1_108, %c0_109, %c0_110] : memref<2x32x32xbf16, #tpu.memory_space<vmem>>, vector<1x32x32xbf16>
    %349 = vector.shape_cast %348 : vector<1x32x32xbf16> to vector<32x32xbf16>
    %350 = vector.shape_cast %347 : vector<1x24x32xf32> to vector<24x32xf32>
    %351 = arith.truncf %350 : vector<24x32xf32> to vector<24x32xbf16>
    %cst_111 = arith.constant dense<0.000000e+00> : vector<24x32xf32>
    %352 = tpu.matmul %351, %349, %cst_111 {dimension_numbers = #tpu.dot_dimension_numbers<[1], [0], [0], [1], [0, 0, 1, 1], [], []>} : vector<24x32xbf16>, vector<32x32xbf16>, vector<24x32xf32> -> vector<24x32xf32>
    %353 = vector.shape_cast %352 : vector<24x32xf32> to vector<1x24x32xf32>
    %354 = arith.addf %215, %353 : vector<1x24x32xf32>
    %355 = vector.extract_strided_slice %217 {offsets = [2, 0], sizes = [1, 32], strides = [1, 1]} : vector<6x32xf32> to vector<1x32xf32>
    %356 = vector.shape_cast %355 : vector<1x32xf32> to vector<1x1x32xf32>
    %357 = vector.broadcast %356 : vector<1x1x32xf32> to vector<1x24x32xf32>
    %358 = arith.addf %354, %357 : vector<1x24x32xf32>
    %359 = vector.extract_strided_slice %217 {offsets = [3, 0], sizes = [1, 32], strides = [1, 1]} : vector<6x32xf32> to vector<1x32xf32>
    %360 = vector.extract_strided_slice %217 {offsets = [4, 0], sizes = [1, 32], strides = [1, 1]} : vector<6x32xf32> to vector<1x32xf32>
    %cst_112 = arith.constant dense<0.000000e+00> : vector<1x24xf32>
    %361 = vector.multi_reduction <add>, %358, %cst_112 [2] : vector<1x24x32xf32> to vector<1x24xf32>
    %362 = vector.shape_cast %361 : vector<1x24xf32> to vector<1x24x1xf32>
    %cst_113 = arith.constant 3.200000e+01 : f32
    %363 = vector.broadcast %cst_113 : f32 to vector<1x24x1xf32>
    %364 = arith.divf %362, %363 : vector<1x24x1xf32>
    %365 = vector.broadcast %364 : vector<1x24x1xf32> to vector<1x24x32xf32>
    %366 = arith.subf %358, %365 : vector<1x24x32xf32>
    %367 = arith.mulf %366, %366 : vector<1x24x32xf32>
    %cst_114 = arith.constant dense<0.000000e+00> : vector<1x24xf32>
    %368 = vector.multi_reduction <add>, %367, %cst_114 [2] : vector<1x24x32xf32> to vector<1x24xf32>
    %369 = vector.shape_cast %368 : vector<1x24xf32> to vector<1x24x1xf32>
    %cst_115 = arith.constant 3.200000e+01 : f32
    %370 = vector.broadcast %cst_115 : f32 to vector<1x24x1xf32>
    %371 = arith.divf %369, %370 : vector<1x24x1xf32>
    %372 = vector.broadcast %364 : vector<1x24x1xf32> to vector<1x24x32xf32>
    %373 = arith.subf %358, %372 : vector<1x24x32xf32>
    %cst_116 = arith.constant 9.99999974E-6 : f32
    %374 = vector.broadcast %cst_116 : f32 to vector<1x24x1xf32>
    %375 = arith.addf %371, %374 : vector<1x24x1xf32>
    %376 = math.rsqrt %375 : vector<1x24x1xf32>
    %377 = vector.broadcast %376 : vector<1x24x1xf32> to vector<1x24x32xf32>
    %378 = arith.mulf %373, %377 : vector<1x24x32xf32>
    %379 = vector.shape_cast %359 : vector<1x32xf32> to vector<1x1x32xf32>
    %380 = vector.broadcast %379 : vector<1x1x32xf32> to vector<1x24x32xf32>
    %381 = arith.mulf %378, %380 : vector<1x24x32xf32>
    %382 = vector.shape_cast %360 : vector<1x32xf32> to vector<1x1x32xf32>
    %383 = vector.broadcast %382 : vector<1x1x32xf32> to vector<1x24x32xf32>
    %384 = arith.addf %381, %383 : vector<1x24x32xf32>
    %c1_117 = arith.constant 1 : index
    %c0_118 = arith.constant 0 : index
    %c0_119 = arith.constant 0 : index
    %385 = vector.load %arg3[%c1_117, %c0_118, %c0_119] : memref<2x32x128xbf16, #tpu.memory_space<vmem>>, vector<1x32x128xbf16>
    %386 = vector.shape_cast %385 : vector<1x32x128xbf16> to vector<32x128xbf16>
    %387 = vector.shape_cast %384 : vector<1x24x32xf32> to vector<24x32xf32>
    %388 = arith.truncf %387 : vector<24x32xf32> to vector<24x32xbf16>
    %cst_120 = arith.constant dense<0.000000e+00> : vector<24x128xf32>
    %389 = tpu.matmul %388, %386, %cst_120 {dimension_numbers = #tpu.dot_dimension_numbers<[1], [0], [0], [1], [0, 0, 1, 1], [], []>} : vector<24x32xbf16>, vector<32x128xbf16>, vector<24x128xf32> -> vector<24x128xf32>
    %390 = vector.shape_cast %389 : vector<24x128xf32> to vector<1x24x128xf32>
    %c1_121 = arith.constant 1 : index
    %c0_122 = arith.constant 0 : index
    %c0_123 = arith.constant 0 : index
    %391 = vector.load %arg2[%c1_121, %c0_122, %c0_123] : memref<2x1x128xf32, #tpu.memory_space<vmem>>, vector<1x1x128xf32>
    %392 = vector.shape_cast %391 : vector<1x1x128xf32> to vector<1x128xf32>
    %393 = vector.shape_cast %392 : vector<1x128xf32> to vector<1x1x128xf32>
    %394 = vector.broadcast %393 : vector<1x1x128xf32> to vector<1x24x128xf32>
    %395 = arith.addf %390, %394 : vector<1x24x128xf32>
    %396 = arith.mulf %395, %395 : vector<1x24x128xf32>
    %397 = arith.mulf %395, %396 : vector<1x24x128xf32>
    %cst_124 = arith.constant 4.471500e-02 : f32
    %398 = vector.broadcast %cst_124 : f32 to vector<1x24x128xf32>
    %399 = arith.mulf %398, %397 : vector<1x24x128xf32>
    %400 = arith.addf %395, %399 : vector<1x24x128xf32>
    %cst_125 = arith.constant 0.797884583 : f32
    %401 = vector.broadcast %cst_125 : f32 to vector<1x24x128xf32>
    %402 = arith.mulf %401, %400 : vector<1x24x128xf32>
    %403 = math.tanh %402 : vector<1x24x128xf32>
    %cst_126 = arith.constant 1.000000e+00 : f32
    %404 = vector.broadcast %cst_126 : f32 to vector<1x24x128xf32>
    %405 = arith.addf %404, %403 : vector<1x24x128xf32>
    %cst_127 = arith.constant 5.000000e-01 : f32
    %406 = vector.broadcast %cst_127 : f32 to vector<1x24x128xf32>
    %407 = arith.mulf %406, %405 : vector<1x24x128xf32>
    %408 = arith.mulf %395, %407 : vector<1x24x128xf32>
    %c1_128 = arith.constant 1 : index
    %c0_129 = arith.constant 0 : index
    %c0_130 = arith.constant 0 : index
    %409 = vector.load %arg4[%c1_128, %c0_129, %c0_130] : memref<2x128x32xbf16, #tpu.memory_space<vmem>>, vector<1x128x32xbf16>
    %410 = vector.shape_cast %409 : vector<1x128x32xbf16> to vector<128x32xbf16>
    %411 = vector.shape_cast %408 : vector<1x24x128xf32> to vector<24x128xf32>
    %412 = arith.truncf %411 : vector<24x128xf32> to vector<24x128xbf16>
    %cst_131 = arith.constant dense<0.000000e+00> : vector<24x32xf32>
    %413 = tpu.matmul %412, %410, %cst_131 {dimension_numbers = #tpu.dot_dimension_numbers<[1], [0], [0], [1], [0, 0, 1, 1], [], []>} : vector<24x128xbf16>, vector<128x32xbf16>, vector<24x32xf32> -> vector<24x32xf32>
    %414 = vector.shape_cast %413 : vector<24x32xf32> to vector<1x24x32xf32>
    %415 = arith.addf %358, %414 : vector<1x24x32xf32>
    %416 = vector.extract_strided_slice %217 {offsets = [5, 0], sizes = [1, 32], strides = [1, 1]} : vector<6x32xf32> to vector<1x32xf32>
    %417 = vector.shape_cast %416 : vector<1x32xf32> to vector<1x1x32xf32>
    %418 = vector.broadcast %417 : vector<1x1x32xf32> to vector<1x24x32xf32>
    %419 = arith.addf %415, %418 : vector<1x24x32xf32>
    %c0_132 = arith.constant 0 : index
    %c0_133 = arith.constant 0 : index
    %420 = vector.load %arg10[%c0_132, %c0_133] : memref<2x32xf32, #tpu.memory_space<vmem>>, vector<1x32xf32>
    %c1_134 = arith.constant 1 : index
    %c0_135 = arith.constant 0 : index
    %421 = vector.load %arg10[%c1_134, %c0_135] : memref<2x32xf32, #tpu.memory_space<vmem>>, vector<1x32xf32>
    %cst_136 = arith.constant dense<0.000000e+00> : vector<1x24xf32>
    %422 = vector.multi_reduction <add>, %419, %cst_136 [2] : vector<1x24x32xf32> to vector<1x24xf32>
    %423 = vector.shape_cast %422 : vector<1x24xf32> to vector<1x24x1xf32>
    %cst_137 = arith.constant 3.200000e+01 : f32
    %424 = vector.broadcast %cst_137 : f32 to vector<1x24x1xf32>
    %425 = arith.divf %423, %424 : vector<1x24x1xf32>
    %426 = vector.broadcast %425 : vector<1x24x1xf32> to vector<1x24x32xf32>
    %427 = arith.subf %419, %426 : vector<1x24x32xf32>
    %428 = arith.mulf %427, %427 : vector<1x24x32xf32>
    %cst_138 = arith.constant dense<0.000000e+00> : vector<1x24xf32>
    %429 = vector.multi_reduction <add>, %428, %cst_138 [2] : vector<1x24x32xf32> to vector<1x24xf32>
    %430 = vector.shape_cast %429 : vector<1x24xf32> to vector<1x24x1xf32>
    %cst_139 = arith.constant 3.200000e+01 : f32
    %431 = vector.broadcast %cst_139 : f32 to vector<1x24x1xf32>
    %432 = arith.divf %430, %431 : vector<1x24x1xf32>
    %433 = vector.broadcast %425 : vector<1x24x1xf32> to vector<1x24x32xf32>
    %434 = arith.subf %419, %433 : vector<1x24x32xf32>
    %cst_140 = arith.constant 9.99999974E-6 : f32
    %435 = vector.broadcast %cst_140 : f32 to vector<1x24x1xf32>
    %436 = arith.addf %432, %435 : vector<1x24x1xf32>
    %437 = math.rsqrt %436 : vector<1x24x1xf32>
    %438 = vector.broadcast %437 : vector<1x24x1xf32> to vector<1x24x32xf32>
    %439 = arith.mulf %434, %438 : vector<1x24x32xf32>
    %440 = vector.shape_cast %420 : vector<1x32xf32> to vector<1x1x32xf32>
    %441 = vector.broadcast %440 : vector<1x1x32xf32> to vector<1x24x32xf32>
    %442 = arith.mulf %439, %441 : vector<1x24x32xf32>
    %443 = vector.shape_cast %421 : vector<1x32xf32> to vector<1x1x32xf32>
    %444 = vector.broadcast %443 : vector<1x1x32xf32> to vector<1x24x32xf32>
    %445 = arith.addf %442, %444 : vector<1x24x32xf32>
    %446 = vector.extract_strided_slice %445 {offsets = [0, 0, 0], sizes = [1, 1, 32], strides = [1, 1, 1]} : vector<1x24x32xf32> to vector<1x1x32xf32>
    %c0_141 = arith.constant 0 : index
    %c0_142 = arith.constant 0 : index
    %447 = vector.load %arg9[%c0_141, %c0_142] : memref<32x32xbf16, #tpu.memory_space<vmem>>, vector<32x32xbf16>
    %448 = vector.shape_cast %446 : vector<1x1x32xf32> to vector<1x32xf32>
    %449 = arith.truncf %448 : vector<1x32xf32> to vector<1x32xbf16>
    %cst_143 = arith.constant dense<0.000000e+00> : vector<1x32xf32>
    %450 = tpu.matmul %449, %447, %cst_143 {dimension_numbers = #tpu.dot_dimension_numbers<[1], [0], [0], [1], [0, 0, 1, 1], [], []>} : vector<1x32xbf16>, vector<32x32xbf16>, vector<1x32xf32> -> vector<1x32xf32>
    %451 = vector.shape_cast %450 : vector<1x32xf32> to vector<1x1x32xf32>
    %452 = arith.mulf %451, %451 : vector<1x1x32xf32>
    %cst_144 = arith.constant dense<0.000000e+00> : vector<1x1xf32>
    %453 = vector.multi_reduction <add>, %452, %cst_144 [2] : vector<1x1x32xf32> to vector<1x1xf32>
    %454 = vector.shape_cast %453 : vector<1x1xf32> to vector<1x1x1xf32>
    %cst_145 = arith.constant 1.000000e-24 : f32
    %455 = vector.broadcast %cst_145 : f32 to vector<1x1x1xf32>
    %456 = arith.maximumf %454, %455 : vector<1x1x1xf32>
    %457 = math.rsqrt %456 : vector<1x1x1xf32>
    %458 = vector.broadcast %457 : vector<1x1x1xf32> to vector<1x1x32xf32>
    %459 = arith.mulf %451, %458 : vector<1x1x32xf32>
    %c0_146 = arith.constant 0 : index
    %c0_147 = arith.constant 0 : index
    %c0_148 = arith.constant 0 : index
    %460 = vector.load %arg13[%c0_146, %c0_147, %c0_148] : memref<1x1x32xf32, #tpu.memory_space<vmem>>, vector<1x1x32xf32>
    tpu.vector_store %arg13[%c0_146, %c0_147, %c0_148], %459 {strides = array<i32>} : memref<1x1x32xf32, #tpu.memory_space<vmem>>, vector<1x1x32xf32>,
    return
  }
  func.func @transform_0(%arg0: i32) -> (i32, i32, i32) {
    %c0_i32 = arith.constant 0 : i32
    %c0_i32_0 = arith.constant 0 : i32
    %c0_i32_1 = arith.constant 0 : i32
    return %arg0, %c0_i32, %c0_i32_0 : i32, i32, i32
  }
  func.func @transform_1(%arg0: i32) -> (i32, i32, i32) {
    %c0_i32 = arith.constant 0 : i32
    %c0_i32_0 = arith.constant 0 : i32
    %c0_i32_1 = arith.constant 0 : i32
    %c0_i32_2 = arith.constant 0 : i32
    return %c0_i32, %c0_i32_0, %c0_i32_1 : i32, i32, i32
  }
  func.func @transform_2(%arg0: i32) -> (i32, i32, i32) {
    %c0_i32 = arith.constant 0 : i32
    %c0_i32_0 = arith.constant 0 : i32
    %c0_i32_1 = arith.constant 0 : i32
    %c0_i32_2 = arith.constant 0 : i32
    return %c0_i32, %c0_i32_0, %c0_i32_1 : i32, i32, i32
  }
  func.func @transform_3(%arg0: i32) -> (i32, i32, i32) {
    %c0_i32 = arith.constant 0 : i32
    %c0_i32_0 = arith.constant 0 : i32
    %c0_i32_1 = arith.constant 0 : i32
    %c0_i32_2 = arith.constant 0 : i32
    return %c0_i32, %c0_i32_0, %c0_i32_1 : i32, i32, i32
  }
  func.func @transform_4(%arg0: i32) -> (i32, i32, i32) {
    %c0_i32 = arith.constant 0 : i32
    %c0_i32_0 = arith.constant 0 : i32
    %c0_i32_1 = arith.constant 0 : i32
    %c0_i32_2 = arith.constant 0 : i32
    return %c0_i32, %c0_i32_0, %c0_i32_1 : i32, i32, i32
  }
  func.func @transform_5(%arg0: i32) -> (i32, i32, i32) {
    %c0_i32 = arith.constant 0 : i32
    %c0_i32_0 = arith.constant 0 : i32
    %c0_i32_1 = arith.constant 0 : i32
    %c0_i32_2 = arith.constant 0 : i32
    return %c0_i32, %c0_i32_0, %c0_i32_1 : i32, i32, i32
  }
  func.func @transform_6(%arg0: i32) -> (i32, i32, i32) {
    %c0_i32 = arith.constant 0 : i32
    %c0_i32_0 = arith.constant 0 : i32
    %c0_i32_1 = arith.constant 0 : i32
    %c0_i32_2 = arith.constant 0 : i32
    return %c0_i32, %c0_i32_0, %c0_i32_1 : i32, i32, i32
  }
  func.func @transform_7(%arg0: i32) -> (i32, i32, i32) {
    %c0_i32 = arith.constant 0 : i32
    %c0_i32_0 = arith.constant 0 : i32
    %c0_i32_1 = arith.constant 0 : i32
    %c0_i32_2 = arith.constant 0 : i32
    return %c0_i32, %c0_i32_0, %c0_i32_1 : i32, i32, i32
  }
  func.func @transform_8(%arg0: i32) -> (i32, i32) {
    %c0_i32 = arith.constant 0 : i32
    %c0_i32_0 = arith.constant 0 : i32
    %c0_i32_1 = arith.constant 0 : i32
    return %c0_i32, %c0_i32_0 : i32, i32
  }
  func.func @transform_9(%arg0: i32) -> (i32, i32) {
    %c0_i32 = arith.constant 0 : i32
    %c0_i32_0 = arith.constant 0 : i32
    %c0_i32_1 = arith.constant 0 : i32
    return %c0_i32, %c0_i32_0 : i32, i32
  }
  func.func @transform_10(%arg0: i32) -> (i32, i32) {
    %c0_i32 = arith.constant 0 : i32
    %c0_i32_0 = arith.constant 0 : i32
    %c0_i32_1 = arith.constant 0 : i32
    return %c0_i32, %c0_i32_0 : i32, i32
  }
  func.func @transform_11(%arg0: i32) -> (i32, i32, i32) {
    %c0_i32 = arith.constant 0 : i32
    %c0_i32_0 = arith.constant 0 : i32
    %c0_i32_1 = arith.constant 0 : i32
    %c0_i32_2 = arith.constant 0 : i32
    return %c0_i32, %c0_i32_0, %c0_i32_1 : i32, i32, i32
  }
  func.func @transform_12(%arg0: i32) -> (i32, i32, i32) {
    %c0_i32 = arith.constant 0 : i32
    %c0_i32_0 = arith.constant 0 : i32
    %c0_i32_1 = arith.constant 0 : i32
    return %arg0, %c0_i32, %c0_i32_0 : i32, i32, i32
  }
}

</mosaic_0001>

<bundles_post_ra>
// kernel: clip_forward.2
= control target key start
LH: loop header
LB: loop body
LE: loop exit
PB: predicated region body
PF: predicated region fallthrough
CT: control target
= control target key end

     0   :  { %s3932_s21 = smov 0   ;;  %s4585_s0 = inlined_call_operand.vmem [shape: f32[2,24,48], index: 0, kind: input, shape index: {}]   ;;  %s4586_s1 = inlined_call_operand.vmem [shape: f32[2,1,128], index: 1, kind: input, shape index: {}]   ;;  %s4587_s2 = inlined_call_operand.vmem [shape: bf16[2,32,128], index: 2, kind: input, shape index: {}]   ;;  %s4588_s3 = inlined_call_operand.vmem [shape: bf16[2,128,32], index: 3, kind: input, shape index: {}]   ;;  %s4589_s4 = inlined_call_operand.vmem [shape: bf16[2,32,32], index: 4, kind: input, shape index: {}]   ;;  %s4590_s5 = inlined_call_operand.vmem [shape: f32[2,1,96], index: 5, kind: input, shape index: {}]   ;;  %s4591_s6 = inlined_call_operand.vmem [shape: bf16[2,32,96], index: 6, kind: input, shape index: {}]   ;;  %s4592_s7 = inlined_call_operand.vmem [shape: f32[2,6,32], index: 7, kind: input, shape index: {}]   ;;  %s4593_s8 = inlined_call_operand.vmem [shape: bf16[32,32], index: 8, kind: input, shape index: {}]   ;;  %s4594_s9 = inlined_call_operand.vmem [shape: f32[2,32], index: 9, kind: input, shape index: {}]   ;;  %s4595_s10 = inlined_call_operand.vmem [shape: bf16[48,32], index: 10, kind: input, shape index: {}]   ;;  %s4596_s11 = inlined_call_operand.vmem [shape: f32[1,24,32], index: 11, kind: input, shape index: {}]   ;;  %s4597_s12 = inlined_call_operand.vmem [shape: f32[2,1,32], index: 12, kind: output, shape index: {}]  }
   0x1 LB: > { %s3118_s22 = sadd.s32 4294967295, %s3849_s21   ;;  %p3122_p0 = scmp.ge.s32.totalorder %s3849_s21, 1  ;;  %s3849_s21 = sphi %s3932_s21, %s22_s21  }
   0x2   : > { %p362_p1 = scmp.lt.s32.totalorder %s3849_s21, 3 }
   0x4   : > { %p363_p2 = pnand %p3122_p0, %p362_p1 }
   0x5   : > { %p402_p3 = scmp.lt.s32.totalorder (!%p363_p2), %s3118_s22, 1  ;;  %s3851_s13 = smov (!%p363_p2), 96  }
   0x6   : > { %366 = sbr.rel (%p363_p2) target bundleno = 8494 (0x212e), region = 68  ;;  %s3853_s15 = smov (!%p363_p2), 120  }
   0x7   : > { %s3854_s16 = smov (!%p363_p2), 88   ;;  %s3855_s17 = smov (!%p363_p2), 56  }
   0x8   : > { %s3856_s18 = smov (!%p363_p2), 80   ;;  %s3857_s19 = smov (!%p363_p2), 112  }
   0x9   : > { %s3858_s20 = smov (!%p363_p2), 48   ;;  %s4608_s23 = smov (!%p363_p2), 72  }
   0xa   : > { %s4606_s24 = smov (!%p363_p2), 104   ;;  %s4604_s25 = smov (!%p363_p2), 40  }
   0xb   : > { %v3672_v0 = vld [vmem:[%s4595_s10 + $0x10] sm:$0xff]   ;;  %v3673_v1 = vld [vmem:[%s4595_s10 + $0x8] sm:$0xff]   ;;  %s4617_s22 = smov (!%p402_p3, %s3118_s22), 1  ;;  %v3674_v2 = vld [vmem:[%s4595_s10] sm:$0xff]   ;;  %vm440_vm0 = vcmask 392192   ;;  %vm505_vm1 = vcmask 261120   ;;  %v501_v47 = vlaneseq }
   0xc   : > { %3359 = vmatprep.subr.bf16.mxu1 %v3672_v0  ;;  %s3617_s29 = smul.u32 24, %s4617_s22  ;;  %v497_v8 = vld [vmem:[%s4596_s11 + $0x10] sm:$0xff]  ;;  %v495_v10 = vld [vmem:[%s4596_s11] sm:$0xff]  ;;  %v496_v16 = vld [vmem:[%s4596_s11 + $0x8] sm:$0xff]  ;;  %vm650_vm2 = vcmask 64512   ;;  %vm717_vm4 = vcmask 195584  }
   0xd   : > { %3360 = vmatpush3.bf16.msra.mxu1 %v3672_v0  ;;  %v3675_v36 = vld [vmem:[%s4591_s6 + $0x8] sm:$0xff]   ;;  %v3676_v37 = vld [vmem:[%s4591_s6] sm:$0xff]   ;;  %v3988_v48 = vshrl.u32 %v501_v47, 7  ;;  %vm764_vm5 = vcmask 1043456   ;;  %s4600_s26 = smov 8   ;;  %s4598_s27 = smov 16  }
   0xe   : > { %3361 = vmatprep.subr.bf16.mxu1 %v3673_v1  ;;  %s406_s14 = scalar_lea.vmem %s4585_s0, %s3617_s29  ;;  %v3994_v50 = vld [vmem:[%s4592_s7] sm:$0x3f]  ;;  %vm1368_vm6 = vcmask 130048   ;;  %vm3866_vm7 = vmmov 0   ;;  %vm3063_vm8 = vcmask 253952  }
   0xf   : > { %v411_v3 = vld [vmem:[%s406_s14] sm:$0xff]  ;;  %v412_v4 = vld [vmem:[%s406_s14 + $0x8] sm:$0xff]  ;;  %v413_v5 = vld [vmem:[%s406_s14 + $0x10] sm:$0xff]  ;;  %v548_v49 = vsub.s32 0, %v3988_v48  ;;  %v555_v54 = vsub.s32 1, %v3988_v48  ;;  %s3852_s14 = smov 64  }
  0x10   : > { %v420_v6 = vpack.c.bf16 %v412_v4, %v411_v3  ;;  %v421_v7 = vpack.c.bf16 %v413_v5, %v413_v5  ;;  %v3133_v4 = vld [vmem:[%s4590_s5] ss:$0 sm:$0xff] }
  0x11   : > { %3362 = vmatpush3.bf16.msra.mxu1 %v3673_v1  ;;  %v549_v53 = vrot.slane %v3994_v50, %v548_v49  ;;  %v556_v60 = vrot.slane %v3994_v50, %v555_v54 }
  0x12   : > { %3363 = vmatprep.subr.bf16.mxu1 %v3674_v2  ;;  %3365 = vmatprep.mubr.msk.bf16.mxu1 %vm440_vm0, %v420_v6 }
  0x15   : > { %3364 = vmatpush3.bf16.msra.mxu1 %v3674_v2 }
  0x16   : > { %3369 = vmatprep.subr.bf16.mxu1 %v3675_v36 }
  0x18   : > { %3366 = vmatmul.mubr.msk.bf16.vlgmr.msra.gmra.mxu1 %vm440_vm0, %v421_v7 }
  0x19   : > { %3370 = vmatpush3.bf16.msra.mxu1 %v3675_v36 }
  0x1a   : > { %3371 = vmatprep.subr.bf16.mxu1 %v3676_v37 }
  0x1d   : > { %3372 = vmatpush3.bf16.msra.mxu1 %v3676_v37 }
  0xd8   : > { %v3367_v9 = vpop.f32.mrf.mxu1 }
  0xd9   : > { %v3961_v11 = vadd.f32 %v3367_v9, %v497_v8 }
  0xda   : > { %v481_v12 = vpop.f32.mrf.mxu1 }
  0xdb   : > { %v3963_v13 = vadd.f32 %v495_v10, %v481_v12  ;;  %v512_v14 = vsel %vm505_vm1, %v3961_v11, 0.0 }
  0xdc   : > { %513 = vadd.xlane.f32.xlu1 %v512_v14  ;;  %v3368_v15 = vpop.f32.mrf.mxu1 }
  0xdd   : > { %v506_v17 = vsel %vm505_vm1, %v3963_v13, 0.0 }
  0xde   : > { %507 = vadd.xlane.f32.xlu0 %v506_v17  ;;  %v484_v18 = vpop.f32.mrf.mxu1 }
  0xdf   : > { %v3972_v19 = vadd.f32 %v496_v16, %v484_v18 }
  0xe1   : > { %v509_v20 = vsel %vm505_vm1, %v3972_v19, 0.0 }
  0xe2   : > { %510 = vadd.xlane.f32.xlu0 %v509_v20 }
 0x165   : > { %v514_v21 = vpop.xlane.xlu1 %513 }
 0x166   : > { %v518_v22 = vmul.f32 0.03125, %v514_v21  ;;  %v4024_v21 = vand.u32 127, %v501_v47 }
 0x167   : > { %v508_v23 = vpop.xlane.xlu0 %507 }
 0x168   : > { %v516_v24 = vmul.f32 0.03125, %v508_v23  ;;  %v521_v25 = vsub.f32 %v3961_v11, %v518_v22  ;;  %vm503_vm3 = vcmp.lt.s32.totalorder %v4024_v21, 17 }
 0x16a   : > { %v519_v26 = vsub.f32 %v3963_v13, %v516_v24  ;;  %v524_v32 = vmul.f32 %v521_v25, %v521_v25 }
 0x16b   : > { %v511_v27 = vpop.xlane.xlu0 %510 }
 0x16c   : > { %v517_v28 = vmul.f32 0.03125, %v511_v27  ;;  %v522_v29 = vmul.f32 %v519_v26, %v519_v26  ;;  %v531_v34 = vsel %vm505_vm1, %v524_v32, 0.0 }
 0x16e   : > { %v520_v30 = vsub.f32 %v3972_v19, %v517_v28  ;;  %v525_v31 = vsel %vm505_vm1, %v522_v29, 0.0 }
 0x16f   : > { %526 = vadd.xlane.f32.xlu1 %v525_v31 }
 0x170   : > { %v523_v33 = vmul.f32 %v520_v30, %v520_v30 }
 0x172   : > { %v528_v35 = vsel %vm505_vm1, %v523_v33, 0.0 }
 0x173   : > { %532 = vadd.xlane.f32.xlu1 %v531_v34  ;;  %529 = vadd.xlane.f32.xlu0 %v528_v35 }
 0x1f8   : > { %v527_v38 = vpop.xlane.xlu1 %526 }
 0x1f9   : > { %v534_v39 = vmul.f32 0.03125, %v527_v38 }
 0x1fb   : > { %v537_v40 = vadd.f32 1e-05, %v534_v39 }
 0x1fc   : > { %v533_v41 = vpop.xlane.xlu1 %532  ;;  %v530_v42 = vpop.xlane.xlu0 %529 }
 0x1fd   : > { %3705 = vrsqrt.f32 %v537_v40  ;;  %v536_v43 = vmul.f32 0.03125, %v533_v41  ;;  %v535_v44 = vmul.f32 0.03125, %v530_v42 }
 0x1ff   : > { %v539_v45 = vadd.f32 1e-05, %v536_v43  ;;  %v538_v46 = vadd.f32 1e-05, %v535_v44 }
 0x201   : > { %3707 = vrsqrt.f32 %v539_v45 }
 0x202   : > { %3709 = vrsqrt.f32 %v538_v46 }
 0x20a   : > { %v3706_v51 = vpop.eup %3705 }
 0x20b   : > { %v543_v52 = vmul.f32 %v3706_v51, %v519_v26 }
 0x20d   : > { %v550_v59 = vmul.f32 %v549_v53, %v543_v52 }
 0x20e   : > { %v3708_v55 = vpop.eup %3707 }
 0x20f   : > { %v3710_v56 = vpop.eup %3709  ;;  %v545_v57 = vmul.f32 %v3708_v55, %v521_v25  ;;  %v557_v0 = vadd.f32 %v556_v60, %v550_v59 }
 0x210   : > { %v544_v58 = vmul.f32 %v3710_v56, %v520_v30 }
 0x211   : > { %v552_v61 = vmul.f32 %v549_v53, %v545_v57 }
 0x212   : > { %v551_v62 = vmul.f32 %v549_v53, %v544_v58 }
 0x213   : > { %v559_v63 = vadd.f32 %v556_v60, %v552_v61 }
 0x214   : > { %v558_v1 = vadd.f32 %v556_v60, %v551_v62 }
 0x215   : > { %v565_v2 = vpack.c.bf16 %v559_v63, %v559_v63 }
 0x216   : > { %v564_v3 = vpack.c.bf16 %v558_v1, %v557_v0 }
 0x218   : > { %3373 = vmatprep.mubr.msk.bf16.mxu1 %vm505_vm1, %v564_v3 }
 0x219   : > { %3374 = vmatmul.mubr.msk.bf16.vlgmr.msra.gmra.mxu1 %vm505_vm1, %v565_v2 }
 0x2d9   : > { %v3375_v5 = vpop.f32.mrf.mxu1 }
 0x2da   : > { %v641_v6 = vadd.f32 %v3375_v5, %v3133_v4 }
 0x2db   : > { %v618_v7 = vpop.f32.mrf.mxu1 }
 0x2dc   : > { %v4008_v8 = vpack.c.bf16 %v641_v6, %v641_v6  ;;  %v639_v12 = vadd.f32 %v3133_v4, %v618_v7 }
 0x2dd   : > { %v3376_v9 = vpop.f32.mrf.mxu1 }
 0x2de   : > { %648 = vrot.lane.b32.xlu0 %v4008_v8, %s3851_s13 }
 0x2df   : > { %v621_v10 = vpop.f32.mrf.mxu1 }
 0x2e0   : > { %v640_v14 = vadd.f32 %v3133_v4, %v621_v10 }
 0x2e2   : > { %v4012_v15 = vpack.c.bf16 %v640_v14, %v639_v12 }
 0x2e4   : > { %646 = vrot.lane.b32.xlu1 %v4012_v15, %s3851_s13  ;;  %3381 = vmatprep.mubr.msk.bf16.mxu1 %vm650_vm2, %v4012_v15 }
 0x350   : > { %v649_v16 = vpop.permute.xlu0 %648 }
 0x351   : > { %3593 = vmatprep.subr.msk.bf16.mxu1 %vm650_vm2, %v649_v16  ;;  %v661_v17 = vsel %vm650_vm2, %v649_v16, 0 }
 0x352   : > { %3378 = vmatpush3.bf16.xpose.msra.mxu1 %v661_v17 }
 0x356   : > { %v647_v18 = vpop.permute.xlu1 %646 }
 0x357   : > { %3594 = vmatprep.subr.msk.bf16.mxu1 %vm650_vm2, %v647_v18  ;;  %v658_v20 = vsel %vm650_vm2, %v647_v18, 0 }
 0x35a   : > { %3380 = vmatpush3.bf16.xpose.msra.mxu1 %v658_v20 }
 0x361   : > { %3382 = vmatmul.mubr.msk.bf16.vlgmr.msra.gmra.mxu1 %vm650_vm2, %v4008_v8 }
 0x421   : > { %v3383_v22 = vpop.f32.mrf.mxu1 }
 0x422   : > { %v713_v29 = vmul.f32 0.35355338, %v3383_v22 }
 0x423   : > { %v697_v23 = vpop.f32.mrf.mxu1 }
 0x424   : > { %v711_v24 = vmul.f32 0.35355338, %v697_v23  ;;  %v716_v33 = vsel %vm503_vm3, %v713_v29, -1e+30 }
 0x425   : > { %v3384_v25 = vpop.f32.mrf.mxu1  ;;  %v724_v34 = vsel %vm717_vm4, %v716_v33, -inf }
 0x426   : > { %v714_v26 = vsel %vm503_vm3, %v711_v24, -1e+30 }
 0x427   : > { %v700_v27 = vpop.f32.mrf.mxu1  ;;  %v718_v28 = vsel %vm717_vm4, %v714_v26, -inf }
 0x428   : > { %v712_v30 = vmul.f32 0.35355338, %v700_v27  ;;  %719 = vmax.xlane.f32.xlu1 %v718_v28 }
 0x42a   : > { %v715_v31 = vsel %vm503_vm3, %v712_v30, -1e+30 }
 0x42b   : > { %v721_v32 = vsel %vm717_vm4, %v715_v31, -inf }
 0x42c   : > { %722 = vmax.xlane.f32.xlu0 %v721_v32 }
 0x430   : > { %725 = vmax.xlane.f32.xlu0 %v724_v34 }
 0x4b1   : > { %v720_v35 = vpop.xlane.xlu1 %719 }
 0x4b2   : > { %v727_v38 = vsub.f32 %v714_v26, %v720_v35 }
 0x4b4   : > { %v730_v42 = vmul.f32 1.442695, %v727_v38 }
 0x4b5   : > { %v723_v36 = vpop.xlane.xlu0 %722 }
 0x4b6   : > { %v728_v37 = vsub.f32 %v715_v31, %v723_v36 }
 0x4b8   : > { %v732_v39 = vmul.f32 1.442695, %v728_v37 }
 0x4b9   : > { %v726_v40 = vpop.xlane.xlu0 %725 }
 0x4ba   : > { %3711 = vpow2.f32 %v732_v39  ;;  %v729_v41 = vsub.f32 %v716_v33, %v726_v40 }
 0x4bc   : > { %v734_v43 = vmul.f32 1.442695, %v729_v41 }
 0x4be   : > { %3713 = vpow2.f32 %v734_v43 }
 0x4bf   : > { %3715 = vpow2.f32 %v730_v42 }
 0x4c7   : > { %v3712_v44 = vpop.eup %3711 }
 0x4c8   : > { %v739_v45 = vsel %vm717_vm4, %v3712_v44, 0.0 }
 0x4c9   : > { %740 = vadd.xlane.f32.xlu0 %v739_v45 }
 0x4cb   : > { %v3714_v46 = vpop.eup %3713 }
 0x4cc   : > { %v742_v47 = vsel %vm717_vm4, %v3714_v46, 0.0  ;;  %v3716_v51 = vpop.eup %3715 }
 0x4cd   : > { %743 = vadd.xlane.f32.xlu1 %v742_v47  ;;  %v736_v52 = vsel %vm717_vm4, %v3716_v51, 0.0 }
 0x4d1   : > { %737 = vadd.xlane.f32.xlu1 %v736_v52 }
 0x4df   : > { %755 = vrot.lane.b32.xlu0 %v4008_v8, %s3852_s14 }
 0x4e2   : > { %753 = vrot.lane.b32.xlu1 %v4012_v15, %s3852_s14 }
 0x4e3   : > { %816 = vrot.lane.b32.xlu0 %v4012_v15, %s3853_s15 }
 0x4e6   : > { %822 = vrot.lane.b32.xlu1 %v4008_v8, %s3854_s16 }
 0x4ea   : > { %820 = vrot.lane.b32.xlu1 %v4012_v15, %s3854_s16 }
 0x4ee   : > { %818 = vrot.lane.b32.xlu1 %v4008_v8, %s3853_s15 }
 0x552   : > { %v741_v53 = vpop.xlane.xlu0 %740 }
 0x556   : > { %v744_v55 = vpop.xlane.xlu1 %743  ;;  %v756_v56 = vpop.permute.xlu0 %755 }
 0x557   : > { %3595 = vmatprep.subr.msk.bf16.mxu0 %vm764_vm5, %v756_v56  ;;  %v766_v57 = vsel %vm764_vm5, %v756_v56, 0  ;;  %3717 = vrcp.f32 %v744_v55 }
 0x558   : > { %3386 = vmatpush3.bf16.msra.mxu0 %v766_v57  ;;  %3719 = vrcp.f32 %v741_v53 }
 0x55a   : > { %v738_v58 = vpop.xlane.xlu1 %737  ;;  %v817_v5 = vpop.permute.xlu0 %816 }
 0x55b   : > { %3721 = vrcp.f32 %v738_v58 }
 0x55e   : > { %v754_v59 = vpop.permute.xlu1 %753 }
 0x55f   : > { %3387 = vmatprep.subr.bf16.mxu0 %v754_v59 }
 0x560   : > { %3388 = vmatpush3.bf16.msra.mxu0 %v754_v59 }
 0x562   : > { %v823_v60 = vpop.permute.xlu1 %822 }
 0x563   : > { %3596 = vmatprep.subr.msk.bf16.mxu0 %vm650_vm2, %v823_v60  ;;  %v834_v6 = vsel %vm650_vm2, %v823_v60, 0 }
 0x564   : > { %v3718_v61 = vpop.eup %3717 }
 0x565   : > { %v3720_v62 = vpop.eup %3719  ;;  %v750_v0 = vmul.f32 %v3718_v61, %v3714_v46 }
 0x566   : > { %v749_v2 = vmul.f32 %v3720_v62, %v3712_v44  ;;  %v821_v7 = vpop.permute.xlu1 %820 }
 0x567   : > { %v752_v4 = vpack.c.bf16 %v750_v0, %v750_v0  ;;  %v831_v9 = vsel %vm650_vm2, %v821_v7, 0 }
 0x568   : > { %v3722_v63 = vpop.eup %3721 }
 0x569   : > { %v748_v1 = vmul.f32 %v3722_v63, %v3716_v51 }
 0x56a   : > { %v819_v10 = vpop.permute.xlu1 %818 }
 0x56b   : > { %v751_v3 = vpack.c.bf16 %v749_v2, %v748_v1 }
 0x56d   : > { %3389 = vmatprep.mubr.msk.bf16.mxu0 %vm717_vm4, %v751_v3 }
 0x56e   : > { %3390 = vmatmul.mubr.msk.bf16.vlgmr.msra.gmra.mxu0 %vm717_vm4, %v752_v4 }
 0x56f   : > { %3394 = vmatpush3.bf16.xpose.msra.mxu0 %v834_v6  ;;  %3397 = vmatprep.mubr.msk.bf16.mxu0 %vm650_vm2, %v817_v5 }
 0x570   : > { %3597 = vmatprep.subr.msk.bf16.mxu0 %vm650_vm2, %v821_v7 }
 0x577   : > { %3396 = vmatpush3.bf16.xpose.msra.mxu0 %v831_v9 }
 0x57e   : > { %3398 = vmatmul.mubr.msk.bf16.vlgmr.msra.gmra.mxu0 %vm650_vm2, %v819_v10 }
 0x62e   : > { %v4061_v12 = vpop.f32.mrf.mxu0 }
 0x630   : > { %v4063_v14 = vpop.f32.mrf.mxu0 }
 0x632   : > { %v3392_v16 = vpop.f32.mrf.mxu0 }
 0x634   : > { %v4065_v17 = vpop.f32.mrf.mxu0 }
 0x63e   : > { %v3399_v18 = vpop.f32.mrf.mxu0 }
 0x63f   : > { %v886_v22 = vmul.f32 0.35355338, %v3399_v18 }
 0x640   : > { %v870_v20 = vpop.f32.mrf.mxu0 }
 0x641   : > { %v884_v23 = vmul.f32 0.35355338, %v870_v20  ;;  %v889_v29 = vsel %vm503_vm3, %v886_v22, -1e+30 }
 0x642   : > { %v3400_v24 = vpop.f32.mrf.mxu0  ;;  %v896_v31 = vsel %vm717_vm4, %v889_v29, -inf }
 0x643   : > { %v887_v25 = vsel %vm503_vm3, %v884_v23, -1e+30 }
 0x644   : > { %v873_v26 = vpop.f32.mrf.mxu0  ;;  %v890_v27 = vsel %vm717_vm4, %v887_v25, -inf }
 0x645   : > { %v885_v28 = vmul.f32 0.35355338, %v873_v26  ;;  %891 = vmax.xlane.f32.xlu0 %v890_v27 }
 0x647   : > { %v888_v30 = vsel %vm503_vm3, %v885_v28, -1e+30 }
 0x648   : > { %v893_v32 = vsel %vm717_vm4, %v888_v30, -inf }
 0x649   : > { %897 = vmax.xlane.f32.xlu0 %v896_v31  ;;  %894 = vmax.xlane.f32.xlu1 %v893_v32 }
 0x6ce   : > { %v892_v33 = vpop.xlane.xlu0 %891 }
 0x6cf   : > { %v899_v34 = vsub.f32 %v887_v25, %v892_v33 }
 0x6d1   : > { %v902_v35 = vmul.f32 1.442695, %v899_v34 }
 0x6d2   : > { %v898_v36 = vpop.xlane.xlu0 %897  ;;  %v895_v37 = vpop.xlane.xlu1 %894 }
 0x6d3   : > { %3723 = vpow2.f32 %v902_v35  ;;  %v901_v38 = vsub.f32 %v889_v29, %v898_v36  ;;  %v900_v39 = vsub.f32 %v888_v30, %v895_v37 }
 0x6d5   : > { %v906_v40 = vmul.f32 1.442695, %v901_v38  ;;  %v904_v41 = vmul.f32 1.442695, %v900_v39 }
 0x6d7   : > { %3725 = vpow2.f32 %v906_v40 }
 0x6d8   : > { %3727 = vpow2.f32 %v904_v41 }
 0x6e0   : > { %v3724_v42 = vpop.eup %3723 }
 0x6e1   : > { %v908_v43 = vsel %vm717_vm4, %v3724_v42, 0.0 }
 0x6e2   : > { %909 = vadd.xlane.f32.xlu0 %v908_v43 }
 0x6e4   : > { %v3726_v44 = vpop.eup %3725 }
 0x6e5   : > { %v3728_v45 = vpop.eup %3727  ;;  %v914_v46 = vsel %vm717_vm4, %v3726_v44, 0.0 }
 0x6e6   : > { %915 = vadd.xlane.f32.xlu1 %v914_v46  ;;  %v911_v47 = vsel %vm717_vm4, %v3728_v45, 0.0 }
 0x6e7   : > { %912 = vadd.xlane.f32.xlu0 %v911_v47 }
 0x6f7   : > { %925 = vrot.lane.b32.xlu1 %v4012_v15, %s3855_s17 }
 0x6fb   : > { %993 = vrot.lane.b32.xlu1 %v4008_v8, %s3856_s18 }
 0x6fd   : > { %927 = vrot.lane.b32.xlu0 %v4008_v8, %s3855_s17 }
 0x6ff   : > { %991 = vrot.lane.b32.xlu1 %v4012_v15, %s3856_s18 }
 0x701   : > { %987 = vrot.lane.b32.xlu0 %v4012_v15, %s3857_s19 }
 0x703   : > { %989 = vrot.lane.b32.xlu1 %v4008_v8, %s3857_s19 }
 0x76b   : > { %v910_v51 = vpop.xlane.xlu0 %909 }
 0x76c   : > { %3729 = vrcp.f32 %v910_v51 }
 0x76f   : > { %v916_v52 = vpop.xlane.xlu1 %915 }
 0x770   : > { %v913_v53 = vpop.xlane.xlu0 %912  ;;  %3731 = vrcp.f32 %v916_v52 }
 0x771   : > { %3733 = vrcp.f32 %v913_v53 }
 0x773   : > { %v926_v56 = vpop.permute.xlu1 %925 }
 0x774   : > { %v928_v55 = vpop.permute.xlu0 %927 }
 0x775   : > { %3598 = vmatprep.subr.msk.bf16.mxu1 %vm764_vm5, %v928_v55  ;;  %v937_v57 = vsel %vm764_vm5, %v928_v55, 0 }
 0x776   : > { %3402 = vmatpush3.bf16.msra.mxu1 %v937_v57 }
 0x777   : > { %3403 = vmatprep.subr.bf16.mxu1 %v926_v56  ;;  %v994_v58 = vpop.permute.xlu1 %993 }
 0x778   : > { %v988_v3 = vpop.permute.xlu0 %987  ;;  %v1005_v4 = vsel %vm650_vm2, %v994_v58, 0 }
 0x779   : > { %v3730_v59 = vpop.eup %3729 }
 0x77a   : > { %3404 = vmatpush3.bf16.msra.mxu1 %v926_v56  ;;  %v920_v63 = vmul.f32 %v3730_v59, %v3724_v42 }
 0x77b   : > { %3599 = vmatprep.subr.msk.bf16.mxu1 %vm650_vm2, %v994_v58  ;;  %v992_v5 = vpop.permute.xlu1 %991 }
 0x77c   : > { %v1002_v6 = vsel %vm650_vm2, %v992_v5, 0 }
 0x77d   : > { %v3732_v60 = vpop.eup %3731 }
 0x77e   : > { %v3734_v61 = vpop.eup %3733  ;;  %v922_v62 = vmul.f32 %v3732_v60, %v3726_v44 }
 0x77f   : > { %v921_v0 = vmul.f32 %v3734_v61, %v3728_v45  ;;  %v990_v7 = vpop.permute.xlu1 %989 }
 0x780   : > { %v924_v1 = vpack.c.bf16 %v922_v62, %v922_v62 }
 0x781   : > { %v923_v2 = vpack.c.bf16 %v921_v0, %v920_v63 }
 0x783   : > { %3405 = vmatprep.mubr.msk.bf16.mxu1 %vm717_vm4, %v923_v2 }
 0x784   : > { %3406 = vmatmul.mubr.msk.bf16.vlgmr.msra.gmra.mxu1 %vm717_vm4, %v924_v1 }
 0x785   : > { %3410 = vmatpush3.bf16.xpose.msra.mxu1 %v1005_v4  ;;  %3413 = vmatprep.mubr.msk.bf16.mxu1 %vm650_vm2, %v988_v3 }
 0x786   : > { %3600 = vmatprep.subr.msk.bf16.mxu1 %vm650_vm2, %v992_v5 }
 0x78d   : > { %3412 = vmatpush3.bf16.xpose.msra.mxu1 %v1002_v6 }
 0x794   : > { %3414 = vmatmul.mubr.msk.bf16.vlgmr.msra.gmra.mxu1 %vm650_vm2, %v990_v7 }
 0x844   : > { %v4101_v9 = vpop.f32.mrf.mxu1 }
 0x846   : > { %v4103_v10 = vpop.f32.mrf.mxu1 }
 0x848   : > { %v3408_v16 = vpop.f32.mrf.mxu1 }
 0x84a   : > { %v4105_v18 = vpop.f32.mrf.mxu1 }
 0x84b   : > { %v3642_v20 = vpack.i.bf16 %v4105_v18, %v4103_v10 }
 0x854   : > { %v3415_v22 = vpop.f32.mrf.mxu1 }
 0x855   : > { %v1057_v24 = vmul.f32 0.35355338, %v3415_v22 }
 0x856   : > { %v1041_v23 = vpop.f32.mrf.mxu1 }
 0x857   : > { %v1055_v25 = vmul.f32 0.35355338, %v1041_v23  ;;  %v1060_v31 = vsel %vm503_vm3, %v1057_v24, -1e+30 }
 0x858   : > { %v3416_v26 = vpop.f32.mrf.mxu1  ;;  %v1067_v33 = vsel %vm717_vm4, %v1060_v31, -inf }
 0x859   : > { %v1058_v27 = vsel %vm503_vm3, %v1055_v25, -1e+30 }
 0x85a   : > { %v1044_v28 = vpop.f32.mrf.mxu1  ;;  %v1061_v29 = vsel %vm717_vm4, %v1058_v27, -inf }
 0x85b   : > { %v1056_v30 = vmul.f32 0.35355338, %v1044_v28  ;;  %1062 = vmax.xlane.f32.xlu0 %v1061_v29 }
 0x85d   : > { %v1059_v32 = vsel %vm503_vm3, %v1056_v30, -1e+30 }
 0x85e   : > { %v1064_v34 = vsel %vm717_vm4, %v1059_v32, -inf }
 0x85f   : > { %1068 = vmax.xlane.f32.xlu0 %v1067_v33  ;;  %1065 = vmax.xlane.f32.xlu1 %v1064_v34 }
 0x8e4   : > { %v1063_v35 = vpop.xlane.xlu0 %1062 }
 0x8e5   : > { %v1070_v36 = vsub.f32 %v1058_v27, %v1063_v35 }
 0x8e7   : > { %v1073_v37 = vmul.f32 1.442695, %v1070_v36 }
 0x8e8   : > { %v1069_v38 = vpop.xlane.xlu0 %1068  ;;  %v1066_v39 = vpop.xlane.xlu1 %1065 }
 0x8e9   : > { %3735 = vpow2.f32 %v1073_v37  ;;  %v1072_v40 = vsub.f32 %v1060_v31, %v1069_v38  ;;  %v1071_v41 = vsub.f32 %v1059_v32, %v1066_v39 }
 0x8eb   : > { %v1077_v42 = vmul.f32 1.442695, %v1072_v40  ;;  %v1075_v43 = vmul.f32 1.442695, %v1071_v41 }
 0x8ed   : > { %3737 = vpow2.f32 %v1077_v42 }
 0x8ee   : > { %3739 = vpow2.f32 %v1075_v43 }
 0x8f6   : > { %v3736_v44 = vpop.eup %3735 }
 0x8f7   : > { %v1079_v45 = vsel %vm717_vm4, %v3736_v44, 0.0 }
 0x8f8   : > { %1080 = vadd.xlane.f32.xlu0 %v1079_v45 }
 0x8fa   : > { %v3738_v46 = vpop.eup %3737 }
 0x8fb   : > { %v3740_v47 = vpop.eup %3739  ;;  %v1085_v51 = vsel %vm717_vm4, %v3738_v46, 0.0 }
 0x8fc   : > { %1086 = vadd.xlane.f32.xlu1 %v1085_v51  ;;  %v1082_v52 = vsel %vm717_vm4, %v3740_v47, 0.0 }
 0x8fd   : > { %1083 = vadd.xlane.f32.xlu0 %v1082_v52 }
 0x90d   : > { %1096 = vrot.lane.b32.xlu1 %v4012_v15, %s3858_s20 }
 0x911   : > { %1164 = vrot.lane.b32.xlu1 %v4008_v8, %s4608_s23 }
 0x913   : > { %1098 = vrot.lane.b32.xlu0 %v4008_v8, %s3858_s20 }
 0x915   : > { %1162 = vrot.lane.b32.xlu1 %v4012_v15, %s4608_s23 }
 0x917   : > { %1158 = vrot.lane.b32.xlu0 %v4012_v15, %s4606_s24 }
 0x919   : > { %1160 = vrot.lane.b32.xlu1 %v4008_v8, %s4606_s24 }
 0x981   : > { %v1081_v53 = vpop.xlane.xlu0 %1080 }
 0x982   : > { %3741 = vrcp.f32 %v1081_v53 }
 0x985   : > { %v1087_v55 = vpop.xlane.xlu1 %1086 }
 0x986   : > { %v1084_v56 = vpop.xlane.xlu0 %1083  ;;  %3743 = vrcp.f32 %v1087_v55 }
 0x987   : > { %3745 = vrcp.f32 %v1084_v56 }
 0x989   : > { %v1097_v58 = vpop.permute.xlu1 %1096 }
 0x98a   : > { %v1099_v57 = vpop.permute.xlu0 %1098 }
 0x98b   : > { %v1108_v59 = vsel %vm764_vm5, %v1099_v57, 0  ;;  %3601 = vmatprep.subr.msk.bf16.mxu0 %vm764_vm5, %v1099_v57 }
 0x98c   : > { %3418 = vmatpush3.bf16.msra.mxu0 %v1108_v59 }
 0x98d   : > { %3419 = vmatprep.subr.bf16.mxu0 %v1097_v58  ;;  %v1165_v60 = vpop.permute.xlu1 %1164 }
 0x98e   : > { %v1159_v5 = vpop.permute.xlu0 %1158  ;;  %v1176_v6 = vsel %vm650_vm2, %v1165_v60, 0 }
 0x98f   : > { %v3742_v61 = vpop.eup %3741 }
 0x990   : > { %3420 = vmatpush3.bf16.msra.mxu0 %v1097_v58  ;;  %v1091_v1 = vmul.f32 %v3742_v61, %v3736_v44 }
 0x991   : > { %3602 = vmatprep.subr.msk.bf16.mxu0 %vm650_vm2, %v1165_v60  ;;  %v1163_v7 = vpop.permute.xlu1 %1162 }
 0x992   : > { %v1173_v16 = vsel %vm650_vm2, %v1163_v7, 0 }
 0x993   : > { %v3744_v62 = vpop.eup %3743 }
 0x994   : > { %v3746_v63 = vpop.eup %3745  ;;  %v1093_v0 = vmul.f32 %v3744_v62, %v3738_v46 }
 0x995   : > { %v1092_v2 = vmul.f32 %v3746_v63, %v3740_v47  ;;  %v1161_v22 = vpop.permute.xlu1 %1160 }
 0x996   : > { %v1095_v3 = vpack.c.bf16 %v1093_v0, %v1093_v0 }
 0x997   : > { %v1094_v4 = vpack.c.bf16 %v1092_v2, %v1091_v1 }
 0x999   : > { %3421 = vmatprep.mubr.msk.bf16.mxu0 %vm717_vm4, %v1094_v4  ;;  %v3677_v4 = vld [vmem:[%s4589_s4 + $0x8] sm:$0xff]  }
 0x99a   : > { %3422 = vmatmul.mubr.msk.bf16.vlgmr.msra.gmra.mxu0 %vm717_vm4, %v1095_v3 }
 0x99b   : > { %3426 = vmatpush3.bf16.xpose.msra.mxu0 %v1176_v6  ;;  %3429 = vmatprep.mubr.msk.bf16.mxu0 %vm650_vm2, %v1159_v5  ;;  %v3678_v5 = vld [vmem:[%s4589_s4] sm:$0xff]  }
 0x99c   : > { %3603 = vmatprep.subr.msk.bf16.mxu0 %vm650_vm2, %v1163_v7 }
 0x9a3   : > { %3428 = vmatpush3.bf16.xpose.msra.mxu0 %v1173_v16 }
 0x9aa   : > { %3430 = vmatmul.mubr.msk.bf16.vlgmr.msra.gmra.mxu0 %vm650_vm2, %v1161_v22 }
 0xa5a   : > { %v3423_v23 = vpop.f32.mrf.mxu0 }
 0xa5c   : > { %v1144_v24 = vpop.f32.mrf.mxu0 }
 0xa5e   : > { %v3424_v25 = vpop.f32.mrf.mxu0 }
 0xa60   : > { %v1147_v26 = vpop.f32.mrf.mxu0 }
 0xa61   : > { %v3647_v27 = vpack.i.bf16 %v1147_v26, %v1144_v24 }
 0xa6a   : > { %v3431_v28 = vpop.f32.mrf.mxu0 }
 0xa6b   : > { %v1228_v30 = vmul.f32 0.35355338, %v3431_v28 }
 0xa6c   : > { %v1212_v29 = vpop.f32.mrf.mxu0 }
 0xa6d   : > { %v1226_v31 = vmul.f32 0.35355338, %v1212_v29  ;;  %v1231_v37 = vsel %vm503_vm3, %v1228_v30, -1e+30 }
 0xa6e   : > { %v3432_v32 = vpop.f32.mrf.mxu0  ;;  %v1238_v39 = vsel %vm717_vm4, %v1231_v37, -inf }
 0xa6f   : > { %v1229_v33 = vsel %vm503_vm3, %v1226_v31, -1e+30 }
 0xa70   : > { %v1215_v34 = vpop.f32.mrf.mxu0  ;;  %v1232_v35 = vsel %vm717_vm4, %v1229_v33, -inf }
 0xa71   : > { %v1227_v36 = vmul.f32 0.35355338, %v1215_v34  ;;  %1233 = vmax.xlane.f32.xlu0 %v1232_v35 }
 0xa73   : > { %v1230_v38 = vsel %vm503_vm3, %v1227_v36, -1e+30 }
 0xa74   : > { %v1235_v40 = vsel %vm717_vm4, %v1230_v38, -inf }
 0xa75   : > { %1239 = vmax.xlane.f32.xlu0 %v1238_v39  ;;  %1236 = vmax.xlane.f32.xlu1 %v1235_v40 }
 0xafa   : > { %v1234_v41 = vpop.xlane.xlu0 %1233 }
 0xafb   : > { %v1241_v42 = vsub.f32 %v1229_v33, %v1234_v41 }
 0xafd   : > { %v1244_v43 = vmul.f32 1.442695, %v1241_v42 }
 0xafe   : > { %v1240_v44 = vpop.xlane.xlu0 %1239  ;;  %v1237_v45 = vpop.xlane.xlu1 %1236 }
 0xaff   : > { %3747 = vpow2.f32 %v1244_v43  ;;  %v1243_v46 = vsub.f32 %v1231_v37, %v1240_v44  ;;  %v1242_v47 = vsub.f32 %v1230_v38, %v1237_v45 }
 0xb01   : > { %v1248_v51 = vmul.f32 1.442695, %v1243_v46  ;;  %v1246_v52 = vmul.f32 1.442695, %v1242_v47 }
 0xb03   : > { %3749 = vpow2.f32 %v1248_v51 }
 0xb04   : > { %3751 = vpow2.f32 %v1246_v52 }
 0xb0c   : > { %v3748_v53 = vpop.eup %3747 }
 0xb0d   : > { %v1250_v55 = vsel %vm717_vm4, %v3748_v53, 0.0 }
 0xb0e   : > { %1251 = vadd.xlane.f32.xlu0 %v1250_v55 }
 0xb10   : > { %v3750_v56 = vpop.eup %3749 }
 0xb11   : > { %v3752_v57 = vpop.eup %3751  ;;  %v1256_v58 = vsel %vm717_vm4, %v3750_v56, 0.0 }
 0xb12   : > { %1257 = vadd.xlane.f32.xlu1 %v1256_v58  ;;  %v1253_v59 = vsel %vm717_vm4, %v3752_v57, 0.0 }
 0xb13   : > { %1254 = vadd.xlane.f32.xlu0 %v1253_v59 }
 0xb23   : > { %1267 = vrot.lane.b32.xlu1 %v4012_v15, %s4604_s25 }
 0xb27   : > { %3643 = vrot.lane.b32.xlu1 %v3642_v20, %s4600_s26 }
 0xb29   : > { %1269 = vrot.lane.b32.xlu0 %v4008_v8, %s4604_s25 }
 0xb2b   : > { %1336 = vrot.lane.b32.xlu1 %v4101_v9, %s4600_s26  ;;  %s4602_s26 = smov 24  }
 0xb2d   : > { %3648 = vrot.lane.b32.xlu0 %v3647_v27, %s4598_s27 }
 0xb2f   : > { %1348 = vrot.lane.b32.xlu1 %v3423_v23, %s4598_s27  ;;  %s409_s27 = scalar_lea.vmem %s4597_s12, %s4617_s22 }
 0xb97   : > { %v1252_v60 = vpop.xlane.xlu0 %1251 }
 0xb98   : > { %3753 = vrcp.f32 %v1252_v60 }
 0xb9b   : > { %v1258_v15 = vpop.xlane.xlu1 %1257 }
 0xb9c   : > { %v1255_v61 = vpop.xlane.xlu0 %1254  ;;  %3755 = vrcp.f32 %v1258_v15 }
 0xb9d   : > { %3757 = vrcp.f32 %v1255_v61 }
 0xb9f   : > { %v1268_v8 = vpop.permute.xlu1 %1267 }
 0xba0   : > { %v1270_v62 = vpop.permute.xlu0 %1269 }
 0xba1   : > { %v1279_v10 = vsel %vm764_vm5, %v1270_v62, 0  ;;  %3604 = vmatprep.subr.msk.bf16.mxu1 %vm764_vm5, %v1270_v62 }
 0xba2   : > { %3434 = vmatpush3.bf16.msra.mxu1 %v1279_v10 }
 0xba3   : > { %3435 = vmatprep.subr.bf16.mxu1 %v1268_v8  ;;  %v3644_v24 = vpop.permute.xlu1 %3643 }
 0xba4   : > { %v3649_v26 = vpop.permute.xlu0 %3648  ;;  %v3646_v27 = vunpack.i.h.bf16 %v3644_v24  ;;  %v3645_v28 = vunpack.i.l.bf16 %v3644_v24 }
 0xba5   : > { %v3754_v9 = vpop.eup %3753  ;;  %v3651_v30 = vunpack.i.h.bf16 %v3649_v26  ;;  %v3650_v31 = vunpack.i.l.bf16 %v3649_v26 }
 0xba6   : > { %3436 = vmatpush3.bf16.msra.mxu1 %v1268_v8  ;;  %v1262_v0 = vmul.f32 %v3754_v9, %v3748_v53  ;;  %v1366_v32 = vsel %vm650_vm2, %v4065_v17, %v3646_v27  ;;  %v1365_v33 = vsel %vm650_vm2, %v4063_v14, %v3645_v28 }
 0xba7   : > { %3441 = vmatprep.subr.bf16.mxu1 %v3677_v4  ;;  %v1337_v25 = vpop.permute.xlu1 %1336  ;;  %v1369_v41 = vsel %vm1368_vm6, %v1365_v33, %v3650_v31  ;;  %v1370_v42 = vsel %vm1368_vm6, %v1366_v32, %v3651_v30  ;;  %v1505_v33 = vsub.s32 4, %v3988_v48 }
 0xba8   : > { %v1367_v35 = vsel %vm650_vm2, %v4061_v12, %v1337_v25  ;;  %v1452_v12 = vsub.s32 2, %v3988_v48 }
 0xba9   : > { %v3756_v18 = vpop.eup %3755 }
 0xbaa   : > { %v3758_v20 = vpop.eup %3757  ;;  %v1264_v63 = vmul.f32 %v3756_v18, %v3750_v56  ;;  %v1453_v51 = vrot.slane %v3994_v50, %v1452_v12 }
 0xbab   : > { %v1263_v1 = vmul.f32 %v3758_v20, %v3752_v57  ;;  %v1349_v29 = vpop.permute.xlu1 %1348 }
 0xbac   : > { %v1266_v2 = vpack.c.bf16 %v1264_v63, %v1264_v63  ;;  %v1371_v37 = vsel %vm1368_vm6, %v1367_v35, %v1349_v29  ;;  %v1498_v29 = vsub.s32 3, %v3988_v48 }
 0xbad   : > { %v1265_v3 = vpack.c.bf16 %v1263_v1, %v1262_v0 }
 0xbae   : > { %v1499_v32 = vrot.slane %v3994_v50, %v1498_v29 }
 0xbaf   : > { %3437 = vmatprep.mubr.msk.bf16.mxu1 %vm717_vm4, %v1265_v3 }
 0xbb0   : > { %3438 = vmatmul.mubr.msk.bf16.vlgmr.msra.gmra.mxu1 %vm717_vm4, %v1266_v2 }
 0xbb1   : > { %3442 = vmatpush3.bf16.msra.mxu1 %v3677_v4 }
 0xbb2   : > { %3443 = vmatprep.subr.bf16.mxu1 %v3678_v5 }
 0xbb5   : > { %3444 = vmatpush3.bf16.msra.mxu1 %v3678_v5  ;;  %v3679_v5 = vld [vmem:[%s4587_s2 + $0x8] sm:$0xff]  }
 0xbb6   : > { %3449 = vmatprep.subr.bf16.mxu0 %v3679_v5 }
 0xbb7   : > { %3450 = vmatpush3.bf16.msra.mxu0 %v3679_v5 }
 0xc70   : > { %v3439_v6 = vpop.f32.mrf.mxu1 }
 0xc71   : > { %1360 = vrot.lane.b32.xlu1 %v3439_v6, %s4602_s26  ;;  %v3680_v6 = vld [vmem:[%s4587_s2] sm:$0xff]  }
 0xc72   : > { %v1315_v7 = vpop.f32.mrf.mxu1  ;;  %3451 = vmatprep.subr.bf16.mxu0 %v3680_v6 }
 0xc73   : > { %3452 = vmatpush3.bf16.msra.mxu0 %v3680_v6 }
 0xc74   : > { %v3440_v16 = vpop.f32.mrf.mxu1 }
 0xc76   : > { %v1318_v22 = vpop.f32.mrf.mxu1 }
 0xc77   : > { %v3652_v23 = vpack.i.bf16 %v1318_v22, %v1315_v7 }
 0xc79   : > { %3653 = vrot.lane.b32.xlu0 %v3652_v23, %s4602_s26  ;;  %s4615_s26 = smov 24  }
 0xce3   : > { %v1361_v34 = vpop.permute.xlu1 %1360 }
 0xce4   : > { %v1374_v40 = vsel %vm717_vm4, %v1371_v37, %v1361_v34 }
 0xce5   : > { %v1380_v44 = vpack.c.bf16 %v1374_v40, %v1374_v40 }
 0xceb   : > { %v3654_v36 = vpop.permute.xlu0 %3653 }
 0xcec   : > { %v3656_v38 = vunpack.i.h.bf16 %v3654_v36  ;;  %v3655_v39 = vunpack.i.l.bf16 %v3654_v36 }
 0xcee   : > { %v1372_v17 = vsel %vm717_vm4, %v1369_v41, %v3655_v39  ;;  %v1373_v14 = vsel %vm717_vm4, %v1370_v42, %v3656_v38  ;;  %v1506_v38 = vrot.slane %v3994_v50, %v1505_v33  ;;  %v3682_v50 = vld [vmem:[%s4588_s3 + $0x30] sm:$0xff]  }
 0xcef   : > { %v1379_v43 = vpack.c.bf16 %v1373_v14, %v1372_v17 }
 0xcf1   : > { %3445 = vmatprep.mubr.msk.bf16.mxu1 %vm505_vm1, %v1379_v43 }
 0xcf2   : > { %3446 = vmatmul.mubr.msk.bf16.vlgmr.msra.gmra.mxu1 %vm505_vm1, %v1380_v44 }
 0xdb2   : > { %v3447_v45 = vpop.f32.mrf.mxu1 }
 0xdb3   : > { %v1449_v47 = vadd.f32 %v3447_v45, %v3961_v11  ;;  %v3681_v45 = vld [vmem:[%s4588_s3 + $0x38] sm:$0xff]  }
 0xdb4   : > { %v1433_v46 = vpop.f32.mrf.mxu1  ;;  %3457 = vmatprep.subr.bf16.mxu1 %v3681_v45 }
 0xdb5   : > { %v1447_v52 = vadd.f32 %v1433_v46, %v3963_v13  ;;  %v4201_v57 = vadd.f32 %v1453_v51, %v1449_v47  ;;  %3458 = vmatpush3.bf16.msra.mxu1 %v3681_v45  ;;  %v3683_v46 = vld [vmem:[%s4588_s3 + $0x28] sm:$0xff]   ;;  %v3684_v47 = vld [vmem:[%s4588_s3 + $0x20] sm:$0xff]  }
 0xdb6   : > { %v3448_v53 = vpop.f32.mrf.mxu1  ;;  %3459 = vmatprep.subr.bf16.mxu1 %v3682_v50 }
 0xdb7   : > { %v4199_v55 = vadd.f32 %v1453_v51, %v1447_v52  ;;  %v1463_v11 = vsel %vm505_vm1, %v4201_v57, 0.0  ;;  %v3686_v52 = vld [vmem:[%s4588_s3 + $0x10] sm:$0xff]   ;;  %v3687_v53 = vld [vmem:[%s4588_s3 + $0x8] sm:$0xff]  }
 0xdb8   : > { %v1436_v56 = vpop.f32.mrf.mxu1 }
 0xdb9   : > { %v1448_v58 = vadd.f32 %v1436_v56, %v3972_v19  ;;  %v1457_v59 = vsel %vm505_vm1, %v4199_v55, 0.0  ;;  %3460 = vmatpush3.bf16.msra.mxu1 %v3682_v50  ;;  %v3688_v56 = vld [vmem:[%s4588_s3] sm:$0xff]  }
 0xdba   : > { %1458 = vadd.xlane.f32.xlu0 %v1457_v59  ;;  %3461 = vmatprep.subr.bf16.mxu1 %v3683_v46 }
 0xdbb   : > { %v4206_v60 = vadd.f32 %v1453_v51, %v1448_v58  ;;  %v3685_v51 = vld [vmem:[%s4588_s3 + $0x18] sm:$0xff]   ;;  %v3158_v58 = vld [vmem:[%s4586_s1] ss:$0 sm:$0xff] }
 0xdbd   : > { %v1460_v13 = vsel %vm505_vm1, %v4206_v60, 0.0  ;;  %3462 = vmatpush3.bf16.msra.mxu1 %v3683_v46 }
 0xdbe   : > { %1464 = vadd.xlane.f32.xlu0 %v1463_v11  ;;  %1461 = vadd.xlane.f32.xlu1 %v1460_v13 }
 0xdbf   : > { %3463 = vmatprep.subr.bf16.mxu1 %v3684_v47 }
 0xdc1   : > { %3464 = vmatpush3.bf16.msra.mxu1 %v3684_v47 }
 0xdc2   : > { %3465 = vmatprep.subr.bf16.mxu1 %v3685_v51 }
 0xdc5   : > { %3466 = vmatpush3.bf16.msra.mxu1 %v3685_v51 }
 0xdc6   : > { %3467 = vmatprep.subr.bf16.mxu1 %v3686_v52 }
 0xdc9   : > { %3468 = vmatpush3.bf16.msra.mxu1 %v3686_v52 }
 0xdca   : > { %3469 = vmatprep.subr.bf16.mxu1 %v3687_v53 }
 0xdcd   : > { %3470 = vmatpush3.bf16.msra.mxu1 %v3687_v53 }
 0xdce   : > { %3471 = vmatprep.subr.bf16.mxu1 %v3688_v56 }
 0xdd1   : > { %3472 = vmatpush3.bf16.msra.mxu1 %v3688_v56 }
 0xe43   : > { %v1459_v15 = vpop.xlane.xlu0 %1458 }
 0xe44   : > { %v1466_v61 = vmul.f32 0.03125, %v1459_v15 }
 0xe46   : > { %v1469_v62 = vsub.f32 %v4199_v55, %v1466_v61 }
 0xe47   : > { %v1465_v10 = vpop.xlane.xlu0 %1464  ;;  %v1462_v19 = vpop.xlane.xlu1 %1461 }
 0xe48   : > { %v1468_v8 = vmul.f32 0.03125, %v1465_v10  ;;  %v1467_v9 = vmul.f32 0.03125, %v1462_v19  ;;  %v1472_v18 = vmul.f32 %v1469_v62, %v1469_v62 }
 0xe4a   : > { %v1471_v20 = vsub.f32 %v4201_v57, %v1468_v8  ;;  %v1470_v63 = vsub.f32 %v4206_v60, %v1467_v9  ;;  %v1475_v0 = vsel %vm505_vm1, %v1472_v18, 0.0 }
 0xe4b   : > { %1476 = vadd.xlane.f32.xlu0 %v1475_v0 }
 0xe4c   : > { %v1474_v1 = vmul.f32 %v1471_v20, %v1471_v20  ;;  %v1473_v2 = vmul.f32 %v1470_v63, %v1470_v63 }
 0xe4e   : > { %v1481_v3 = vsel %vm505_vm1, %v1474_v1, 0.0  ;;  %v1478_v4 = vsel %vm505_vm1, %v1473_v2, 0.0 }
 0xe4f   : > { %1482 = vadd.xlane.f32.xlu1 %v1481_v3  ;;  %1479 = vadd.xlane.f32.xlu0 %v1478_v4 }
 0xed4   : > { %v1477_v7 = vpop.xlane.xlu0 %1476 }
 0xed5   : > { %v1484_v16 = vmul.f32 0.03125, %v1477_v7 }
 0xed7   : > { %v1487_v22 = vadd.f32 1e-05, %v1484_v16 }
 0xed8   : > { %v1480_v23 = vpop.xlane.xlu0 %1479  ;;  %v1483_v24 = vpop.xlane.xlu1 %1482 }
 0xed9   : > { %3759 = vrsqrt.f32 %v1487_v22  ;;  %v1485_v25 = vmul.f32 0.03125, %v1480_v23  ;;  %v1486_v26 = vmul.f32 0.03125, %v1483_v24 }
 0xedb   : > { %v1488_v27 = vadd.f32 1e-05, %v1485_v25  ;;  %v1489_v28 = vadd.f32 1e-05, %v1486_v26 }
 0xedd   : > { %3761 = vrsqrt.f32 %v1488_v27 }
 0xede   : > { %3763 = vrsqrt.f32 %v1489_v28 }
 0xee6   : > { %v3760_v30 = vpop.eup %3759 }
 0xee7   : > { %v1493_v31 = vmul.f32 %v3760_v30, %v1469_v62 }
 0xee9   : > { %v1500_v37 = vmul.f32 %v1499_v32, %v1493_v31 }
 0xeea   : > { %v3762_v34 = vpop.eup %3761 }
 0xeeb   : > { %v3764_v35 = vpop.eup %3763  ;;  %v1494_v36 = vmul.f32 %v3762_v34, %v1470_v63  ;;  %v1507_v42 = vadd.f32 %v1506_v38, %v1500_v37 }
 0xeec   : > { %v1495_v39 = vmul.f32 %v3764_v35, %v1471_v20 }
 0xeed   : > { %v1501_v40 = vmul.f32 %v1499_v32, %v1494_v36 }
 0xeee   : > { %v1502_v41 = vmul.f32 %v1499_v32, %v1495_v39 }
 0xeef   : > { %v1508_v17 = vadd.f32 %v1506_v38, %v1501_v40 }
 0xef0   : > { %v1509_v14 = vadd.f32 %v1506_v38, %v1502_v41  ;;  %v1738_v38 = vsub.s32 5, %v3988_v48  ;;  %v3703_v48 = vld [vmem:[%s4593_s8 + $0x8] sm:$0xff]  }
 0xef1   : > { %v1514_v43 = vpack.c.bf16 %v1508_v17, %v1507_v42  ;;  %v3841_v42 = vld [vmem:[%s4592_s7] sm:$0x3f] }
 0xef2   : > { %v1515_v44 = vpack.c.bf16 %v1509_v14, %v1509_v14  ;;  %v1739_v17 = vrot.slane %v3841_v42, %v1738_v38 }
 0xef3   : > { %3453 = vmatprep.mubr.msk.bf16.mxu0 %vm505_vm1, %v1514_v43 }
 0xef4   : > { %3454 = vmatmul.mubr.msk.bf16.vlgmr.msra.gmra.mxu0 %vm505_vm1, %v1515_v44 }
 0xfb4   : > { %v3455_v59 = vpop.f32.mrf.mxu0 }
 0xfb5   : > { %v1591_v11 = vadd.f32 %v3455_v59, %v3158_v58 }
 0xfb6   : > { %v1568_v13 = vpop.f32.mrf.mxu0 }
 0xfb7   : > { %v1594_v15 = vmul.f32 %v1591_v11, %v1591_v11  ;;  %v1589_v61 = vadd.f32 %v3158_v58, %v1568_v13 }
 0xfb8   : > { %v3456_v62 = vpop.f32.mrf.mxu0 }
 0xfb9   : > { %v1597_v10 = vmul.f32 %v1594_v15, %v1591_v11  ;;  %v1592_v19 = vmul.f32 %v1589_v61, %v1589_v61 }
 0xfba   : > { %v1571_v8 = vpop.f32.mrf.mxu0 }
 0xfbb   : > { %v1600_v9 = vmul.f32 0.044715, %v1597_v10  ;;  %v1595_v18 = vmul.f32 %v1592_v19, %v1589_v61  ;;  %v1590_v20 = vadd.f32 %v3158_v58, %v1571_v8 }
 0xfbd   : > { %v1603_v63 = vadd.f32 %v1600_v9, %v1591_v11  ;;  %v1598_v0 = vmul.f32 0.044715, %v1595_v18  ;;  %v1593_v1 = vmul.f32 %v1590_v20, %v1590_v20  ;;  %v3689_v18 = vld [vmem:[%s4591_s6 + $0x18] sm:$0xff]  }
 0xfbe   : > { %3477 = vmatprep.subr.bf16.mxu0 %v3689_v18 }
 0xfbf   : > { %v1606_v2 = vmul.f32 0.7978846, %v1603_v63  ;;  %v1601_v3 = vadd.f32 %v1598_v0, %v1589_v61  ;;  %v1596_v4 = vmul.f32 %v1593_v1, %v1590_v20  ;;  %3478 = vmatpush3.bf16.msra.mxu0 %v3689_v18 }
 0xfc1   : > { %3765 = vtanh.f32 %v1606_v2  ;;  %v1604_v5 = vmul.f32 0.7978846, %v1601_v3  ;;  %v1599_v6 = vmul.f32 0.044715, %v1596_v4 }
 0xfc3   : > { %3767 = vtanh.f32 %v1604_v5  ;;  %v1602_v7 = vadd.f32 %v1599_v6, %v1590_v20 }
 0xfc5   : > { %v1605_v16 = vmul.f32 0.7978846, %v1602_v7 }
 0xfc7   : > { %3769 = vtanh.f32 %v1605_v16  ;;  %v4297_v16 = vld [vmem:[%s4592_s7 + $0x8] sm:$0x3f] }
 0xfce   : > { %v3766_v22 = vpop.eup %3765 }
 0xfcf   : > { %v1612_v24 = vadd.f32 1.0, %v3766_v22 }
 0xfd0   : > { %v3768_v23 = vpop.eup %3767 }
 0xfd1   : > { %v1610_v25 = vadd.f32 1.0, %v3768_v23  ;;  %v1615_v27 = vmul.f32 0.5, %v1612_v24  ;;  %v1787_v24 = vrot.slane %v4297_v16, %v548_v49  ;;  %v3177_v49 = vld [vmem:[%s4590_s5 + $0x1] ss:$0 sm:$0xff] }
 0xfd3   : > { %v1613_v30 = vmul.f32 0.5, %v1610_v25  ;;  %v1618_v32 = vmul.f32 %v1615_v27, %v1591_v11 }
 0xfd4   : > { %v3770_v26 = vpop.eup %3769 }
 0xfd5   : > { %v1611_v28 = vadd.f32 1.0, %v3770_v26  ;;  %v1616_v34 = vmul.f32 %v1613_v30, %v1589_v61  ;;  %v1636_v37 = vpack.c.bf16 %v1618_v32, %v1618_v32  ;;  %v1794_v30 = vrot.slane %v4297_v16, %v555_v54 }
 0xfd7   : > { %v1614_v31 = vmul.f32 0.5, %v1611_v28 }
 0xfd9   : > { %v1617_v35 = vmul.f32 %v1614_v31, %v1590_v20  ;;  %v3690_v20 = vld [vmem:[%s4591_s6 + $0x10] sm:$0xff]  }
 0xfda   : > { %3479 = vmatprep.subr.bf16.mxu0 %v3690_v20 }
 0xfdb   : > { %v1635_v36 = vpack.c.bf16 %v1617_v35, %v1616_v34  ;;  %3480 = vmatpush3.bf16.msra.mxu0 %v3690_v20 }
 0xfdd   : > { %3473 = vmatprep.mubr.bf16.mxu1 %v1635_v36 }
 0xfde   : > { %3474 = vmatmul.mubr.bf16.vlgmr.msra.gmra.mxu1 %v1636_v37 }
0x109e   : > { %v3475_v39 = vpop.f32.mrf.mxu1 }
0x109f   : > { %v1735_v41 = vadd.f32 %v3475_v39, %v4201_v57 }
0x10a0   : > { %v1719_v40 = vpop.f32.mrf.mxu1 }
0x10a1   : > { %v1733_v14 = vadd.f32 %v1719_v40, %v4199_v55  ;;  %v4271_v50 = vadd.f32 %v1739_v17, %v1735_v41 }
0x10a2   : > { %v3476_v43 = vpop.f32.mrf.mxu1 }
0x10a3   : > { %v4269_v44 = vadd.f32 %v1739_v17, %v1733_v14  ;;  %v1751_v51 = vsel %vm505_vm1, %v4271_v50, 0.0 }
0x10a4   : > { %v1722_v45 = vpop.f32.mrf.mxu1 }
0x10a5   : > { %v1734_v46 = vadd.f32 %v1722_v45, %v4206_v60  ;;  %v1745_v57 = vsel %vm505_vm1, %v4269_v44, 0.0 }
0x10a6   : > { %1746 = vadd.xlane.f32.xlu0 %v1745_v57 }
0x10a7   : > { %v4276_v47 = vadd.f32 %v1739_v17, %v1734_v46 }
0x10a9   : > { %v1748_v55 = vsel %vm505_vm1, %v4276_v47, 0.0 }
0x10aa   : > { %1752 = vadd.xlane.f32.xlu0 %v1751_v51  ;;  %1749 = vadd.xlane.f32.xlu1 %v1748_v55 }
0x112f   : > { %v1747_v52 = vpop.xlane.xlu0 %1746 }
0x1130   : > { %v1754_v53 = vmul.f32 0.03125, %v1747_v52 }
0x1132   : > { %v1757_v56 = vsub.f32 %v4269_v44, %v1754_v53 }
0x1133   : > { %v1753_v58 = vpop.xlane.xlu0 %1752  ;;  %v1750_v60 = vpop.xlane.xlu1 %1749 }
0x1134   : > { %v1756_v59 = vmul.f32 0.03125, %v1753_v58  ;;  %v1755_v11 = vmul.f32 0.03125, %v1750_v60  ;;  %v1760_v13 = vmul.f32 %v1757_v56, %v1757_v56 }
0x1136   : > { %v1759_v15 = vsub.f32 %v4271_v50, %v1756_v59  ;;  %v1758_v61 = vsub.f32 %v4276_v47, %v1755_v11  ;;  %v1763_v62 = vsel %vm505_vm1, %v1760_v13, 0.0 }
0x1137   : > { %1764 = vadd.xlane.f32.xlu1 %v1763_v62 }
0x1138   : > { %v1762_v10 = vmul.f32 %v1759_v15, %v1759_v15  ;;  %v1761_v19 = vmul.f32 %v1758_v61, %v1758_v61 }
0x113a   : > { %v1769_v8 = vsel %vm505_vm1, %v1762_v10, 0.0  ;;  %v1766_v9 = vsel %vm505_vm1, %v1761_v19, 0.0 }
0x113b   : > { %1770 = vadd.xlane.f32.xlu1 %v1769_v8  ;;  %1767 = vadd.xlane.f32.xlu0 %v1766_v9 }
0x11c0   : > { %v1765_v63 = vpop.xlane.xlu1 %1764 }
0x11c1   : > { %v1772_v0 = vmul.f32 0.03125, %v1765_v63 }
0x11c3   : > { %v1775_v1 = vadd.f32 1e-05, %v1772_v0 }
0x11c4   : > { %v1768_v2 = vpop.xlane.xlu0 %1767  ;;  %v1771_v3 = vpop.xlane.xlu1 %1770 }
0x11c5   : > { %3771 = vrsqrt.f32 %v1775_v1  ;;  %v1773_v4 = vmul.f32 0.03125, %v1768_v2  ;;  %v1774_v5 = vmul.f32 0.03125, %v1771_v3 }
0x11c7   : > { %v1776_v6 = vadd.f32 1e-05, %v1773_v4  ;;  %v1777_v7 = vadd.f32 1e-05, %v1774_v5 }
0x11c9   : > { %3773 = vrsqrt.f32 %v1776_v6 }
0x11ca   : > { %3775 = vrsqrt.f32 %v1777_v7 }
0x11d2   : > { %v3772_v22 = vpop.eup %3771 }
0x11d3   : > { %v1781_v23 = vmul.f32 %v3772_v22, %v1757_v56 }
0x11d5   : > { %v1788_v28 = vmul.f32 %v1787_v24, %v1781_v23 }
0x11d6   : > { %v3774_v25 = vpop.eup %3773 }
0x11d7   : > { %v3776_v26 = vpop.eup %3775  ;;  %v1782_v27 = vmul.f32 %v3774_v25, %v1758_v61  ;;  %v1795_v35 = vadd.f32 %v1794_v30, %v1788_v28 }
0x11d8   : > { %v1783_v31 = vmul.f32 %v3776_v26, %v1759_v15 }
0x11d9   : > { %v1789_v32 = vmul.f32 %v1787_v24, %v1782_v27 }
0x11da   : > { %v1790_v34 = vmul.f32 %v1787_v24, %v1783_v31 }
0x11db   : > { %v1796_v36 = vadd.f32 %v1794_v30, %v1789_v32 }
0x11dc   : > { %v1797_v37 = vadd.f32 %v1794_v30, %v1790_v34 }
0x11dd   : > { %v1803_v39 = vpack.c.bf16 %v1796_v36, %v1795_v35 }
0x11de   : > { %v1804_v40 = vpack.c.bf16 %v1797_v37, %v1797_v37 }
0x11df   : > { %3481 = vmatprep.mubr.msk.bf16.mxu0 %vm505_vm1, %v1803_v39 }
0x11e0   : > { %3482 = vmatmul.mubr.msk.bf16.vlgmr.msra.gmra.mxu0 %vm505_vm1, %v1804_v40 }
0x12a0   : > { %v3483_v41 = vpop.f32.mrf.mxu0 }
0x12a1   : > { %v1881_v42 = vadd.f32 %v3483_v41, %v3177_v49 }
0x12a2   : > { %v1857_v17 = vpop.f32.mrf.mxu0 }
0x12a3   : > { %v4310_v54 = vpack.c.bf16 %v1881_v42, %v1881_v42  ;;  %v1879_v45 = vadd.f32 %v3177_v49, %v1857_v17 }
0x12a4   : > { %v3484_v14 = vpop.f32.mrf.mxu0 }
0x12a5   : > { %1888 = vrot.lane.b32.xlu0 %v4310_v54, %s3851_s13 }
0x12a6   : > { %v1860_v43 = vpop.f32.mrf.mxu0 }
0x12a7   : > { %v1880_v46 = vadd.f32 %v3177_v49, %v1860_v43 }
0x12a9   : > { %v4314_v57 = vpack.c.bf16 %v1880_v46, %v1879_v45 }
0x12ab   : > { %2053 = vrot.lane.b32.xlu0 %v4314_v57, %s3853_s15  ;;  %1886 = vrot.lane.b32.xlu1 %v4314_v57, %s3851_s13  ;;  %s4610_s13 = smov 72  }
0x12ac   : > { %3489 = vmatprep.mubr.msk.bf16.mxu0 %vm650_vm2, %v4314_v57 }
0x12af   : > { %2059 = vrot.lane.b32.xlu1 %v4310_v54, %s3854_s16 }
0x12b3   : > { %2057 = vrot.lane.b32.xlu1 %v4314_v57, %s3854_s16  ;;  %s4613_s16 = smov 8  }
0x12b7   : > { %2055 = vrot.lane.b32.xlu1 %v4310_v54, %s3853_s15  ;;  %s4612_s15 = smov 40  }
0x1317   : > { %v1889_v51 = vpop.permute.xlu0 %1888 }
0x1318   : > { %v1900_v55 = vsel %vm650_vm2, %v1889_v51, 0  ;;  %3605 = vmatprep.subr.msk.bf16.mxu0 %vm650_vm2, %v1889_v51 }
0x1319   : > { %3486 = vmatpush3.bf16.xpose.msra.mxu0 %v1900_v55 }
0x131d   : > { %v2054_v52 = vpop.permute.xlu0 %2053  ;;  %v1887_v53 = vpop.permute.xlu1 %1886 }
0x131e   : > { %3606 = vmatprep.subr.msk.bf16.mxu0 %vm650_vm2, %v1887_v53  ;;  %3505 = vmatprep.mubr.msk.bf16.mxu1 %vm650_vm2, %v2054_v52  ;;  %v1897_v56 = vsel %vm650_vm2, %v1887_v53, 0 }
0x1321   : > { %3488 = vmatpush3.bf16.xpose.msra.mxu0 %v1897_v56  ;;  %v2060_v58 = vpop.permute.xlu1 %2059 }
0x1322   : > { %v2071_v60 = vsel %vm650_vm2, %v2060_v58, 0  ;;  %3608 = vmatprep.subr.msk.bf16.mxu1 %vm650_vm2, %v2060_v58 }
0x1323   : > { %3502 = vmatpush3.bf16.xpose.msra.mxu1 %v2071_v60 }
0x1325   : > { %v2058_v59 = vpop.permute.xlu1 %2057 }
0x1326   : > { %3609 = vmatprep.subr.msk.bf16.mxu1 %vm650_vm2, %v2058_v59  ;;  %v2068_v11 = vsel %vm650_vm2, %v2058_v59, 0 }
0x1328   : > { %3490 = vmatmul.mubr.msk.bf16.vlgmr.msra.gmra.mxu0 %vm650_vm2, %v4310_v54 }
0x1329   : > { %v2056_v13 = vpop.permute.xlu1 %2055 }
0x132b   : > { %3504 = vmatpush3.bf16.xpose.msra.mxu1 %v2068_v11 }
0x1332   : > { %3506 = vmatmul.mubr.msk.bf16.vlgmr.msra.gmra.mxu1 %vm650_vm2, %v2056_v13 }
0x13e8   : > { %v3491_v15 = vpop.f32.mrf.mxu0 }
0x13e9   : > { %v1952_v62 = vmul.f32 0.35355338, %v3491_v15 }
0x13ea   : > { %v1936_v61 = vpop.f32.mrf.mxu0 }
0x13eb   : > { %v1950_v10 = vmul.f32 0.35355338, %v1936_v61  ;;  %v1955_v63 = vsel %vm503_vm3, %v1952_v62, -1e+30 }
0x13ec   : > { %v3492_v19 = vpop.f32.mrf.mxu0  ;;  %v1962_v2 = vsel %vm717_vm4, %v1955_v63, -inf }
0x13ed   : > { %v1953_v8 = vsel %vm503_vm3, %v1950_v10, -1e+30 }
0x13ee   : > { %v1939_v9 = vpop.f32.mrf.mxu0  ;;  %v1956_v18 = vsel %vm717_vm4, %v1953_v8, -inf }
0x13ef   : > { %v1951_v20 = vmul.f32 0.35355338, %v1939_v9  ;;  %1957 = vmax.xlane.f32.xlu0 %v1956_v18 }
0x13f1   : > { %v1954_v0 = vsel %vm503_vm3, %v1951_v20, -1e+30 }
0x13f2   : > { %v3507_v1 = vpop.f32.mrf.mxu1  ;;  %v1959_v3 = vsel %vm717_vm4, %v1954_v0, -inf }
0x13f3   : > { %v2123_v4 = vmul.f32 0.35355338, %v3507_v1  ;;  %1963 = vmax.xlane.f32.xlu0 %v1962_v2  ;;  %1960 = vmax.xlane.f32.xlu1 %v1959_v3 }
0x13f4   : > { %v2107_v5 = vpop.f32.mrf.mxu1 }
0x13f5   : > { %v2121_v6 = vmul.f32 0.35355338, %v2107_v5  ;;  %v2126_v7 = vsel %vm503_vm3, %v2123_v4, -1e+30 }
0x13f6   : > { %v3508_v22 = vpop.f32.mrf.mxu1  ;;  %v2133_v23 = vsel %vm717_vm4, %v2126_v7, -inf }
0x13f7   : > { %2134 = vmax.xlane.f32.xlu1 %v2133_v23  ;;  %v2124_v24 = vsel %vm503_vm3, %v2121_v6, -1e+30 }
0x13f8   : > { %v2110_v25 = vpop.f32.mrf.mxu1  ;;  %v2127_v26 = vsel %vm717_vm4, %v2124_v24, -inf }
0x13f9   : > { %v2122_v27 = vmul.f32 0.35355338, %v2110_v25  ;;  %2128 = vmax.xlane.f32.xlu0 %v2127_v26 }
0x13fb   : > { %v2125_v28 = vsel %vm503_vm3, %v2122_v27, -1e+30 }
0x13fc   : > { %v2130_v30 = vsel %vm717_vm4, %v2125_v28, -inf }
0x13fd   : > { %2131 = vmax.xlane.f32.xlu0 %v2130_v30 }
0x1478   : > { %v1958_v31 = vpop.xlane.xlu0 %1957 }
0x1479   : > { %v1965_v32 = vsub.f32 %v1953_v8, %v1958_v31 }
0x147b   : > { %v1968_v37 = vmul.f32 1.442695, %v1965_v32 }
0x147c   : > { %v1964_v34 = vpop.xlane.xlu0 %1963  ;;  %v1961_v35 = vpop.xlane.xlu1 %1960 }
0x147d   : > { %v1967_v36 = vsub.f32 %v1955_v63, %v1964_v34  ;;  %v1966_v58 = vsub.f32 %v1954_v0, %v1961_v35 }
0x147f   : > { %v1972_v39 = vmul.f32 1.442695, %v1967_v36  ;;  %v1970_v59 = vmul.f32 1.442695, %v1966_v58 }
0x1480   : > { %v2135_v40 = vpop.xlane.xlu1 %2134 }
0x1481   : > { %3777 = vpow2.f32 %v1972_v39  ;;  %v2138_v49 = vsub.f32 %v2126_v7, %v2135_v40 }
0x1482   : > { %3779 = vpow2.f32 %v1968_v37  ;;  %v2129_v51 = vpop.xlane.xlu0 %2128 }
0x1483   : > { %v2143_v41 = vmul.f32 1.442695, %v2138_v49  ;;  %v2136_v53 = vsub.f32 %v2124_v24, %v2129_v51 }
0x1485   : > { %3781 = vpow2.f32 %v2143_v41  ;;  %v2139_v60 = vmul.f32 1.442695, %v2136_v53 }
0x1486   : > { %v2132_v55 = vpop.xlane.xlu0 %2131 }
0x1487   : > { %v2137_v52 = vsub.f32 %v2125_v28, %v2132_v55 }
0x1489   : > { %v2141_v56 = vmul.f32 1.442695, %v2137_v52 }
0x148b   : > { %3783 = vpow2.f32 %v2141_v56 }
0x148c   : > { %3785 = vpow2.f32 %v2139_v60 }
0x148d   : > { %3787 = vpow2.f32 %v1970_v59 }
0x148e   : > { %v4358_v42 = vpop.eup %3777 }
0x148f   : > { %v1980_v17 = vsel %vm717_vm4, %v4358_v42, 0.0  ;;  %v3780_v14 = vpop.eup %3779 }
0x1490   : > { %1981 = vadd.xlane.f32.xlu0 %v1980_v17  ;;  %v1974_v45 = vsel %vm717_vm4, %v3780_v14, 0.0 }
0x1492   : > { %v4362_v43 = vpop.eup %3781 }
0x1493   : > { %v2151_v46 = vsel %vm717_vm4, %v4362_v43, 0.0 }
0x1494   : > { %1975 = vadd.xlane.f32.xlu0 %v1974_v45  ;;  %2152 = vadd.xlane.f32.xlu1 %v2151_v46 }
0x1498   : > { %v3784_v11 = vpop.eup %3783 }
0x1499   : > { %v2148_v13 = vsel %vm717_vm4, %v3784_v11, 0.0  ;;  %v3786_v15 = vpop.eup %3785 }
0x149a   : > { %v2145_v61 = vsel %vm717_vm4, %v3786_v15, 0.0  ;;  %v3788_v62 = vpop.eup %3787 }
0x149b   : > { %v1977_v10 = vsel %vm717_vm4, %v3788_v62, 0.0 }
0x14a5   : > { %1991 = vrot.lane.b32.xlu1 %v4314_v57, %s3852_s14 }
0x14a9   : > { %2164 = vrot.lane.b32.xlu1 %v4310_v54, %s3855_s17 }
0x14aa   : > { %1993 = vrot.lane.b32.xlu0 %v4310_v54, %s3852_s14  ;;  %s4611_s14 = smov 104  }
0x14c9   : > { %2149 = vadd.xlane.f32.xlu0 %v2148_v13 }
0x14cd   : > { %2146 = vadd.xlane.f32.xlu1 %v2145_v61 }
0x14d1   : > { %1978 = vadd.xlane.f32.xlu1 %v1977_v10 }
0x14df   : > { %2230 = vrot.lane.b32.xlu0 %v4310_v54, %s3856_s18 }
0x14e2   : > { %2162 = vrot.lane.b32.xlu1 %v4314_v57, %s3855_s17  ;;  %s4614_s17 = smov 16  }
0x14e3   : > { %2224 = vrot.lane.b32.xlu0 %v4314_v57, %s3857_s19 }
0x14e6   : > { %2228 = vrot.lane.b32.xlu1 %v4314_v57, %s3856_s18 }
0x14ea   : > { %2226 = vrot.lane.b32.xlu1 %v4310_v54, %s3857_s19 }
0x1519   : > { %v1982_v19 = vpop.xlane.xlu0 %1981 }
0x151a   : > { %3789 = vrcp.f32 %v1982_v19 }
0x151d   : > { %v1976_v8 = vpop.xlane.xlu0 %1975  ;;  %v2153_v9 = vpop.xlane.xlu1 %2152 }
0x151e   : > { %3791 = vrcp.f32 %v1976_v8 }
0x1521   : > { %v1994_v18 = vpop.permute.xlu0 %1993  ;;  %v1992_v20 = vpop.permute.xlu1 %1991 }
0x1522   : > { %v2003_v63 = vsel %vm764_vm5, %v1994_v18, 0  ;;  %3607 = vmatprep.subr.msk.bf16.mxu0 %vm764_vm5, %v1994_v18 }
0x1523   : > { %3494 = vmatpush3.bf16.msra.mxu0 %v2003_v63 }
0x1524   : > { %3495 = vmatprep.subr.bf16.mxu0 %v1992_v20 }
0x1525   : > { %v2165_v0 = vpop.permute.xlu1 %2164 }
0x1526   : > { %v2174_v34 = vsel %vm764_vm5, %v2165_v0, 0 }
0x1527   : > { %3496 = vmatpush3.bf16.msra.mxu0 %v1992_v20  ;;  %v3790_v4 = vpop.eup %3789 }
0x1528   : > { %3610 = vmatprep.subr.msk.bf16.mxu0 %vm764_vm5, %v2165_v0  ;;  %v1988_v23 = vmul.f32 %v3790_v4, %v4358_v42 }
0x152a   : > { %v1990_v30 = vpack.c.bf16 %v1988_v23, %v1988_v23 }
0x152b   : > { %v3792_v5 = vpop.eup %3791 }
0x152c   : > { %v1986_v24 = vmul.f32 %v3792_v5, %v3780_v14 }
0x1552   : > { %v2150_v2 = vpop.xlane.xlu0 %2149 }
0x1556   : > { %v2147_v1 = vpop.xlane.xlu1 %2146  ;;  %v2231_v36 = vpop.permute.xlu0 %2230 }
0x1557   : > { %3793 = vrcp.f32 %v2147_v1  ;;  %v2242_v40 = vsel %vm650_vm2, %v2231_v36, 0 }
0x1558   : > { %3795 = vrcp.f32 %v2150_v2 }
0x155a   : > { %v1979_v3 = vpop.xlane.xlu1 %1978  ;;  %v2225_v49 = vpop.permute.xlu0 %2224 }
0x155b   : > { %3797 = vrcp.f32 %v1979_v3 }
0x155c   : > { %3799 = vrcp.f32 %v2153_v9 }
0x155e   : > { %v2163_v35 = vpop.permute.xlu1 %2162 }
0x1562   : > { %v2229_v41 = vpop.permute.xlu1 %2228 }
0x1563   : > { %v2239_v42 = vsel %vm650_vm2, %v2229_v41, 0 }
0x1564   : > { %v3794_v6 = vpop.eup %3793 }
0x1565   : > { %v3796_v7 = vpop.eup %3795  ;;  %v2157_v26 = vmul.f32 %v3794_v6, %v3786_v15 }
0x1566   : > { %v2158_v28 = vmul.f32 %v3796_v7, %v3784_v11  ;;  %v2227_v17 = vpop.permute.xlu1 %2226 }
0x1568   : > { %v3798_v22 = vpop.eup %3797  ;;  %v2160_v32 = vpack.c.bf16 %v2158_v28, %v2157_v26 }
0x1569   : > { %v1987_v25 = vmul.f32 %v3798_v22, %v3788_v62  ;;  %v3800_v31 = vpop.eup %3799 }
0x156a   : > { %v2159_v37 = vmul.f32 %v3800_v31, %v4362_v43 }
0x156b   : > { %v1989_v27 = vpack.c.bf16 %v1987_v25, %v1986_v24 }
0x156c   : > { %v2161_v39 = vpack.c.bf16 %v2159_v37, %v2159_v37 }
0x156d   : > { %3497 = vmatprep.mubr.msk.bf16.mxu0 %vm717_vm4, %v1989_v27 }
0x156e   : > { %3498 = vmatmul.mubr.msk.bf16.vlgmr.msra.gmra.mxu0 %vm717_vm4, %v1990_v30 }
0x156f   : > { %3510 = vmatpush3.bf16.msra.mxu0 %v2174_v34  ;;  %3513 = vmatprep.mubr.msk.bf16.mxu0 %vm717_vm4, %v2160_v32 }
0x1570   : > { %3511 = vmatprep.subr.bf16.mxu0 %v2163_v35 }
0x1573   : > { %3512 = vmatpush3.bf16.msra.mxu0 %v2163_v35 }
0x1574   : > { %3611 = vmatprep.subr.msk.bf16.mxu0 %vm650_vm2, %v2231_v36 }
0x1576   : > { %3514 = vmatmul.mubr.msk.bf16.vlgmr.msra.gmra.mxu0 %vm717_vm4, %v2161_v39 }
0x1577   : > { %3518 = vmatpush3.bf16.xpose.msra.mxu0 %v2242_v40  ;;  %3521 = vmatprep.mubr.msk.bf16.mxu0 %vm650_vm2, %v2225_v49 }
0x1578   : > { %3612 = vmatprep.subr.msk.bf16.mxu0 %vm650_vm2, %v2229_v41 }
0x157f   : > { %3520 = vmatpush3.bf16.xpose.msra.mxu0 %v2239_v42 }
0x1586   : > { %3522 = vmatmul.mubr.msk.bf16.vlgmr.msra.gmra.mxu0 %vm650_vm2, %v2227_v17 }
0x162e   : > { %v4402_v14 = vpop.f32.mrf.mxu0 }
0x1630   : > { %v4404_v43 = vpop.f32.mrf.mxu0 }
0x1632   : > { %v3500_v45 = vpop.f32.mrf.mxu0 }
0x1634   : > { %v4406_v46 = vpop.f32.mrf.mxu0 }
0x1636   : > { %v4408_v51 = vpop.f32.mrf.mxu0 }
0x1638   : > { %v4410_v55 = vpop.f32.mrf.mxu0 }
0x163a   : > { %v3516_v52 = vpop.f32.mrf.mxu0 }
0x163c   : > { %v4412_v53 = vpop.f32.mrf.mxu0 }
0x163d   : > { %v3657_v56 = vpack.i.bf16 %v4412_v53, %v4410_v55 }
0x1646   : > { %v3523_v58 = vpop.f32.mrf.mxu0 }
0x1647   : > { %v2294_v59 = vmul.f32 0.35355338, %v3523_v58 }
0x1648   : > { %v2278_v60 = vpop.f32.mrf.mxu0 }
0x1649   : > { %v2292_v11 = vmul.f32 0.35355338, %v2278_v60  ;;  %v2297_v19 = vsel %vm503_vm3, %v2294_v59, -1e+30 }
0x164a   : > { %v3524_v13 = vpop.f32.mrf.mxu0  ;;  %v2304_v9 = vsel %vm717_vm4, %v2297_v19, -inf }
0x164b   : > { %v2295_v15 = vsel %vm503_vm3, %v2292_v11, -1e+30 }
0x164c   : > { %v2281_v61 = vpop.f32.mrf.mxu0  ;;  %v2298_v62 = vsel %vm717_vm4, %v2295_v15, -inf }
0x164d   : > { %v2293_v10 = vmul.f32 0.35355338, %v2281_v61  ;;  %2299 = vmax.xlane.f32.xlu0 %v2298_v62 }
0x164f   : > { %v2296_v8 = vsel %vm503_vm3, %v2293_v10, -1e+30 }
0x1650   : > { %v2301_v18 = vsel %vm717_vm4, %v2296_v8, -inf }
0x1651   : > { %2305 = vmax.xlane.f32.xlu0 %v2304_v9  ;;  %2302 = vmax.xlane.f32.xlu1 %v2301_v18 }
0x16d6   : > { %v2300_v20 = vpop.xlane.xlu0 %2299 }
0x16d7   : > { %v2307_v63 = vsub.f32 %v2295_v15, %v2300_v20 }
0x16d9   : > { %v2310_v0 = vmul.f32 1.442695, %v2307_v63 }
0x16da   : > { %v2306_v1 = vpop.xlane.xlu0 %2305  ;;  %v2303_v2 = vpop.xlane.xlu1 %2302 }
0x16db   : > { %3801 = vpow2.f32 %v2310_v0  ;;  %v2309_v3 = vsub.f32 %v2297_v19, %v2306_v1  ;;  %v2308_v4 = vsub.f32 %v2296_v8, %v2303_v2 }
0x16dd   : > { %v2314_v5 = vmul.f32 1.442695, %v2309_v3  ;;  %v2312_v6 = vmul.f32 1.442695, %v2308_v4 }
0x16df   : > { %3803 = vpow2.f32 %v2314_v5 }
0x16e0   : > { %3805 = vpow2.f32 %v2312_v6 }
0x16e8   : > { %v3802_v7 = vpop.eup %3801 }
0x16e9   : > { %v2316_v22 = vsel %vm717_vm4, %v3802_v7, 0.0 }
0x16ea   : > { %2317 = vadd.xlane.f32.xlu0 %v2316_v22 }
0x16ec   : > { %v3804_v23 = vpop.eup %3803 }
0x16ed   : > { %v3806_v24 = vpop.eup %3805  ;;  %v2322_v25 = vsel %vm717_vm4, %v3804_v23, 0.0 }
0x16ee   : > { %2323 = vadd.xlane.f32.xlu1 %v2322_v25  ;;  %v2319_v26 = vsel %vm717_vm4, %v3806_v24, 0.0 }
0x16ef   : > { %2320 = vadd.xlane.f32.xlu0 %v2319_v26 }
0x16ff   : > { %2333 = vrot.lane.b32.xlu1 %v4314_v57, %s3858_s20 }
0x1703   : > { %2401 = vrot.lane.b32.xlu1 %v4310_v54, %s4610_s13 }
0x1705   : > { %2335 = vrot.lane.b32.xlu0 %v4310_v54, %s3858_s20 }
0x1707   : > { %2399 = vrot.lane.b32.xlu1 %v4314_v57, %s4610_s13 }
0x1709   : > { %2395 = vrot.lane.b32.xlu0 %v4314_v57, %s4611_s14 }
0x170b   : > { %2397 = vrot.lane.b32.xlu1 %v4310_v54, %s4611_s14 }
0x1773   : > { %v2318_v27 = vpop.xlane.xlu0 %2317 }
0x1774   : > { %3807 = vrcp.f32 %v2318_v27 }
0x1777   : > { %v2324_v28 = vpop.xlane.xlu1 %2323 }
0x1778   : > { %v2321_v30 = vpop.xlane.xlu0 %2320  ;;  %3809 = vrcp.f32 %v2324_v28 }
0x1779   : > { %3811 = vrcp.f32 %v2321_v30 }
0x177b   : > { %v2334_v32 = vpop.permute.xlu1 %2333 }
0x177c   : > { %v2336_v31 = vpop.permute.xlu0 %2335 }
0x177d   : > { %v2345_v34 = vsel %vm764_vm5, %v2336_v31, 0  ;;  %3613 = vmatprep.subr.msk.bf16.mxu1 %vm764_vm5, %v2336_v31 }
0x177e   : > { %3526 = vmatpush3.bf16.msra.mxu1 %v2345_v34 }
0x177f   : > { %3527 = vmatprep.subr.bf16.mxu1 %v2334_v32  ;;  %v2402_v35 = vpop.permute.xlu1 %2401 }
0x1780   : > { %v2396_v45 = vpop.permute.xlu0 %2395  ;;  %v2413_v52 = vsel %vm650_vm2, %v2402_v35, 0 }
0x1781   : > { %v3808_v36 = vpop.eup %3807 }
0x1782   : > { %3528 = vmatpush3.bf16.msra.mxu1 %v2334_v32  ;;  %v2328_v49 = vmul.f32 %v3808_v36, %v3802_v7 }
0x1783   : > { %3614 = vmatprep.subr.msk.bf16.mxu1 %vm650_vm2, %v2402_v35  ;;  %v2400_v58 = vpop.permute.xlu1 %2399 }
0x1784   : > { %v2410_v60 = vsel %vm650_vm2, %v2400_v58, 0 }
0x1785   : > { %v3810_v37 = vpop.eup %3809 }
0x1786   : > { %v3812_v39 = vpop.eup %3811  ;;  %v2330_v40 = vmul.f32 %v3810_v37, %v3804_v23 }
0x1787   : > { %v2329_v41 = vmul.f32 %v3812_v39, %v3806_v24  ;;  %v2398_v59 = vpop.permute.xlu1 %2397 }
0x1788   : > { %v2332_v42 = vpack.c.bf16 %v2330_v40, %v2330_v40 }
0x1789   : > { %v2331_v17 = vpack.c.bf16 %v2329_v41, %v2328_v49 }
0x178b   : > { %3529 = vmatprep.mubr.msk.bf16.mxu1 %vm717_vm4, %v2331_v17 }
0x178c   : > { %3530 = vmatmul.mubr.msk.bf16.vlgmr.msra.gmra.mxu1 %vm717_vm4, %v2332_v42 }
0x178d   : > { %3534 = vmatpush3.bf16.xpose.msra.mxu1 %v2413_v52  ;;  %3537 = vmatprep.mubr.msk.bf16.mxu1 %vm650_vm2, %v2396_v45  ;;  %v3691_v45 = vld [vmem:[%s4589_s4 + $0x18] sm:$0xff]   ;;  %v3692_v52 = vld [vmem:[%s4589_s4 + $0x10] sm:$0xff]  }
0x178e   : > { %3615 = vmatprep.subr.msk.bf16.mxu1 %vm650_vm2, %v2400_v58 }
0x1795   : > { %3536 = vmatpush3.bf16.xpose.msra.mxu1 %v2410_v60 }
0x179c   : > { %3538 = vmatmul.mubr.msk.bf16.vlgmr.msra.gmra.mxu1 %vm650_vm2, %v2398_v59 }
0x184c   : > { %v3531_v11 = vpop.f32.mrf.mxu1 }
0x184e   : > { %v2381_v13 = vpop.f32.mrf.mxu1 }
0x1850   : > { %v3532_v15 = vpop.f32.mrf.mxu1 }
0x1852   : > { %v2384_v61 = vpop.f32.mrf.mxu1 }
0x1853   : > { %v3662_v62 = vpack.i.bf16 %v2384_v61, %v2381_v13 }
0x185c   : > { %v3539_v10 = vpop.f32.mrf.mxu1 }
0x185d   : > { %v2465_v8 = vmul.f32 0.35355338, %v3539_v10 }
0x185e   : > { %v2449_v19 = vpop.f32.mrf.mxu1 }
0x185f   : > { %v2463_v9 = vmul.f32 0.35355338, %v2449_v19  ;;  %v2468_v1 = vsel %vm503_vm3, %v2465_v8, -1e+30 }
0x1860   : > { %v3540_v18 = vpop.f32.mrf.mxu1  ;;  %v2475_v4 = vsel %vm717_vm4, %v2468_v1, -inf }
0x1861   : > { %v2466_v20 = vsel %vm503_vm3, %v2463_v9, -1e+30 }
0x1862   : > { %v2452_v63 = vpop.f32.mrf.mxu1  ;;  %v2469_v0 = vsel %vm717_vm4, %v2466_v20, -inf }
0x1863   : > { %v2464_v2 = vmul.f32 0.35355338, %v2452_v63  ;;  %2470 = vmax.xlane.f32.xlu0 %v2469_v0 }
0x1865   : > { %v2467_v3 = vsel %vm503_vm3, %v2464_v2, -1e+30 }
0x1866   : > { %v2472_v5 = vsel %vm717_vm4, %v2467_v3, -inf }
0x1867   : > { %2476 = vmax.xlane.f32.xlu0 %v2475_v4  ;;  %2473 = vmax.xlane.f32.xlu1 %v2472_v5 }
0x18ec   : > { %v2471_v6 = vpop.xlane.xlu0 %2470 }
0x18ed   : > { %v2478_v7 = vsub.f32 %v2466_v20, %v2471_v6 }
0x18ef   : > { %v2481_v22 = vmul.f32 1.442695, %v2478_v7 }
0x18f0   : > { %v2477_v23 = vpop.xlane.xlu0 %2476  ;;  %v2474_v24 = vpop.xlane.xlu1 %2473 }
0x18f1   : > { %3813 = vpow2.f32 %v2481_v22  ;;  %v2480_v25 = vsub.f32 %v2468_v1, %v2477_v23  ;;  %v2479_v26 = vsub.f32 %v2467_v3, %v2474_v24 }
0x18f3   : > { %v2485_v27 = vmul.f32 1.442695, %v2480_v25  ;;  %v2483_v28 = vmul.f32 1.442695, %v2479_v26 }
0x18f5   : > { %3815 = vpow2.f32 %v2485_v27  ;;  %v2690_v27 = vrot.slane %v4297_v16, %v1452_v12 }
0x18f6   : > { %3817 = vpow2.f32 %v2483_v28 }
0x18fe   : > { %v3814_v21 = vpop.eup %3813 }
0x18ff   : > { %v2487_v30 = vsel %vm717_vm4, %v3814_v21, 0.0 }
0x1900   : > { %2488 = vadd.xlane.f32.xlu0 %v2487_v30 }
0x1902   : > { %v3816_v31 = vpop.eup %3815 }
0x1903   : > { %v3818_v32 = vpop.eup %3817  ;;  %v2493_v34 = vsel %vm717_vm4, %v3816_v31, 0.0 }
0x1904   : > { %2494 = vadd.xlane.f32.xlu1 %v2493_v34  ;;  %v2490_v35 = vsel %vm717_vm4, %v3818_v32, 0.0 }
0x1905   : > { %2491 = vadd.xlane.f32.xlu0 %v2490_v35 }
0x1915   : > { %2504 = vrot.lane.b32.xlu1 %v4314_v57, %s4612_s15 }
0x1919   : > { %3658 = vrot.lane.b32.xlu1 %v3657_v56, %s4613_s16 }
0x191b   : > { %2506 = vrot.lane.b32.xlu0 %v4310_v54, %s4612_s15 }
0x191d   : > { %2573 = vrot.lane.b32.xlu1 %v4408_v51, %s4613_s16 }
0x191f   : > { %3663 = vrot.lane.b32.xlu0 %v3662_v62, %s4614_s17 }
0x1921   : > { %2585 = vrot.lane.b32.xlu1 %v3531_v11, %s4614_s17 }
0x1989   : > { %v2489_v36 = vpop.xlane.xlu0 %2488 }
0x198a   : > { %3819 = vrcp.f32 %v2489_v36 }
0x198d   : > { %v2495_v37 = vpop.xlane.xlu1 %2494 }
0x198e   : > { %v2492_v39 = vpop.xlane.xlu0 %2491  ;;  %3821 = vrcp.f32 %v2495_v37 }
0x198f   : > { %3823 = vrcp.f32 %v2492_v39 }
0x1991   : > { %v2505_v53 = vpop.permute.xlu1 %2504 }
0x1992   : > { %v2507_v57 = vpop.permute.xlu0 %2506 }
0x1993   : > { %v2516_v55 = vsel %vm764_vm5, %v2507_v57, 0  ;;  %3616 = vmatprep.subr.msk.bf16.mxu0 %vm764_vm5, %v2507_v57 }
0x1994   : > { %3542 = vmatpush3.bf16.msra.mxu0 %v2516_v55 }
0x1995   : > { %3543 = vmatprep.subr.bf16.mxu0 %v2505_v53  ;;  %v3659_v15 = vpop.permute.xlu1 %3658 }
0x1996   : > { %v3664_v62 = vpop.permute.xlu0 %3663  ;;  %v3661_v10 = vunpack.i.h.bf16 %v3659_v15  ;;  %v3660_v19 = vunpack.i.l.bf16 %v3659_v15 }
0x1997   : > { %v3820_v54 = vpop.eup %3819  ;;  %v3666_v9 = vunpack.i.h.bf16 %v3664_v62  ;;  %v3665_v18 = vunpack.i.l.bf16 %v3664_v62 }
0x1998   : > { %3544 = vmatpush3.bf16.msra.mxu0 %v2505_v53  ;;  %v2499_v49 = vmul.f32 %v3820_v54, %v3814_v21  ;;  %v2603_v20 = vsel %vm650_vm2, %v4406_v46, %v3661_v10  ;;  %v2602_v63 = vsel %vm650_vm2, %v4404_v43, %v3660_v19 }
0x1999   : > { %3549 = vmatprep.subr.bf16.mxu0 %v3691_v45  ;;  %v2574_v61 = vpop.permute.xlu1 %2573  ;;  %v2605_v7 = vsel %vm1368_vm6, %v2602_v63, %v3665_v18  ;;  %v2606_v22 = vsel %vm1368_vm6, %v2603_v20, %v3666_v9  ;;  %v2736_v9 = vrot.slane %v4297_v16, %v1498_v29  ;;  %v3695_v29 = vld [vmem:[%s4588_s3 + $0x78] sm:$0xff]  }
0x199a   : > { %v2604_v1 = vsel %vm650_vm2, %v4402_v14, %v2574_v61 }
0x199b   : > { %v3822_v51 = vpop.eup %3821 }
0x199c   : > { %v3824_v56 = vpop.eup %3823  ;;  %v2501_v40 = vmul.f32 %v3822_v51, %v3816_v31 }
0x199d   : > { %v2500_v41 = vmul.f32 %v3824_v56, %v3818_v32  ;;  %v2586_v8 = vpop.permute.xlu1 %2585 }
0x199e   : > { %v2503_v42 = vpack.c.bf16 %v2501_v40, %v2501_v40  ;;  %v2607_v3 = vsel %vm1368_vm6, %v2604_v1, %v2586_v8  ;;  %v2743_v1 = vrot.slane %v4297_v16, %v1505_v33  ;;  %v3696_v33 = vld [vmem:[%s4588_s3 + $0x70] sm:$0xff]   ;;  %v3697_v16 = vld [vmem:[%s4588_s3 + $0x68] sm:$0xff]  }
0x199f   : > { %v2502_v17 = vpack.c.bf16 %v2500_v41, %v2499_v49 }
0x19a1   : > { %3545 = vmatprep.mubr.msk.bf16.mxu0 %vm717_vm4, %v2502_v17 }
0x19a2   : > { %3546 = vmatmul.mubr.msk.bf16.vlgmr.msra.gmra.mxu0 %vm717_vm4, %v2503_v42 }
0x19a3   : > { %3550 = vmatpush3.bf16.msra.mxu0 %v3691_v45  ;;  %v3693_v45 = vld [vmem:[%s4587_s2 + $0x18] sm:$0xff]  }
0x19a4   : > { %3551 = vmatprep.subr.bf16.mxu0 %v3692_v52  ;;  %3557 = vmatprep.subr.bf16.mxu1 %v3693_v45 }
0x19a5   : > { %3558 = vmatpush3.bf16.msra.mxu1 %v3693_v45 }
0x19a7   : > { %3552 = vmatpush3.bf16.msra.mxu0 %v3692_v52  ;;  %v3694_v52 = vld [vmem:[%s4587_s2 + $0x10] sm:$0xff]  }
0x19a8   : > { %3559 = vmatprep.subr.bf16.mxu1 %v3694_v52  ;;  %3565 = vmatprep.subr.bf16.mxu0 %v3695_v29 }
0x19a9   : > { %3560 = vmatpush3.bf16.msra.mxu1 %v3694_v52 }
0x1a62   : > { %v3547_v58 = vpop.f32.mrf.mxu0 }
0x1a63   : > { %2597 = vrot.lane.b32.xlu1 %v3547_v58, %s4615_s26 }
0x1a64   : > { %v2552_v60 = vpop.f32.mrf.mxu0 }
0x1a66   : > { %v3548_v59 = vpop.f32.mrf.mxu0 }
0x1a68   : > { %v2555_v11 = vpop.f32.mrf.mxu0 }
0x1a69   : > { %v3667_v13 = vpack.i.bf16 %v2555_v11, %v2552_v60 }
0x1a6b   : > { %3668 = vrot.lane.b32.xlu0 %v3667_v13, %s4615_s26 }
0x1ad5   : > { %v2598_v0 = vpop.permute.xlu1 %2597 }
0x1ad6   : > { %v2610_v6 = vsel %vm717_vm4, %v2607_v3, %v2598_v0 }
0x1ad7   : > { %v2617_v24 = vpack.c.bf16 %v2610_v6, %v2610_v6 }
0x1add   : > { %v3669_v2 = vpop.permute.xlu0 %3668 }
0x1ade   : > { %v3671_v4 = vunpack.i.h.bf16 %v3669_v2  ;;  %v3670_v5 = vunpack.i.l.bf16 %v3669_v2 }
0x1ae0   : > { %v2608_v46 = vsel %vm717_vm4, %v2605_v7, %v3670_v5  ;;  %v2609_v23 = vsel %vm717_vm4, %v2606_v22, %v3671_v4 }
0x1ae1   : > { %v2616_v43 = vpack.c.bf16 %v2609_v23, %v2608_v46  ;;  %v3698_v23 = vld [vmem:[%s4588_s3 + $0x60] sm:$0xff]  }
0x1ae3   : > { %3553 = vmatprep.mubr.msk.bf16.mxu0 %vm505_vm1, %v2616_v43  ;;  %v3699_v43 = vld [vmem:[%s4588_s3 + $0x58] sm:$0xff]  }
0x1ae4   : > { %3554 = vmatmul.mubr.msk.bf16.vlgmr.msra.gmra.mxu0 %vm505_vm1, %v2617_v24  ;;  %v3700_v24 = vld [vmem:[%s4588_s3 + $0x50] sm:$0xff]  }
0x1ae5   : > { %3566 = vmatpush3.bf16.msra.mxu0 %v3695_v29 }
0x1ae6   : > { %3567 = vmatprep.subr.bf16.mxu0 %v3696_v33 }
0x1ae9   : > { %3568 = vmatpush3.bf16.msra.mxu0 %v3696_v33 }
0x1aea   : > { %3569 = vmatprep.subr.bf16.mxu0 %v3697_v16 }
0x1aed   : > { %3570 = vmatpush3.bf16.msra.mxu0 %v3697_v16  ;;  %v3236_v16 = vld [vmem:[%s4594_s9] ss:$0 sm:$0xff] }
0x1aee   : > { %3571 = vmatprep.subr.bf16.mxu0 %v3698_v23 }
0x1af1   : > { %3572 = vmatpush3.bf16.msra.mxu0 %v3698_v23 }
0x1af2   : > { %3573 = vmatprep.subr.bf16.mxu0 %v3699_v43 }
0x1af5   : > { %3574 = vmatpush3.bf16.msra.mxu0 %v3699_v43  ;;  %v3237_v43 = vld [vmem:[%s4594_s9 + $0x1] ss:$0 sm:$0xff] }
0x1af6   : > { %3575 = vmatprep.subr.bf16.mxu0 %v3700_v24 }
0x1af9   : > { %3576 = vmatpush3.bf16.msra.mxu0 %v3700_v24 }
0x1ba4   : > { %v3555_v14 = vpop.f32.mrf.mxu0 }
0x1ba5   : > { %v2686_v26 = vadd.f32 %v3555_v14, %v4271_v50  ;;  %v3701_v14 = vld [vmem:[%s4588_s3 + $0x48] sm:$0xff]  }
0x1ba6   : > { %v2670_v25 = vpop.f32.mrf.mxu0  ;;  %3577 = vmatprep.subr.bf16.mxu0 %v3701_v14 }
0x1ba7   : > { %v2684_v28 = vadd.f32 %v2670_v25, %v4269_v44  ;;  %v2693_v32 = vadd.f32 %v2690_v27, %v2686_v26  ;;  %v3702_v25 = vld [vmem:[%s4588_s3 + $0x40] sm:$0xff]   ;;  %3578 = vmatpush3.bf16.msra.mxu0 %v3701_v14 }
0x1ba8   : > { %v3556_v21 = vpop.f32.mrf.mxu0  ;;  %3579 = vmatprep.subr.bf16.mxu0 %v3702_v25  ;;  %v3211_v26 = vld [vmem:[%s4586_s1 + $0x1] ss:$0 sm:$0xff] }
0x1ba9   : > { %v4505_v30 = vadd.f32 %v2690_v27, %v2684_v28  ;;  %v2700_v50 = vsel %vm505_vm1, %v2693_v32, 0.0 }
0x1baa   : > { %v2673_v31 = vpop.f32.mrf.mxu0 }
0x1bab   : > { %v2685_v34 = vadd.f32 %v2673_v31, %v4276_v47  ;;  %v2694_v35 = vsel %vm505_vm1, %v4505_v30, 0.0  ;;  %3580 = vmatpush3.bf16.msra.mxu0 %v3702_v25 }
0x1bac   : > { %2695 = vadd.xlane.f32.xlu0 %v2694_v35 }
0x1bad   : > { %v2692_v36 = vadd.f32 %v2690_v27, %v2685_v34 }
0x1baf   : > { %v2697_v37 = vsel %vm505_vm1, %v2692_v36, 0.0 }
0x1bb0   : > { %2701 = vadd.xlane.f32.xlu0 %v2700_v50  ;;  %2698 = vadd.xlane.f32.xlu1 %v2697_v37 }
0x1c35   : > { %v2696_v12 = vpop.xlane.xlu0 %2695 }
0x1c36   : > { %v2703_v44 = vmul.f32 0.03125, %v2696_v12 }
0x1c38   : > { %v2706_v39 = vsub.f32 %v4505_v30, %v2703_v44 }
0x1c39   : > { %v2702_v57 = vpop.xlane.xlu0 %2701  ;;  %v2699_v55 = vpop.xlane.xlu1 %2698 }
0x1c3a   : > { %v2705_v53 = vmul.f32 0.03125, %v2702_v57  ;;  %v2704_v54 = vmul.f32 0.03125, %v2699_v55  ;;  %v2709_v47 = vmul.f32 %v2706_v39, %v2706_v39 }
0x1c3c   : > { %v2708_v51 = vsub.f32 %v2693_v32, %v2705_v53  ;;  %v2707_v56 = vsub.f32 %v2692_v36, %v2704_v54  ;;  %v2712_v40 = vsel %vm505_vm1, %v2709_v47, 0.0 }
0x1c3d   : > { %2713 = vadd.xlane.f32.xlu0 %v2712_v40 }
0x1c3e   : > { %v2711_v49 = vmul.f32 %v2708_v51, %v2708_v51  ;;  %v2710_v41 = vmul.f32 %v2707_v56, %v2707_v56 }
0x1c40   : > { %v2718_v42 = vsel %vm505_vm1, %v2711_v49, 0.0  ;;  %v2715_v17 = vsel %vm505_vm1, %v2710_v41, 0.0 }
0x1c41   : > { %2719 = vadd.xlane.f32.xlu1 %v2718_v42  ;;  %2716 = vadd.xlane.f32.xlu0 %v2715_v17 }
0x1cc6   : > { %v2714_v58 = vpop.xlane.xlu0 %2713 }
0x1cc7   : > { %v2721_v60 = vmul.f32 0.03125, %v2714_v58 }
0x1cc9   : > { %v2724_v59 = vadd.f32 1e-05, %v2721_v60 }
0x1cca   : > { %v2717_v11 = vpop.xlane.xlu0 %2716  ;;  %v2720_v13 = vpop.xlane.xlu1 %2719 }
0x1ccb   : > { %3825 = vrsqrt.f32 %v2724_v59  ;;  %v2722_v15 = vmul.f32 0.03125, %v2717_v11  ;;  %v2723_v61 = vmul.f32 0.03125, %v2720_v13 }
0x1ccd   : > { %v2725_v62 = vadd.f32 1e-05, %v2722_v15  ;;  %v2726_v10 = vadd.f32 1e-05, %v2723_v61 }
0x1ccf   : > { %3827 = vrsqrt.f32 %v2725_v62 }
0x1cd0   : > { %3829 = vrsqrt.f32 %v2726_v10 }
0x1cd8   : > { %v3826_v19 = vpop.eup %3825 }
0x1cd9   : > { %v2730_v8 = vmul.f32 %v3826_v19, %v2706_v39 }
0x1cdb   : > { %v2737_v0 = vmul.f32 %v2736_v9, %v2730_v8  ;;  %v3842_v8 = vld [vmem:[%s4592_s7 + $0x8] sm:$0x3f] }
0x1cdc   : > { %v3828_v18 = vpop.eup %3827 }
0x1cdd   : > { %v3830_v20 = vpop.eup %3829  ;;  %v2731_v63 = vmul.f32 %v3828_v18, %v2707_v56  ;;  %v2744_v5 = vadd.f32 %v2743_v1, %v2737_v0 }
0x1cde   : > { %v2732_v2 = vmul.f32 %v3830_v20, %v2708_v51 }
0x1cdf   : > { %v2738_v3 = vmul.f32 %v2736_v9, %v2731_v63 }
0x1ce0   : > { %v2739_v4 = vmul.f32 %v2736_v9, %v2732_v2  ;;  %v2975_v9 = vrot.slane %v3842_v8, %v1738_v38  ;;  %v3865_v38 = vmov 0.0  }
0x1ce1   : > { %v2745_v6 = vadd.f32 %v2743_v1, %v2738_v3  ;;  %3585 = vmatprep.subr.bf16.mxu1 %v3865_v38 }
0x1ce2   : > { %v2746_v7 = vadd.f32 %v2743_v1, %v2739_v4 }
0x1ce3   : > { %v2752_v22 = vpack.c.bf16 %v2745_v6, %v2744_v5 }
0x1ce4   : > { %v2753_v46 = vpack.c.bf16 %v2746_v7, %v2746_v7 }
0x1ce5   : > { %3561 = vmatprep.mubr.msk.bf16.mxu1 %vm505_vm1, %v2752_v22 }
0x1ce6   : > { %3562 = vmatmul.mubr.msk.bf16.vlgmr.msra.gmra.mxu1 %vm505_vm1, %v2753_v46 }
0x1ce7   : > { %3589 = vmatprep.mubr.msk.bf16.mxu1 %vm3866_vm7, %v3865_v38  ;;  %3586 = vmatpush3.bf16.msra.mxu1 %v3703_v48 }
0x1ce8   : > { %3587 = vmatprep.subr.bf16.mxu1 %v3865_v38 }
0x1da6   : > { %v3563_v27 = vpop.f32.mrf.mxu1 }
0x1da7   : > { %v2830_v28 = vadd.f32 %v3563_v27, %v3211_v26 }
0x1da8   : > { %v2806_v21 = vpop.f32.mrf.mxu1 }
0x1da9   : > { %v2833_v31 = vmul.f32 %v2830_v28, %v2830_v28  ;;  %v2828_v32 = vadd.f32 %v3211_v26, %v2806_v21 }
0x1daa   : > { %v3564_v34 = vpop.f32.mrf.mxu1 }
0x1dab   : > { %v2836_v35 = vmul.f32 %v2833_v31, %v2830_v28  ;;  %v2831_v36 = vmul.f32 %v2828_v32, %v2828_v32 }
0x1dac   : > { %v2809_v50 = vpop.f32.mrf.mxu1 }
0x1dad   : > { %v2839_v37 = vmul.f32 0.044715, %v2836_v35  ;;  %v2834_v12 = vmul.f32 %v2831_v36, %v2828_v32  ;;  %v2829_v44 = vadd.f32 %v3211_v26, %v2809_v50 }
0x1daf   : > { %v2842_v39 = vadd.f32 %v2839_v37, %v2830_v28  ;;  %v2837_v57 = vmul.f32 0.044715, %v2834_v12  ;;  %v2832_v55 = vmul.f32 %v2829_v44, %v2829_v44 }
0x1db1   : > { %v2845_v53 = vmul.f32 0.7978846, %v2842_v39  ;;  %v2840_v54 = vadd.f32 %v2837_v57, %v2828_v32  ;;  %v2835_v47 = vmul.f32 %v2832_v55, %v2829_v44 }
0x1db3   : > { %3831 = vtanh.f32 %v2845_v53  ;;  %v2843_v51 = vmul.f32 0.7978846, %v2840_v54  ;;  %v2838_v56 = vmul.f32 0.044715, %v2835_v47 }
0x1db5   : > { %3833 = vtanh.f32 %v2843_v51  ;;  %v2841_v40 = vadd.f32 %v2838_v56, %v2829_v44 }
0x1db7   : > { %v2844_v49 = vmul.f32 0.7978846, %v2841_v40 }
0x1db9   : > { %3835 = vtanh.f32 %v2844_v49 }
0x1dc0   : > { %v3832_v41 = vpop.eup %3831 }
0x1dc1   : > { %v2851_v17 = vadd.f32 1.0, %v3832_v41 }
0x1dc2   : > { %v3834_v42 = vpop.eup %3833 }
0x1dc3   : > { %v2849_v45 = vadd.f32 1.0, %v3834_v42  ;;  %v2854_v58 = vmul.f32 0.5, %v2851_v17 }
0x1dc5   : > { %v2852_v59 = vmul.f32 0.5, %v2849_v45  ;;  %v2857_v13 = vmul.f32 %v2854_v58, %v2830_v28 }
0x1dc6   : > { %v3836_v52 = vpop.eup %3835 }
0x1dc7   : > { %v2850_v60 = vadd.f32 1.0, %v3836_v52  ;;  %v2855_v15 = vmul.f32 %v2852_v59, %v2828_v32  ;;  %v2876_v10 = vpack.c.bf16 %v2857_v13, %v2857_v13 }
0x1dc9   : > { %v2853_v11 = vmul.f32 0.5, %v2850_v60 }
0x1dcb   : > { %v2856_v61 = vmul.f32 %v2853_v11, %v2829_v44 }
0x1dcd   : > { %v2875_v62 = vpack.c.bf16 %v2856_v61, %v2855_v15 }
0x1dcf   : > { %3581 = vmatprep.mubr.bf16.mxu0 %v2875_v62 }
0x1dd0   : > { %3582 = vmatmul.mubr.bf16.vlgmr.msra.gmra.mxu0 %v2876_v10 }
0x1e90   : > { %v3583_v19 = vpop.f32.mrf.mxu0 }
0x1e92   : > { %v2959_v18 = vpop.f32.mrf.mxu0 }
0x1e93   : > { %v2971_v20 = vadd.f32 %v2959_v18, %v4505_v30  ;;  %v3704_v30 = vld [vmem:[%s4593_s8] sm:$0xff]  }
0x1e94   : > { %v3584_v63 = vpop.f32.mrf.mxu0  ;;  %3588 = vmatpush3.bf16.msra.mxu1 %v3704_v30 }
0x1e95   : > { %v2976_v0 = vadd.f32 %v2975_v9, %v2971_v20 }
0x1e96   : > { %v2962_v1 = vpop.f32.mrf.mxu0 }
0x1e97   : > { %v2979_v2 = vsel %vm505_vm1, %v2976_v0, 0.0 }
0x1e98   : > { %2980 = vadd.xlane.f32.xlu0 %v2979_v2 }
0x1f21   : > { %v2981_v3 = vpop.xlane.xlu0 %2980 }
0x1f22   : > { %v2982_v4 = vmul.f32 0.03125, %v2981_v3 }
0x1f24   : > { %v2983_v5 = vsub.f32 %v2976_v0, %v2982_v4 }
0x1f26   : > { %v2984_v6 = vmul.f32 %v2983_v5, %v2983_v5 }
0x1f28   : > { %v2985_v7 = vsel %vm505_vm1, %v2984_v6, 0.0 }
0x1f29   : > { %2986 = vadd.xlane.f32.xlu1 %v2985_v7 }
0x1fb2   : > { %v2987_v22 = vpop.xlane.xlu1 %2986 }
0x1fb3   : > { %v2988_v46 = vmul.f32 0.03125, %v2987_v22 }
0x1fb5   : > { %v2989_v29 = vadd.f32 1e-05, %v2988_v46 }
0x1fb7   : > { %3837 = vrsqrt.f32 %v2989_v29 }
0x1fc4   : > { %v3838_v33 = vpop.eup %3837 }
0x1fc5   : > { %v2991_v23 = vmul.f32 %v3838_v33, %v2983_v5 }
0x1fc7   : > { %v2996_v24 = vmul.f32 %v3236_v16, %v2991_v23 }
0x1fc9   : > { %v3001_v14 = vadd.f32 %v3237_v43, %v2996_v24 }
0x1fcb   : > { %v3006_v25 = vpack.c.bf16 %v3001_v14, %v3001_v14 }
0x1fcd   : > { %3590 = vmatmul.mubr.msk.bf16.vlgmr.msra.gmra.mxu1 %vm505_vm1, %v3006_v25 }
0x208d   : > { %v3056_v26 = vpop.f32.mrf.mxu1 }
0x208e   : > { %v3062_v27 = vmul.f32 %v3056_v26, %v3056_v26 }
0x208f   : > { %v3591_v28 = vpop.f32.mrf.mxu1 }
0x2090   : > { %v3064_v21 = vsel %vm3063_vm8, %v3062_v27, 0.0 }
0x2091   : > { %3065 = vadd.xlane.f32.xlu0 %v3064_v21  ;;  %v3059_v31 = vpop.f32.mrf.mxu1 }
0x2093   : > { %v3592_v32 = vpop.f32.mrf.mxu1 }
0x211a   : > { %v3066_v34 = vpop.xlane.xlu0 %3065 }
0x211b   : > { %v3067_v35 = vmax.f32 %v3066_v34, 1e-24 }
0x211d   : > { %3839 = vrsqrt.f32 %v3067_v35 }
0x212a   : > { %v3840_v36 = vpop.eup %3839 }
0x212b   : > { %v3069_v50 = vmul.f32 %v3840_v36, %v3056_v26 }
0x212d   : > { %3070 = vst.msk [vmem:[%s409_s27] sm:$0x1] %vm3063_vm8, %v3069_v50 }
0x212e PF: > { %s22_s21 = sadd.s32 1, %s3849_s21  }
0x212f   : > { %p19_p4 = scmp.ge.s32.totalorder %s22_s21, 4  }
0x2131   :  { %21 = sbr.rel (!%p19_p4) target bundleno = 1 (0x1), region = 105 }

// kernel: clip_forward.3
= control target key start
LH: loop header
LB: loop body
LE: loop exit
PB: predicated region body
PF: predicated region fallthrough
CT: control target
= control target key end

     0   :  { %vm61_vm0 = vcmask 261120   ;;  %s4638_s0 = inlined_call_operand.vmem [shape: f32[2,8,32], index: 0, kind: input, shape index: {}]   ;;  %s4639_s1 = inlined_call_operand.vmem [shape: f32[2,1,8], index: 1, kind: input, shape index: {}]   ;;  %s4640_s2 = inlined_call_operand.vmem [shape: f32[2,32], index: 2, kind: input, shape index: {}]   ;;  %s4641_s3 = inlined_call_operand.<no memory space> [shape: f32[1,1], index: 3, kind: input, shape index: {}]   ;;  %s4642_s4 = inlined_call_operand.vmem [shape: f32[2,1,128], index: 4, kind: input, shape index: {}]   ;;  %s4643_s5 = inlined_call_operand.vmem [shape: bf16[2,32,128], index: 5, kind: input, shape index: {}]   ;;  %s4644_s6 = inlined_call_operand.vmem [shape: bf16[2,128,32], index: 6, kind: input, shape index: {}]   ;;  %s4645_s7 = inlined_call_operand.vmem [shape: bf16[2,32,32], index: 7, kind: input, shape index: {}]   ;;  %s4646_s8 = inlined_call_operand.vmem [shape: f32[2,1,96], index: 8, kind: input, shape index: {}]   ;;  %s4647_s9 = inlined_call_operand.vmem [shape: bf16[2,32,96], index: 9, kind: input, shape index: {}]   ;;  %s4648_s10 = inlined_call_operand.vmem [shape: f32[2,6,32], index: 10, kind: input, shape index: {}]   ;;  %s4649_s11 = inlined_call_operand.vmem [shape: f32[2,32], index: 11, kind: input, shape index: {}]   ;;  %s4650_s12 = inlined_call_operand.vmem [shape: f32[1,8,32], index: 12, kind: input, shape index: {}]   ;;  %s4651_s13 = inlined_call_operand.vmem [shape: bf16[32,32], index: 13, kind: input, shape index: {}]   ;;  %s4652_s14 = inlined_call_operand.hbm [shape: f32[2,2], index: 14, kind: output, shape index: {}]  }
   0x1   :  { %v50_v0 = vld [vmem:[%s4638_s0] sm:$0xff]  ;;  %v51_v2 = vld [vmem:[%s4638_s0 + $0x8] sm:$0xff] }
   0x2   :  { %v52_v1 = vld [vmem:[%s4650_s12] sm:$0xff] }
   0x3   :  { %v3956_v3 = vadd.f32 %v52_v1, %v50_v0  ;;  %v3958_v4 = vadd.f32 %v52_v1, %v51_v2 }
   0x5   :  { %v62_v5 = vsel %vm61_vm0, %v3956_v3, 0.0  ;;  %v65_v6 = vsel %vm61_vm0, %v3958_v4, 0.0 }
   0x6   :  { %63 = vadd.xlane.f32.xlu0 %v62_v5 }
   0xa   :  { %66 = vadd.xlane.f32.xlu0 %v65_v6 }
   0xb   :  { %20 = vsyncpa [#allocation4], 0  ;;  %v3699_v17 = vld [vmem:[%s4647_s9 + $0x8] sm:$0xff]   ;;  %v3855_v18 = vmov 0.0   ;;  %vm3856_vm1 = vmmov 0   ;;  %v3700_v19 = vld [vmem:[%s4647_s9] sm:$0xff]   ;;  %v55_v26 = vlaneseq }
   0xc   :  { %3347 = vmatprep.subr.bf16.mxu0 %v3855_v18  ;;  %3351 = vmatprep.mubr.msk.bf16.mxu0 %vm3856_vm1, %v3855_v18  ;;  %v3988_v29 = vld [vmem:[%s4648_s10] sm:$0x3f]  ;;  %s3857_s25 = smov 96   ;;  %vm176_vm2 = vcmask 64512   ;;  %s3858_s26 = smov 64   ;;  %vm307_vm4 = vcmask 1043456  }
   0xd   :  { %3348 = vmatpush3.bf16.msra.mxu0 %v3699_v17  ;;  %3355 = vmatprep.subr.bf16.mxu1 %v3855_v18  ;;  %v3982_v27 = vshrl.u32 %v55_v26, 7  ;;  %v3127_v42 = vld [vmem:[%s4646_s8] ss:$0 sm:$0xff]  ;;  %v58_v55 = vand.u32 127, %v55_v26  ;;  %s3859_s27 = smov 88   ;;  %s3860_s28 = smov 120  }
   0xe   :  { %3349 = vmatprep.subr.bf16.mxu0 %v3855_v18  ;;  %3357 = vmatprep.mubr.msk.bf16.mxu1 %vm3856_vm1, %v3855_v18  ;;  %s3861_s29 = smov 56   ;;  %s3862_s30 = smov 80   ;;  %vm1097_vm5 = vcmask 130048   ;;  %vm1100_vm6 = vcmask 195584   ;;  %vm2958_vm7 = vcmask 1041409   ;;  %vm3017_vm8 = vcmask 254976  }
   0xf   :  { %v91_v28 = vsub.s32 0, %v3982_v27  ;;  %v97_v33 = vsub.s32 1, %v3982_v27  ;;  %vm4024_vm3 = vcmp.le.s32.totalorder %v58_v55, %v3982_v27  ;;  %s3863_s15 = smov 112   ;;  %s3864_s16 = smov 48   ;;  %vm3108_vm9 = vcmask 9216  }
  0x10   :  { %s3865_s17 = smov 72   ;;  %s3866_s18 = smov 104  }
  0x11   :  { %3350 = vmatpush3.bf16.msra.mxu0 %v3700_v19  ;;  %v92_v32 = vrot.slane %v3988_v29, %v91_v28  ;;  %v98_v37 = vrot.slane %v3988_v29, %v97_v33  ;;  %s3867_s0 = smov 40   ;;  %s4655_s12 = smov 8  }
  0x12   :  { %3361 = vmatprep.subr.bf16.mxu0 %v3855_v18  ;;  %s4654_s19 = smov 16   ;;  %s4653_s24 = smov 24  }
  0x8f   :  { %v64_v7 = vpop.xlane.xlu0 %63 }
  0x90   :  { %v69_v8 = vmul.f32 0.03125, %v64_v7 }
  0x92   :  { %v71_v9 = vsub.f32 %v3956_v3, %v69_v8 }
  0x93   :  { %v67_v10 = vpop.xlane.xlu0 %66 }
  0x94   :  { %v70_v11 = vmul.f32 0.03125, %v67_v10  ;;  %v73_v12 = vmul.f32 %v71_v9, %v71_v9 }
  0x96   :  { %v72_v13 = vsub.f32 %v3958_v4, %v70_v11  ;;  %v75_v14 = vsel %vm61_vm0, %v73_v12, 0.0 }
  0x97   :  { %76 = vadd.xlane.f32.xlu1 %v75_v14 }
  0x98   :  { %v74_v15 = vmul.f32 %v72_v13, %v72_v13 }
  0x9a   :  { %v78_v16 = vsel %vm61_vm0, %v74_v15, 0.0 }
  0x9b   :  { %79 = vadd.xlane.f32.xlu1 %v78_v16 }
 0x120   :  { %v77_v20 = vpop.xlane.xlu1 %76 }
 0x121   :  { %v81_v21 = vmul.f32 0.03125, %v77_v20 }
 0x123   :  { %v83_v22 = vadd.f32 1e-05, %v81_v21 }
 0x124   :  { %v80_v23 = vpop.xlane.xlu1 %79 }
 0x125   :  { %3729 = vrsqrt.f32 %v83_v22  ;;  %v82_v24 = vmul.f32 0.03125, %v80_v23 }
 0x127   :  { %v84_v25 = vadd.f32 1e-05, %v82_v24 }
 0x129   :  { %3731 = vrsqrt.f32 %v84_v25 }
 0x132   :  { %v3730_v30 = vpop.eup %3729 }
 0x133   :  { %v87_v31 = vmul.f32 %v3730_v30, %v71_v9 }
 0x135   :  { %v93_v36 = vmul.f32 %v92_v32, %v87_v31 }
 0x136   :  { %v3732_v34 = vpop.eup %3731 }
 0x137   :  { %v88_v35 = vmul.f32 %v3732_v34, %v72_v13  ;;  %v99_v39 = vadd.f32 %v98_v37, %v93_v36 }
 0x139   :  { %v94_v38 = vmul.f32 %v92_v32, %v88_v35 }
 0x13b   :  { %v100_v40 = vadd.f32 %v98_v37, %v94_v38 }
 0x13d   :  { %v105_v41 = vpack.c.bf16 %v100_v40, %v99_v39 }
 0x13f   :  { %3352 = vmatmul.mubr.msk.bf16.vlgmr.msra.gmra.mxu0 %vm61_vm0, %v105_v41 }
 0x140   :  { %3363 = vmatprep.mubr.msk.bf16.mxu0 %vm3856_vm1, %v3855_v18 }
 0x1ff   :  { %v155_v43 = vpop.f32.mrf.mxu0 }
 0x200   :  { %v169_v44 = vadd.f32 %v3127_v42, %v155_v43 }
 0x201   :  { %v3353_v45 = vpop.f32.mrf.mxu0 }
 0x202   :  { %v4003_v46 = vpack.c.bf16 %v169_v44, %v169_v44 }
 0x203   :  { %v158_v47 = vpop.f32.mrf.mxu0 }
 0x204   :  { %v170_v48 = vadd.f32 %v3127_v42, %v158_v47  ;;  %174 = vrot.lane.b32.xlu0 %v4003_v46, %s3857_s25 }
 0x205   :  { %v3354_v49 = vpop.f32.mrf.mxu0 }
 0x206   :  { %v4007_v50 = vpack.c.bf16 %v170_v48, %v170_v48 }
 0x208   :  { %224 = vrot.lane.b32.xlu1 %v4007_v50, %s3857_s25 }
 0x276   :  { %v175_v51 = vpop.permute.xlu0 %174 }
 0x277   :  { %v181_v52 = vsel %vm176_vm2, %v175_v51, 0 }
 0x278   :  { %3356 = vmatpush3.bf16.xpose.msra.mxu1 %v181_v52 }
 0x279   :  { %3367 = vmatprep.subr.bf16.mxu1 %v3855_v18 }
 0x27a   :  { %v225_v53 = vpop.permute.xlu1 %224 }
 0x27b   :  { %v230_v54 = vsel %vm176_vm2, %v225_v53, 0 }
 0x27c   :  { %3362 = vmatpush3.bf16.xpose.msra.mxu0 %v230_v54 }
 0x27d   :  { %3373 = vmatprep.subr.bf16.mxu0 %v3855_v18 }
 0x27f   :  { %3358 = vmatmul.mubr.msk.bf16.vlgmr.msra.gmra.mxu1 %vm176_vm2, %v4003_v46 }
 0x280   :  { %3369 = vmatprep.mubr.msk.bf16.mxu1 %vm3856_vm1, %v3855_v18 }
 0x283   :  { %3364 = vmatmul.mubr.msk.bf16.vlgmr.msra.gmra.mxu0 %vm176_vm2, %v4007_v50 }
 0x284   :  { %3375 = vmatprep.mubr.msk.bf16.mxu0 %vm3856_vm1, %v3855_v18 }
 0x33f   :  { %v217_v57 = vpop.f32.mrf.mxu1 }
 0x340   :  { %v272_v58 = vmul.f32 0.35355338, %v217_v57 }
 0x341   :  { %v3359_v59 = vpop.f32.mrf.mxu1 }
 0x342   :  { %v276_v60 = vsel %vm4024_vm3, %v272_v58, -1e+30 }
 0x343   :  { %v220_v61 = vpop.f32.mrf.mxu1  ;;  %v266_v62 = vpop.f32.mrf.mxu0  ;;  %v278_v63 = vsel %vm176_vm2, %v276_v60, -inf }
 0x344   :  { %v273_v0 = vmul.f32 0.35355338, %v266_v62  ;;  %279 = vmax.xlane.f32.xlu1 %v278_v63 }
 0x345   :  { %v3360_v1 = vpop.f32.mrf.mxu1  ;;  %v3365_v2 = vpop.f32.mrf.mxu0 }
 0x346   :  { %v277_v5 = vsel %vm4024_vm3, %v273_v0, -1e+30 }
 0x347   :  { %v269_v6 = vpop.f32.mrf.mxu0  ;;  %v281_v7 = vsel %vm176_vm2, %v277_v5, -inf }
 0x348   :  { %282 = vmax.xlane.f32.xlu0 %v281_v7 }
 0x349   :  { %v3366_v8 = vpop.f32.mrf.mxu0 }
 0x355   :  { %351 = vrot.lane.b32.xlu1 %v4007_v50, %s3858_s26 }
 0x359   :  { %401 = vrot.lane.b32.xlu1 %v4003_v46, %s3859_s27 }
 0x3cd   :  { %v280_v9 = vpop.xlane.xlu1 %279 }
 0x3ce   :  { %v284_v10 = vsub.f32 %v276_v60, %v280_v9 }
 0x3d0   :  { %v286_v11 = vmul.f32 1.442695, %v284_v10 }
 0x3d1   :  { %v352_v12 = vpop.permute.xlu1 %351  ;;  %v283_v13 = vpop.xlane.xlu0 %282 }
 0x3d2   :  { %3733 = vpow2.f32 %v286_v11  ;;  %v357_v14 = vsel %vm307_vm4, %v352_v12, 0  ;;  %v285_v15 = vsub.f32 %v277_v5, %v283_v13 }
 0x3d3   :  { %3374 = vmatpush3.bf16.msra.mxu0 %v357_v14 }
 0x3d4   :  { %v288_v16 = vmul.f32 1.442695, %v285_v15  ;;  %3385 = vmatprep.subr.bf16.mxu0 %v3855_v18 }
 0x3d5   :  { %v402_v22 = vpop.permute.xlu1 %401 }
 0x3d6   :  { %3735 = vpow2.f32 %v288_v16  ;;  %v407_v35 = vsel %vm176_vm2, %v402_v22, 0 }
 0x3df   :  { %v3734_v17 = vpop.eup %3733 }
 0x3e0   :  { %v290_v19 = vsel %vm176_vm2, %v3734_v17, 0.0 }
 0x3e1   :  { %291 = vadd.xlane.f32.xlu0 %v290_v19 }
 0x3e3   :  { %v3736_v20 = vpop.eup %3735 }
 0x3e4   :  { %v293_v21 = vsel %vm176_vm2, %v3736_v20, 0.0 }
 0x3e5   :  { %294 = vadd.xlane.f32.xlu1 %v293_v21 }
 0x3f6   :  { %451 = vrot.lane.b32.xlu1 %v4007_v50, %s3859_s27 }
 0x3f7   :  { %302 = vrot.lane.b32.xlu0 %v4003_v46, %s3858_s26 }
 0x3fa   :  { %449 = vrot.lane.b32.xlu1 %v4007_v50, %s3860_s28 }
 0x3fb   :  { %399 = vrot.lane.b32.xlu0 %v4003_v46, %s3860_s28 }
 0x46a   :  { %v292_v23 = vpop.xlane.xlu0 %291 }
 0x46b   :  { %3737 = vrcp.f32 %v292_v23 }
 0x46e   :  { %v295_v24 = vpop.xlane.xlu1 %294  ;;  %v303_v25 = vpop.permute.xlu0 %302 }
 0x46f   :  { %3739 = vrcp.f32 %v295_v24  ;;  %v309_v26 = vsel %vm307_vm4, %v303_v25, 0 }
 0x470   :  { %3368 = vmatpush3.bf16.msra.mxu1 %v309_v26 }
 0x471   :  { %3379 = vmatprep.subr.bf16.mxu1 %v3855_v18 }
 0x472   :  { %v452_v37 = vpop.permute.xlu1 %451  ;;  %v400_v40 = vpop.permute.xlu0 %399 }
 0x473   :  { %v457_v39 = vsel %vm176_vm2, %v452_v37, 0 }
 0x476   :  { %v450_v41 = vpop.permute.xlu1 %449 }
 0x478   :  { %v3738_v30 = vpop.eup %3737 }
 0x479   :  { %v298_v31 = vmul.f32 %v3738_v30, %v3734_v17 }
 0x47b   :  { %v300_v32 = vpack.c.bf16 %v298_v31, %v298_v31 }
 0x47c   :  { %v3740_v34 = vpop.eup %3739 }
 0x47d   :  { %3370 = vmatmul.mubr.msk.bf16.vlgmr.msra.gmra.mxu1 %vm176_vm2, %v300_v32  ;;  %v299_v36 = vmul.f32 %v3740_v34, %v3736_v20 }
 0x47e   :  { %3380 = vmatpush3.bf16.xpose.msra.mxu1 %v407_v35  ;;  %3381 = vmatprep.mubr.msk.bf16.mxu1 %vm3856_vm1, %v3855_v18 }
 0x47f   :  { %v301_v38 = vpack.c.bf16 %v299_v36, %v299_v36  ;;  %3391 = vmatprep.subr.bf16.mxu1 %v3855_v18 }
 0x481   :  { %3376 = vmatmul.mubr.msk.bf16.vlgmr.msra.gmra.mxu0 %vm176_vm2, %v301_v38 }
 0x482   :  { %3386 = vmatpush3.bf16.xpose.msra.mxu0 %v457_v39  ;;  %3387 = vmatprep.mubr.msk.bf16.mxu0 %vm3856_vm1, %v3855_v18 }
 0x483   :  { %3397 = vmatprep.subr.bf16.mxu0 %v3855_v18 }
 0x485   :  { %3382 = vmatmul.mubr.msk.bf16.vlgmr.msra.gmra.mxu1 %vm176_vm2, %v400_v40 }
 0x486   :  { %3393 = vmatprep.mubr.msk.bf16.mxu1 %vm3856_vm1, %v3855_v18 }
 0x489   :  { %3388 = vmatmul.mubr.msk.bf16.vlgmr.msra.gmra.mxu0 %vm176_vm2, %v450_v41 }
 0x48a   :  { %3399 = vmatprep.mubr.msk.bf16.mxu0 %vm3856_vm1, %v3855_v18 }
 0x53d   :  { %v4068_v42 = vpop.f32.mrf.mxu1 }
 0x53f   :  { %v3371_v43 = vpop.f32.mrf.mxu1 }
 0x541   :  { %v348_v44 = vpop.f32.mrf.mxu1  ;;  %v4070_v45 = vpop.f32.mrf.mxu0 }
 0x543   :  { %v3372_v47 = vpop.f32.mrf.mxu1  ;;  %v3377_v48 = vpop.f32.mrf.mxu0 }
 0x545   :  { %v396_v49 = vpop.f32.mrf.mxu0  ;;  %v443_v51 = vpop.f32.mrf.mxu1 }
 0x546   :  { %v499_v52 = vmul.f32 0.35355338, %v443_v51 }
 0x547   :  { %v3378_v53 = vpop.f32.mrf.mxu0  ;;  %v3383_v54 = vpop.f32.mrf.mxu1 }
 0x548   :  { %v501_v55 = vsel %vm4024_vm3, %v499_v52, -1e+30 }
 0x549   :  { %v446_v57 = vpop.f32.mrf.mxu1  ;;  %v493_v58 = vpop.f32.mrf.mxu0  ;;  %v503_v59 = vsel %vm176_vm2, %v501_v55, -inf }
 0x54a   :  { %v500_v60 = vmul.f32 0.35355338, %v493_v58  ;;  %504 = vmax.xlane.f32.xlu0 %v503_v59 }
 0x54b   :  { %v3384_v61 = vpop.f32.mrf.mxu1  ;;  %v3389_v62 = vpop.f32.mrf.mxu0 }
 0x54c   :  { %v502_v63 = vsel %vm4024_vm3, %v500_v60, -1e+30 }
 0x54d   :  { %v496_v0 = vpop.f32.mrf.mxu0  ;;  %v506_v1 = vsel %vm176_vm2, %v502_v63, -inf }
 0x54e   :  { %507 = vmax.xlane.f32.xlu1 %v506_v1 }
 0x54f   :  { %v3390_v2 = vpop.f32.mrf.mxu0 }
 0x55f   :  { %575 = vrot.lane.b32.xlu1 %v4007_v50, %s3861_s29 }
 0x563   :  { %625 = vrot.lane.b32.xlu1 %v4003_v46, %s3862_s30 }
 0x567   :  { %675 = vrot.lane.b32.xlu1 %v4007_v50, %s3862_s30 }
 0x56b   :  { %673 = vrot.lane.b32.xlu1 %v4007_v50, %s3863_s15 }
 0x5d3   :  { %v505_v5 = vpop.xlane.xlu0 %504 }
 0x5d4   :  { %v509_v6 = vsub.f32 %v501_v55, %v505_v5 }
 0x5d6   :  { %v511_v7 = vmul.f32 1.442695, %v509_v6 }
 0x5d7   :  { %v508_v8 = vpop.xlane.xlu1 %507 }
 0x5d8   :  { %3741 = vpow2.f32 %v511_v7  ;;  %v510_v9 = vsub.f32 %v502_v63, %v508_v8 }
 0x5da   :  { %v513_v10 = vmul.f32 1.442695, %v510_v9 }
 0x5db   :  { %v576_v11 = vpop.permute.xlu1 %575 }
 0x5dc   :  { %3743 = vpow2.f32 %v513_v10  ;;  %v581_v12 = vsel %vm307_vm4, %v576_v11, 0 }
 0x5dd   :  { %3398 = vmatpush3.bf16.msra.mxu0 %v581_v12 }
 0x5de   :  { %3409 = vmatprep.subr.bf16.mxu0 %v3855_v18 }
 0x5df   :  { %v626_v23 = vpop.permute.xlu1 %625 }
 0x5e0   :  { %v631_v30 = vsel %vm176_vm2, %v626_v23, 0 }
 0x5e3   :  { %v676_v32 = vpop.permute.xlu1 %675 }
 0x5e4   :  { %v681_v35 = vsel %vm176_vm2, %v676_v32, 0 }
 0x5e5   :  { %v3742_v13 = vpop.eup %3741 }
 0x5e6   :  { %v515_v14 = vsel %vm176_vm2, %v3742_v13, 0.0 }
 0x5e7   :  { %516 = vadd.xlane.f32.xlu0 %v515_v14  ;;  %v674_v37 = vpop.permute.xlu1 %673 }
 0x5e9   :  { %v3744_v15 = vpop.eup %3743 }
 0x5ea   :  { %v518_v16 = vsel %vm176_vm2, %v3744_v15, 0.0 }
 0x5eb   :  { %519 = vadd.xlane.f32.xlu0 %v518_v16 }
 0x601   :  { %527 = vrot.lane.b32.xlu0 %v4003_v46, %s3861_s29 }
 0x605   :  { %623 = vrot.lane.b32.xlu0 %v4003_v46, %s3863_s15 }
 0x670   :  { %v517_v17 = vpop.xlane.xlu0 %516 }
 0x671   :  { %3745 = vrcp.f32 %v517_v17 }
 0x674   :  { %v520_v19 = vpop.xlane.xlu0 %519 }
 0x675   :  { %3747 = vrcp.f32 %v520_v19 }
 0x678   :  { %v528_v20 = vpop.permute.xlu0 %527 }
 0x679   :  { %v533_v21 = vsel %vm307_vm4, %v528_v20, 0 }
 0x67a   :  { %3392 = vmatpush3.bf16.msra.mxu1 %v533_v21 }
 0x67b   :  { %3403 = vmatprep.subr.bf16.mxu1 %v3855_v18 }
 0x67c   :  { %v624_v36 = vpop.permute.xlu0 %623 }
 0x67e   :  { %v3746_v22 = vpop.eup %3745 }
 0x67f   :  { %v523_v24 = vmul.f32 %v3746_v22, %v3742_v13 }
 0x681   :  { %v525_v25 = vpack.c.bf16 %v523_v24, %v523_v24 }
 0x682   :  { %v3748_v26 = vpop.eup %3747 }
 0x683   :  { %3394 = vmatmul.mubr.msk.bf16.vlgmr.msra.gmra.mxu1 %vm176_vm2, %v525_v25  ;;  %v524_v31 = vmul.f32 %v3748_v26, %v3744_v15 }
 0x684   :  { %3404 = vmatpush3.bf16.xpose.msra.mxu1 %v631_v30  ;;  %3405 = vmatprep.mubr.msk.bf16.mxu1 %vm3856_vm1, %v3855_v18 }
 0x685   :  { %v526_v34 = vpack.c.bf16 %v524_v31, %v524_v31  ;;  %3415 = vmatprep.subr.bf16.mxu1 %v3855_v18 }
 0x687   :  { %3400 = vmatmul.mubr.msk.bf16.vlgmr.msra.gmra.mxu0 %vm176_vm2, %v526_v34 }
 0x688   :  { %3410 = vmatpush3.bf16.xpose.msra.mxu0 %v681_v35  ;;  %3411 = vmatprep.mubr.msk.bf16.mxu0 %vm3856_vm1, %v3855_v18 }
 0x689   :  { %3421 = vmatprep.subr.bf16.mxu0 %v3855_v18 }
 0x68b   :  { %3406 = vmatmul.mubr.msk.bf16.vlgmr.msra.gmra.mxu1 %vm176_vm2, %v624_v36 }
 0x68c   :  { %3417 = vmatprep.mubr.msk.bf16.mxu1 %vm3856_vm1, %v3855_v18 }
 0x68f   :  { %3412 = vmatmul.mubr.msk.bf16.vlgmr.msra.gmra.mxu0 %vm176_vm2, %v674_v37 }
 0x690   :  { %3423 = vmatprep.mubr.msk.bf16.mxu0 %vm3856_vm1, %v3855_v18 }
 0x743   :  { %v4112_v38 = vpop.f32.mrf.mxu1 }
 0x745   :  { %v3395_v39 = vpop.f32.mrf.mxu1 }
 0x747   :  { %v572_v40 = vpop.f32.mrf.mxu1  ;;  %v4114_v41 = vpop.f32.mrf.mxu0 }
 0x748   :  { %v3669_v43 = vpack.i.bf16 %v4114_v41, %v4112_v38 }
 0x749   :  { %v3396_v44 = vpop.f32.mrf.mxu1  ;;  %v3401_v47 = vpop.f32.mrf.mxu0 }
 0x74b   :  { %v620_v48 = vpop.f32.mrf.mxu0  ;;  %v667_v49 = vpop.f32.mrf.mxu1 }
 0x74c   :  { %v723_v51 = vmul.f32 0.35355338, %v667_v49 }
 0x74d   :  { %v3402_v52 = vpop.f32.mrf.mxu0  ;;  %v3407_v53 = vpop.f32.mrf.mxu1 }
 0x74e   :  { %v725_v54 = vsel %vm4024_vm3, %v723_v51, -1e+30 }
 0x74f   :  { %v670_v55 = vpop.f32.mrf.mxu1  ;;  %v717_v57 = vpop.f32.mrf.mxu0  ;;  %v727_v58 = vsel %vm176_vm2, %v725_v54, -inf }
 0x750   :  { %v724_v59 = vmul.f32 0.35355338, %v717_v57  ;;  %728 = vmax.xlane.f32.xlu0 %v727_v58 }
 0x751   :  { %v3408_v60 = vpop.f32.mrf.mxu1  ;;  %v3413_v61 = vpop.f32.mrf.mxu0 }
 0x752   :  { %v726_v62 = vsel %vm4024_vm3, %v724_v59, -1e+30 }
 0x753   :  { %v720_v63 = vpop.f32.mrf.mxu0  ;;  %v730_v0 = vsel %vm176_vm2, %v726_v62, -inf }
 0x754   :  { %731 = vmax.xlane.f32.xlu1 %v730_v0 }
 0x755   :  { %v3414_v1 = vpop.f32.mrf.mxu0 }
 0x765   :  { %799 = vrot.lane.b32.xlu1 %v4007_v50, %s3864_s16 }
 0x769   :  { %849 = vrot.lane.b32.xlu1 %v4003_v46, %s3865_s17 }
 0x76d   :  { %899 = vrot.lane.b32.xlu1 %v4007_v50, %s3865_s17 }
 0x771   :  { %897 = vrot.lane.b32.xlu1 %v4007_v50, %s3866_s18 }
 0x7d9   :  { %v729_v2 = vpop.xlane.xlu0 %728 }
 0x7da   :  { %v733_v5 = vsub.f32 %v725_v54, %v729_v2 }
 0x7dc   :  { %v735_v6 = vmul.f32 1.442695, %v733_v5 }
 0x7dd   :  { %v732_v7 = vpop.xlane.xlu1 %731 }
 0x7de   :  { %3749 = vpow2.f32 %v735_v6  ;;  %v734_v8 = vsub.f32 %v726_v62, %v732_v7 }
 0x7e0   :  { %v737_v9 = vmul.f32 1.442695, %v734_v8 }
 0x7e1   :  { %v800_v10 = vpop.permute.xlu1 %799 }
 0x7e2   :  { %3751 = vpow2.f32 %v737_v9  ;;  %v805_v11 = vsel %vm307_vm4, %v800_v10, 0 }
 0x7e3   :  { %3422 = vmatpush3.bf16.msra.mxu0 %v805_v11 }
 0x7e4   :  { %3433 = vmatprep.subr.bf16.mxu0 %v3855_v18 }
 0x7e5   :  { %v850_v22 = vpop.permute.xlu1 %849 }
 0x7e6   :  { %v855_v26 = vsel %vm176_vm2, %v850_v22, 0 }
 0x7e9   :  { %v900_v31 = vpop.permute.xlu1 %899 }
 0x7ea   :  { %v905_v34 = vsel %vm176_vm2, %v900_v31, 0 }
 0x7eb   :  { %v3750_v12 = vpop.eup %3749 }
 0x7ec   :  { %v739_v13 = vsel %vm176_vm2, %v3750_v12, 0.0 }
 0x7ed   :  { %740 = vadd.xlane.f32.xlu0 %v739_v13  ;;  %v898_v36 = vpop.permute.xlu1 %897 }
 0x7ef   :  { %v3752_v14 = vpop.eup %3751 }
 0x7f0   :  { %v742_v15 = vsel %vm176_vm2, %v3752_v14, 0.0 }
 0x7f1   :  { %743 = vadd.xlane.f32.xlu0 %v742_v15 }
 0x807   :  { %751 = vrot.lane.b32.xlu0 %v4003_v46, %s3864_s16 }
 0x80b   :  { %847 = vrot.lane.b32.xlu0 %v4003_v46, %s3866_s18 }
 0x876   :  { %v741_v16 = vpop.xlane.xlu0 %740 }
 0x877   :  { %3753 = vrcp.f32 %v741_v16 }
 0x87a   :  { %v744_v17 = vpop.xlane.xlu0 %743 }
 0x87b   :  { %3755 = vrcp.f32 %v744_v17 }
 0x87e   :  { %v752_v19 = vpop.permute.xlu0 %751 }
 0x87f   :  { %v757_v20 = vsel %vm307_vm4, %v752_v19, 0 }
 0x880   :  { %3416 = vmatpush3.bf16.msra.mxu1 %v757_v20 }
 0x881   :  { %3427 = vmatprep.subr.bf16.mxu1 %v3855_v18 }
 0x882   :  { %v848_v35 = vpop.permute.xlu0 %847 }
 0x884   :  { %v3754_v21 = vpop.eup %3753 }
 0x885   :  { %v747_v23 = vmul.f32 %v3754_v21, %v3750_v12 }
 0x887   :  { %v749_v24 = vpack.c.bf16 %v747_v23, %v747_v23 }
 0x888   :  { %v3756_v25 = vpop.eup %3755 }
 0x889   :  { %3418 = vmatmul.mubr.msk.bf16.vlgmr.msra.gmra.mxu1 %vm176_vm2, %v749_v24  ;;  %v748_v30 = vmul.f32 %v3756_v25, %v3752_v14  ;;  %v3701_v24 = vld [vmem:[%s4645_s7 + $0x8] sm:$0xff]   ;;  %v3702_v25 = vld [vmem:[%s4645_s7] sm:$0xff]  }
 0x88a   :  { %3428 = vmatpush3.bf16.xpose.msra.mxu1 %v855_v26  ;;  %3429 = vmatprep.mubr.msk.bf16.mxu1 %vm3856_vm1, %v3855_v18 }
 0x88b   :  { %v750_v32 = vpack.c.bf16 %v748_v30, %v748_v30  ;;  %3439 = vmatprep.subr.bf16.mxu1 %v3855_v18 }
 0x88d   :  { %3424 = vmatmul.mubr.msk.bf16.vlgmr.msra.gmra.mxu0 %vm176_vm2, %v750_v32 }
 0x88e   :  { %3434 = vmatpush3.bf16.xpose.msra.mxu0 %v905_v34  ;;  %3435 = vmatprep.mubr.msk.bf16.mxu0 %vm3856_vm1, %v3855_v18 }
 0x88f   :  { %3445 = vmatprep.subr.bf16.mxu0 %v3855_v18 }
 0x891   :  { %3430 = vmatmul.mubr.msk.bf16.vlgmr.msra.gmra.mxu1 %vm176_vm2, %v848_v35 }
 0x892   :  { %3441 = vmatprep.mubr.msk.bf16.mxu1 %vm3856_vm1, %v3855_v18 }
 0x895   :  { %3436 = vmatmul.mubr.msk.bf16.vlgmr.msra.gmra.mxu0 %vm176_vm2, %v898_v36 }
 0x896   :  { %3447 = vmatprep.mubr.msk.bf16.mxu0 %vm3856_vm1, %v3855_v18 }
 0x949   :  { %v793_v37 = vpop.f32.mrf.mxu1 }
 0x94b   :  { %v3419_v39 = vpop.f32.mrf.mxu1 }
 0x94d   :  { %v796_v40 = vpop.f32.mrf.mxu1  ;;  %v841_v44 = vpop.f32.mrf.mxu0 }
 0x94e   :  { %v3674_v5 = vpack.i.bf16 %v841_v44, %v793_v37 }
 0x94f   :  { %v3420_v47 = vpop.f32.mrf.mxu1  ;;  %v3425_v48 = vpop.f32.mrf.mxu0 }
 0x951   :  { %v844_v49 = vpop.f32.mrf.mxu0  ;;  %v891_v51 = vpop.f32.mrf.mxu1 }
 0x952   :  { %v947_v52 = vmul.f32 0.35355338, %v891_v51 }
 0x953   :  { %v3426_v53 = vpop.f32.mrf.mxu0  ;;  %v3431_v54 = vpop.f32.mrf.mxu1 }
 0x954   :  { %v949_v55 = vsel %vm4024_vm3, %v947_v52, -1e+30 }
 0x955   :  { %v894_v57 = vpop.f32.mrf.mxu1  ;;  %v941_v58 = vpop.f32.mrf.mxu0  ;;  %v951_v59 = vsel %vm176_vm2, %v949_v55, -inf }
 0x956   :  { %v948_v60 = vmul.f32 0.35355338, %v941_v58  ;;  %952 = vmax.xlane.f32.xlu0 %v951_v59 }
 0x957   :  { %v3432_v61 = vpop.f32.mrf.mxu1  ;;  %v3437_v62 = vpop.f32.mrf.mxu0 }
 0x958   :  { %v950_v63 = vsel %vm4024_vm3, %v948_v60, -1e+30 }
 0x959   :  { %v944_v0 = vpop.f32.mrf.mxu0  ;;  %v954_v1 = vsel %vm176_vm2, %v950_v63, -inf }
 0x95a   :  { %955 = vmax.xlane.f32.xlu1 %v954_v1 }
 0x95b   :  { %v3438_v2 = vpop.f32.mrf.mxu0 }
 0x96b   :  { %1023 = vrot.lane.b32.xlu1 %v4007_v50, %s3867_s0 }
 0x96f   :  { %3670 = vrot.lane.b32.xlu1 %v3669_v43, %s4655_s12 }
 0x973   :  { %3675 = vrot.lane.b32.xlu1 %v3674_v5, %s4654_s19 }
 0x9df   :  { %v953_v6 = vpop.xlane.xlu0 %952 }
 0x9e0   :  { %v957_v7 = vsub.f32 %v949_v55, %v953_v6 }
 0x9e2   :  { %v959_v8 = vmul.f32 1.442695, %v957_v7 }
 0x9e3   :  { %v956_v9 = vpop.xlane.xlu1 %955 }
 0x9e4   :  { %3757 = vpow2.f32 %v959_v8  ;;  %v958_v10 = vsub.f32 %v950_v63, %v956_v9 }
 0x9e6   :  { %v961_v11 = vmul.f32 1.442695, %v958_v10 }
 0x9e7   :  { %v1024_v12 = vpop.permute.xlu1 %1023 }
 0x9e8   :  { %3759 = vpow2.f32 %v961_v11  ;;  %v1029_v50 = vsel %vm307_vm4, %v1024_v12, 0 }
 0x9e9   :  { %3446 = vmatpush3.bf16.msra.mxu0 %v1029_v50 }
 0x9ea   :  { %3459 = vmatprep.subr.bf16.mxu0 %v3855_v18 }
 0x9eb   :  { %v3671_v40 = vpop.permute.xlu1 %3670 }
 0x9ec   :  { %v3673_v47 = vunpack.i.h.bf16 %v3671_v40  ;;  %v3672_v48 = vunpack.i.l.bf16 %v3671_v40 }
 0x9ee   :  { %v1096_v53 = vsel %vm176_vm2, %v4070_v45, %v3673_v47  ;;  %v1095_v54 = vsel %vm176_vm2, %v4068_v42, %v3672_v48  ;;  %v1168_v45 = vsub.s32 2, %v3982_v27  ;;  %v3706_v47 = vld [vmem:[%s4644_s6 + $0x30] sm:$0xff]   ;;  %v3707_v48 = vld [vmem:[%s4644_s6 + $0x28] sm:$0xff]  }
 0x9ef   :  { %v3676_v44 = vpop.permute.xlu1 %3675 }
 0x9f0   :  { %v3678_v49 = vunpack.i.h.bf16 %v3676_v44  ;;  %v3677_v51 = vunpack.i.l.bf16 %v3676_v44  ;;  %v1169_v42 = vrot.slane %v3988_v29, %v1168_v45  ;;  %v3705_v44 = vld [vmem:[%s4644_s6 + $0x38] sm:$0xff]  }
 0x9f1   :  { %v3758_v38 = vpop.eup %3757 }
 0x9f2   :  { %v963_v41 = vsel %vm176_vm2, %v3758_v38, 0.0  ;;  %v1098_v58 = vsel %vm1097_vm5, %v1095_v54, %v3677_v51  ;;  %v1099_v59 = vsel %vm1097_vm5, %v1096_v53, %v3678_v49  ;;  %v3708_v49 = vld [vmem:[%s4644_s6 + $0x20] sm:$0xff]   ;;  %v3709_v51 = vld [vmem:[%s4644_s6 + $0x18] sm:$0xff]   ;;  %v3711_v53 = vld [vmem:[%s4644_s6 + $0x8] sm:$0xff]  }
 0x9f3   :  { %964 = vadd.xlane.f32.xlu0 %v963_v41  ;;  %v3712_v54 = vld [vmem:[%s4644_s6] sm:$0xff]  }
 0x9f5   :  { %v3760_v43 = vpop.eup %3759 }
 0x9f6   :  { %v966_v13 = vsel %vm176_vm2, %v3760_v43, 0.0 }
 0x9f7   :  { %967 = vadd.xlane.f32.xlu0 %v966_v13 }
 0xa0d   :  { %975 = vrot.lane.b32.xlu0 %v4003_v46, %s3867_s0 }
 0xa7c   :  { %v965_v14 = vpop.xlane.xlu0 %964 }
 0xa7d   :  { %3761 = vrcp.f32 %v965_v14 }
 0xa80   :  { %v968_v15 = vpop.xlane.xlu0 %967 }
 0xa81   :  { %3763 = vrcp.f32 %v968_v15  ;;  %v3703_v15 = vld [vmem:[%s4643_s5 + $0x8] sm:$0xff]  }
 0xa84   :  { %v976_v16 = vpop.permute.xlu0 %975 }
 0xa85   :  { %v981_v17 = vsel %vm307_vm4, %v976_v16, 0  ;;  %v3704_v16 = vld [vmem:[%s4643_s5] sm:$0xff]  }
 0xa86   :  { %3440 = vmatpush3.bf16.msra.mxu1 %v981_v17 }
 0xa87   :  { %3451 = vmatprep.subr.bf16.mxu1 %v3855_v18 }
 0xa8a   :  { %v3762_v19 = vpop.eup %3761 }
 0xa8b   :  { %v971_v20 = vmul.f32 %v3762_v19, %v3758_v38 }
 0xa8d   :  { %v973_v21 = vpack.c.bf16 %v971_v20, %v971_v20 }
 0xa8e   :  { %v3764_v22 = vpop.eup %3763 }
 0xa8f   :  { %3442 = vmatmul.mubr.msk.bf16.vlgmr.msra.gmra.mxu1 %vm176_vm2, %v973_v21  ;;  %v972_v23 = vmul.f32 %v3764_v22, %v3760_v43 }
 0xa90   :  { %3455 = vmatprep.mubr.msk.bf16.mxu1 %vm3856_vm1, %v3855_v18  ;;  %3452 = vmatpush3.bf16.msra.mxu1 %v3701_v24 }
 0xa91   :  { %v974_v46 = vpack.c.bf16 %v972_v23, %v972_v23  ;;  %3453 = vmatprep.subr.bf16.mxu1 %v3855_v18 }
 0xa93   :  { %3448 = vmatmul.mubr.msk.bf16.vlgmr.msra.gmra.mxu0 %vm176_vm2, %v974_v46  ;;  %v1200_v46 = vsub.s32 3, %v3982_v27 }
 0xa94   :  { %3463 = vmatprep.mubr.msk.bf16.mxu0 %vm3856_vm1, %v3855_v18  ;;  %3454 = vmatpush3.bf16.msra.mxu1 %v3702_v25 }
 0xa95   :  { %3467 = vmatprep.subr.bf16.mxu1 %v3855_v18  ;;  %3460 = vmatpush3.bf16.msra.mxu0 %v3703_v15 }
 0xa96   :  { %3461 = vmatprep.subr.bf16.mxu0 %v3855_v18 }
 0xa99   :  { %3462 = vmatpush3.bf16.msra.mxu0 %v3704_v16 }
 0xa9a   :  { %3487 = vmatprep.subr.bf16.mxu0 %v3855_v18 }
 0xb4f   :  { %v1017_v26 = vpop.f32.mrf.mxu1 }
 0xb51   :  { %v3443_v30 = vpop.f32.mrf.mxu1 }
 0xb52   :  { %v1206_v30 = vsub.s32 4, %v3982_v27 }
 0xb53   :  { %v1020_v31 = vpop.f32.mrf.mxu1  ;;  %v1065_v32 = vpop.f32.mrf.mxu0 }
 0xb54   :  { %v3679_v34 = vpack.i.bf16 %v1065_v32, %v1017_v26  ;;  %v1201_v26 = vrot.slane %v3988_v29, %v1200_v46 }
 0xb55   :  { %v3444_v35 = vpop.f32.mrf.mxu1  ;;  %v3449_v36 = vpop.f32.mrf.mxu0 }
 0xb56   :  { %3680 = vrot.lane.b32.xlu0 %v3679_v34, %s4653_s24  ;;  %v1207_v35 = vrot.slane %v3988_v29, %v1206_v30 }
 0xb57   :  { %v1068_v37 = vpop.f32.mrf.mxu0 }
 0xb59   :  { %v3450_v39 = vpop.f32.mrf.mxu0 }
 0xbc8   :  { %v3681_v52 = vpop.permute.xlu0 %3680 }
 0xbc9   :  { %v3683_v55 = vunpack.i.h.bf16 %v3681_v52  ;;  %v3682_v57 = vunpack.i.l.bf16 %v3681_v52  ;;  %v3710_v52 = vld [vmem:[%s4644_s6 + $0x10] sm:$0xff]  }
 0xbcb   :  { %v1102_v60 = vsel %vm1100_vm6, %v1099_v59, %v3683_v55  ;;  %v1101_v61 = vsel %vm1100_vm6, %v1098_v58, %v3682_v57  ;;  %v3150_v55 = vld [vmem:[%s4642_s4] ss:$0 sm:$0xff] }
 0xbcc   :  { %v1107_v62 = vpack.c.bf16 %v1102_v60, %v1101_v61 }
 0xbce   :  { %3456 = vmatmul.mubr.msk.bf16.vlgmr.msra.gmra.mxu1 %vm61_vm0, %v1107_v62 }
 0xbcf   :  { %3483 = vmatprep.mubr.msk.bf16.mxu1 %vm3856_vm1, %v3855_v18  ;;  %3468 = vmatpush3.bf16.msra.mxu1 %v3705_v44 }
 0xbd0   :  { %3469 = vmatprep.subr.bf16.mxu1 %v3855_v18 }
 0xbd3   :  { %3470 = vmatpush3.bf16.msra.mxu1 %v3706_v47 }
 0xbd4   :  { %3471 = vmatprep.subr.bf16.mxu1 %v3855_v18 }
 0xbd7   :  { %3472 = vmatpush3.bf16.msra.mxu1 %v3707_v48  ;;  %v4308_v48 = vld [vmem:[%s4648_s10 + $0x8] sm:$0x3f] }
 0xbd8   :  { %3473 = vmatprep.subr.bf16.mxu1 %v3855_v18 }
 0xbdb   :  { %3474 = vmatpush3.bf16.msra.mxu1 %v3708_v49  ;;  %v1441_v49 = vrot.slane %v4308_v48, %v91_v28  ;;  %v3170_v28 = vld [vmem:[%s4646_s8 + $0x1] ss:$0 sm:$0xff]  ;;  %s4658_s8 = smov 8  }
 0xbdc   :  { %3475 = vmatprep.subr.bf16.mxu1 %v3855_v18 }
 0xbdf   :  { %3476 = vmatpush3.bf16.msra.mxu1 %v3709_v51 }
 0xbe0   :  { %3477 = vmatprep.subr.bf16.mxu1 %v3855_v18 }
 0xbe3   :  { %3478 = vmatpush3.bf16.msra.mxu1 %v3710_v52  ;;  %v1447_v52 = vrot.slane %v4308_v48, %v97_v33 }
 0xbe4   :  { %3479 = vmatprep.subr.bf16.mxu1 %v3855_v18 }
 0xbe7   :  { %3480 = vmatpush3.bf16.msra.mxu1 %v3711_v53 }
 0xbe8   :  { %3481 = vmatprep.subr.bf16.mxu1 %v3855_v18 }
 0xbeb   :  { %3482 = vmatpush3.bf16.msra.mxu1 %v3712_v54 }
 0xbec   :  { %3513 = vmatprep.subr.bf16.mxu1 %v3855_v18 }
 0xc8e   :  { %v1157_v63 = vpop.f32.mrf.mxu1 }
 0xc8f   :  { %v1164_v0 = vadd.f32 %v1157_v63, %v3956_v3 }
 0xc90   :  { %v3457_v1 = vpop.f32.mrf.mxu1 }
 0xc91   :  { %v4210_v2 = vadd.f32 %v1169_v42, %v1164_v0 }
 0xc92   :  { %v1160_v5 = vpop.f32.mrf.mxu1 }
 0xc93   :  { %v1165_v6 = vadd.f32 %v1160_v5, %v3958_v4  ;;  %v1172_v7 = vsel %vm61_vm0, %v4210_v2, 0.0 }
 0xc94   :  { %1173 = vadd.xlane.f32.xlu1 %v1172_v7  ;;  %v3458_v8 = vpop.f32.mrf.mxu1 }
 0xc95   :  { %v4215_v9 = vadd.f32 %v1169_v42, %v1165_v6 }
 0xc97   :  { %v1175_v10 = vsel %vm61_vm0, %v4215_v9, 0.0 }
 0xc98   :  { %1176 = vadd.xlane.f32.xlu0 %v1175_v10 }
 0xd1d   :  { %v1174_v11 = vpop.xlane.xlu1 %1173 }
 0xd1e   :  { %v1178_v12 = vmul.f32 0.03125, %v1174_v11 }
 0xd20   :  { %v1180_v3 = vsub.f32 %v4210_v2, %v1178_v12 }
 0xd21   :  { %v1177_v50 = vpop.xlane.xlu0 %1176 }
 0xd22   :  { %v1179_v38 = vmul.f32 0.03125, %v1177_v50  ;;  %v1182_v41 = vmul.f32 %v1180_v3, %v1180_v3 }
 0xd24   :  { %v1181_v4 = vsub.f32 %v4215_v9, %v1179_v38  ;;  %v1184_v43 = vsel %vm61_vm0, %v1182_v41, 0.0  ;;  %v1406_v38 = vsub.s32 5, %v3982_v27 }
 0xd25   :  { %1185 = vadd.xlane.f32.xlu0 %v1184_v43 }
 0xd26   :  { %v1183_v13 = vmul.f32 %v1181_v4, %v1181_v4  ;;  %v1407_v41 = vrot.slane %v3988_v29, %v1406_v38 }
 0xd28   :  { %v1187_v14 = vsel %vm61_vm0, %v1183_v13, 0.0 }
 0xd29   :  { %1188 = vadd.xlane.f32.xlu0 %v1187_v14 }
 0xdae   :  { %v1186_v17 = vpop.xlane.xlu0 %1185 }
 0xdaf   :  { %v1190_v19 = vmul.f32 0.03125, %v1186_v17 }
 0xdb1   :  { %v1192_v20 = vadd.f32 1e-05, %v1190_v19 }
 0xdb2   :  { %v1189_v21 = vpop.xlane.xlu0 %1188 }
 0xdb3   :  { %3765 = vrsqrt.f32 %v1192_v20  ;;  %v1191_v22 = vmul.f32 0.03125, %v1189_v21 }
 0xdb5   :  { %v1193_v23 = vadd.f32 1e-05, %v1191_v22 }
 0xdb7   :  { %3767 = vrsqrt.f32 %v1193_v23 }
 0xdc0   :  { %v3766_v24 = vpop.eup %3765 }
 0xdc1   :  { %v1196_v25 = vmul.f32 %v3766_v24, %v1180_v3 }
 0xdc3   :  { %v1202_v34 = vmul.f32 %v1201_v26, %v1196_v25 }
 0xdc4   :  { %v3768_v31 = vpop.eup %3767 }
 0xdc5   :  { %v1197_v32 = vmul.f32 %v3768_v31, %v1181_v4  ;;  %v1208_v37 = vadd.f32 %v1207_v35, %v1202_v34  ;;  %v3713_v34 = vld [vmem:[%s4647_s9 + $0x18] sm:$0xff]  }
 0xdc7   :  { %v1203_v36 = vmul.f32 %v1201_v26, %v1197_v32 }
 0xdc9   :  { %v1209_v39 = vadd.f32 %v1207_v35, %v1203_v36  ;;  %v3714_v35 = vld [vmem:[%s4647_s9 + $0x10] sm:$0xff]  }
 0xdcb   :  { %v1214_v40 = vpack.c.bf16 %v1209_v39, %v1208_v37 }
 0xdcd   :  { %3464 = vmatmul.mubr.msk.bf16.vlgmr.msra.gmra.mxu0 %vm61_vm0, %v1214_v40 }
 0xdce   :  { %3491 = vmatprep.mubr.msk.bf16.mxu0 %vm3856_vm1, %v3855_v18  ;;  %3488 = vmatpush3.bf16.msra.mxu0 %v3713_v34 }
 0xdcf   :  { %3489 = vmatprep.subr.bf16.mxu0 %v3855_v18 }
 0xdd2   :  { %3490 = vmatpush3.bf16.msra.mxu0 %v3714_v35 }
 0xdd3   :  { %3495 = vmatprep.subr.bf16.mxu0 %v3855_v18 }
 0xe8d   :  { %v1264_v57 = vpop.f32.mrf.mxu0 }
 0xe8e   :  { %v1278_v58 = vadd.f32 %v3150_v55, %v1264_v57 }
 0xe8f   :  { %v3465_v59 = vpop.f32.mrf.mxu0 }
 0xe90   :  { %v3151_v60 = vmul.f32 -1.702, %v1278_v58 }
 0xe91   :  { %v1267_v61 = vpop.f32.mrf.mxu0 }
 0xe92   :  { %v1284_v62 = vmul.f32 1.442695, %v3151_v60  ;;  %v1279_v42 = vadd.f32 %v3150_v55, %v1267_v61 }
 0xe93   :  { %v3466_v63 = vpop.f32.mrf.mxu0 }
 0xe94   :  { %3769 = vpow2.f32 %v1284_v62  ;;  %v3152_v0 = vmul.f32 -1.702, %v1279_v42 }
 0xe96   :  { %v1286_v1 = vmul.f32 1.442695, %v3152_v0 }
 0xe98   :  { %3771 = vpow2.f32 %v1286_v1 }
 0xea1   :  { %v3770_v5 = vpop.eup %3769 }
 0xea2   :  { %v1288_v6 = vadd.f32 1.0, %v3770_v5 }
 0xea4   :  { %3773 = vrcp.f32 %v1288_v6 }
 0xea5   :  { %v3772_v7 = vpop.eup %3771 }
 0xea6   :  { %v1289_v8 = vadd.f32 1.0, %v3772_v7 }
 0xea8   :  { %3775 = vrcp.f32 %v1289_v8 }
 0xeb1   :  { %v3774_v10 = vpop.eup %3773 }
 0xeb2   :  { %v1294_v12 = vmul.f32 %v3774_v10, %v1278_v58 }
 0xeb5   :  { %v3776_v11 = vpop.eup %3775 }
 0xeb6   :  { %v1295_v3 = vmul.f32 %v3776_v11, %v1279_v42 }
 0xeb8   :  { %v1312_v50 = vpack.c.bf16 %v1295_v3, %v1294_v12 }
 0xeba   :  { %3484 = vmatmul.mubr.bf16.vlgmr.msra.gmra.mxu1 %v1312_v50 }
 0xebb   :  { %3515 = vmatprep.mubr.msk.bf16.mxu1 %vm3856_vm1, %v3855_v18 }
 0xf7a   :  { %v1395_v4 = vpop.f32.mrf.mxu1 }
 0xf7b   :  { %v1402_v43 = vadd.f32 %v1395_v4, %v4210_v2 }
 0xf7c   :  { %v3485_v13 = vpop.f32.mrf.mxu1 }
 0xf7d   :  { %v4284_v14 = vadd.f32 %v1407_v41, %v1402_v43 }
 0xf7e   :  { %v1398_v15 = vpop.f32.mrf.mxu1 }
 0xf7f   :  { %v1403_v16 = vadd.f32 %v1398_v15, %v4215_v9  ;;  %v1412_v17 = vsel %vm61_vm0, %v4284_v14, 0.0 }
 0xf80   :  { %1413 = vadd.xlane.f32.xlu1 %v1412_v17  ;;  %v3486_v19 = vpop.f32.mrf.mxu1 }
 0xf81   :  { %v4289_v20 = vadd.f32 %v1407_v41, %v1403_v16 }
 0xf83   :  { %v1415_v21 = vsel %vm61_vm0, %v4289_v20, 0.0 }
 0xf84   :  { %1416 = vadd.xlane.f32.xlu0 %v1415_v21 }
0x1009   :  { %v1414_v29 = vpop.xlane.xlu1 %1413 }
0x100a   :  { %v1418_v22 = vmul.f32 0.03125, %v1414_v29 }
0x100c   :  { %v1420_v2 = vsub.f32 %v4284_v14, %v1418_v22 }
0x100d   :  { %v1417_v23 = vpop.xlane.xlu0 %1416 }
0x100e   :  { %v1419_v24 = vmul.f32 0.03125, %v1417_v23  ;;  %v1422_v25 = vmul.f32 %v1420_v2, %v1420_v2 }
0x1010   :  { %v1421_v9 = vsub.f32 %v4289_v20, %v1419_v24  ;;  %v1424_v26 = vsel %vm61_vm0, %v1422_v25, 0.0 }
0x1011   :  { %1425 = vadd.xlane.f32.xlu1 %v1424_v26 }
0x1012   :  { %v1423_v31 = vmul.f32 %v1421_v9, %v1421_v9 }
0x1014   :  { %v1427_v32 = vsel %vm61_vm0, %v1423_v31, 0.0 }
0x1015   :  { %1428 = vadd.xlane.f32.xlu0 %v1427_v32 }
0x109a   :  { %v1426_v36 = vpop.xlane.xlu1 %1425 }
0x109b   :  { %v1430_v37 = vmul.f32 0.03125, %v1426_v36 }
0x109d   :  { %v1432_v39 = vadd.f32 1e-05, %v1430_v37 }
0x109e   :  { %v1429_v40 = vpop.xlane.xlu0 %1428 }
0x109f   :  { %3777 = vrsqrt.f32 %v1432_v39  ;;  %v1431_v44 = vmul.f32 0.03125, %v1429_v40 }
0x10a1   :  { %v1433_v47 = vadd.f32 1e-05, %v1431_v44 }
0x10a3   :  { %3779 = vrsqrt.f32 %v1433_v47 }
0x10ac   :  { %v3778_v51 = vpop.eup %3777 }
0x10ad   :  { %v1436_v53 = vmul.f32 %v3778_v51, %v1420_v2 }
0x10af   :  { %v1442_v54 = vmul.f32 %v1441_v49, %v1436_v53 }
0x10b0   :  { %v3780_v55 = vpop.eup %3779 }
0x10b1   :  { %v1437_v57 = vmul.f32 %v3780_v55, %v1421_v9  ;;  %v1448_v58 = vadd.f32 %v1447_v52, %v1442_v54 }
0x10b3   :  { %v1443_v59 = vmul.f32 %v1441_v49, %v1437_v57 }
0x10b5   :  { %v1449_v60 = vadd.f32 %v1447_v52, %v1443_v59 }
0x10b7   :  { %v1455_v61 = vpack.c.bf16 %v1449_v60, %v1448_v58 }
0x10b9   :  { %3492 = vmatmul.mubr.msk.bf16.vlgmr.msra.gmra.mxu0 %vm61_vm0, %v1455_v61 }
0x10ba   :  { %3497 = vmatprep.mubr.msk.bf16.mxu0 %vm3856_vm1, %v3855_v18 }
0x1179   :  { %v1505_v62 = vpop.f32.mrf.mxu0 }
0x117a   :  { %v1520_v42 = vadd.f32 %v3170_v28, %v1505_v62 }
0x117b   :  { %v3493_v33 = vpop.f32.mrf.mxu0 }
0x117c   :  { %v4322_v63 = vpack.c.bf16 %v1520_v42, %v1520_v42 }
0x117d   :  { %v1508_v0 = vpop.f32.mrf.mxu0 }
0x117e   :  { %v1521_v1 = vadd.f32 %v3170_v28, %v1508_v0  ;;  %1525 = vrot.lane.b32.xlu1 %v4322_v63, %s3857_s25 }
0x117f   :  { %v3494_v5 = vpop.f32.mrf.mxu0 }
0x1180   :  { %v4326_v6 = vpack.c.bf16 %v1521_v1, %v1521_v1 }
0x1182   :  { %1574 = vrot.lane.b32.xlu0 %v4326_v6, %s3857_s25  ;;  %s4659_s25 = smov 16  }
0x11f0   :  { %v1526_v7 = vpop.permute.xlu1 %1525 }
0x11f1   :  { %v1531_v8 = vsel %vm176_vm2, %v1526_v7, 0 }
0x11f2   :  { %3496 = vmatpush3.bf16.xpose.msra.mxu0 %v1531_v8 }
0x11f3   :  { %3501 = vmatprep.subr.bf16.mxu0 %v3855_v18 }
0x11f4   :  { %v1575_v10 = vpop.permute.xlu0 %1574 }
0x11f5   :  { %v1580_v11 = vsel %vm176_vm2, %v1575_v10, 0 }
0x11f9   :  { %3498 = vmatmul.mubr.msk.bf16.vlgmr.msra.gmra.mxu0 %vm176_vm2, %v4322_v63 }
0x11fa   :  { %3502 = vmatpush3.bf16.xpose.msra.mxu0 %v1580_v11  ;;  %3503 = vmatprep.mubr.msk.bf16.mxu0 %vm3856_vm1, %v3855_v18 }
0x11fb   :  { %3507 = vmatprep.subr.bf16.mxu0 %v3855_v18 }
0x1201   :  { %3504 = vmatmul.mubr.msk.bf16.vlgmr.msra.gmra.mxu0 %vm176_vm2, %v4326_v6 }
0x1202   :  { %3509 = vmatprep.mubr.msk.bf16.mxu0 %vm3856_vm1, %v3855_v18 }
0x12b9   :  { %v1567_v12 = vpop.f32.mrf.mxu0 }
0x12ba   :  { %v1622_v3 = vmul.f32 0.35355338, %v1567_v12 }
0x12bb   :  { %v3499_v50 = vpop.f32.mrf.mxu0 }
0x12bc   :  { %v1624_v41 = vsel %vm4024_vm3, %v1622_v3, -1e+30 }
0x12bd   :  { %v1570_v4 = vpop.f32.mrf.mxu0  ;;  %v1626_v43 = vsel %vm176_vm2, %v1624_v41, -inf }
0x12be   :  { %1627 = vmax.xlane.f32.xlu1 %v1626_v43 }
0x12bf   :  { %v3500_v13 = vpop.f32.mrf.mxu0 }
0x12c1   :  { %v1616_v15 = vpop.f32.mrf.mxu0 }
0x12c2   :  { %v1623_v16 = vmul.f32 0.35355338, %v1616_v15 }
0x12c3   :  { %v3505_v17 = vpop.f32.mrf.mxu0 }
0x12c4   :  { %v1625_v19 = vsel %vm4024_vm3, %v1623_v16, -1e+30 }
0x12c5   :  { %v1619_v21 = vpop.f32.mrf.mxu0  ;;  %v1629_v29 = vsel %vm176_vm2, %v1625_v19, -inf }
0x12c6   :  { %1630 = vmax.xlane.f32.xlu0 %v1629_v29 }
0x12c7   :  { %v3506_v22 = vpop.f32.mrf.mxu0 }
0x12cf   :  { %1650 = vrot.lane.b32.xlu1 %v4322_v63, %s3858_s26 }
0x1347   :  { %v1628_v2 = vpop.xlane.xlu1 %1627 }
0x1348   :  { %v1632_v23 = vsub.f32 %v1624_v41, %v1628_v2 }
0x134a   :  { %v1634_v24 = vmul.f32 1.442695, %v1632_v23 }
0x134b   :  { %v1651_v25 = vpop.permute.xlu1 %1650 }
0x134c   :  { %3781 = vpow2.f32 %v1634_v24  ;;  %v1656_v9 = vsel %vm307_vm4, %v1651_v25, 0 }
0x134d   :  { %3508 = vmatpush3.bf16.msra.mxu0 %v1656_v9 }
0x134e   :  { %3519 = vmatprep.subr.bf16.mxu0 %v3855_v18 }
0x134f   :  { %v1631_v26 = vpop.xlane.xlu0 %1630 }
0x1350   :  { %v1633_v31 = vsub.f32 %v1625_v19, %v1631_v26 }
0x1352   :  { %v1636_v32 = vmul.f32 1.442695, %v1633_v31 }
0x1354   :  { %3783 = vpow2.f32 %v1636_v32 }
0x1359   :  { %v3782_v34 = vpop.eup %3781 }
0x135a   :  { %v1638_v35 = vsel %vm176_vm2, %v3782_v34, 0.0 }
0x135b   :  { %1639 = vadd.xlane.f32.xlu1 %v1638_v35 }
0x1361   :  { %v3784_v36 = vpop.eup %3783 }
0x1362   :  { %v1641_v37 = vsel %vm176_vm2, %v3784_v36, 0.0 }
0x1363   :  { %1642 = vadd.xlane.f32.xlu0 %v1641_v37 }
0x136c   :  { %1748 = vrot.lane.b32.xlu1 %v4322_v63, %s3859_s27 }
0x1370   :  { %1798 = vrot.lane.b32.xlu1 %v4326_v6, %s3859_s27 }
0x1374   :  { %1746 = vrot.lane.b32.xlu1 %v4322_v63, %s3860_s28 }
0x1379   :  { %1698 = vrot.lane.b32.xlu0 %v4326_v6, %s3858_s26 }
0x137d   :  { %1796 = vrot.lane.b32.xlu0 %v4326_v6, %s3860_s28 }
0x13e4   :  { %v1640_v39 = vpop.xlane.xlu1 %1639 }
0x13e5   :  { %3785 = vrcp.f32 %v1640_v39 }
0x13e8   :  { %v1749_v51 = vpop.permute.xlu1 %1748 }
0x13e9   :  { %v1754_v54 = vsel %vm176_vm2, %v1749_v51, 0 }
0x13ec   :  { %v1643_v40 = vpop.xlane.xlu0 %1642  ;;  %v1799_v55 = vpop.permute.xlu1 %1798 }
0x13ed   :  { %3787 = vrcp.f32 %v1643_v40  ;;  %v1804_v61 = vsel %vm176_vm2, %v1799_v55, 0 }
0x13f0   :  { %v1699_v44 = vpop.permute.xlu0 %1698  ;;  %v1747_v60 = vpop.permute.xlu1 %1746 }
0x13f1   :  { %v1704_v47 = vsel %vm307_vm4, %v1699_v44, 0 }
0x13f2   :  { %v3786_v49 = vpop.eup %3785  ;;  %3514 = vmatpush3.bf16.msra.mxu1 %v1704_v47 }
0x13f3   :  { %v1646_v52 = vmul.f32 %v3786_v49, %v3782_v34  ;;  %3525 = vmatprep.subr.bf16.mxu1 %v3855_v18 }
0x13f4   :  { %v1797_v28 = vpop.permute.xlu0 %1796 }
0x13f5   :  { %v1648_v53 = vpack.c.bf16 %v1646_v52, %v1646_v52 }
0x13f7   :  { %3510 = vmatmul.mubr.msk.bf16.vlgmr.msra.gmra.mxu0 %vm176_vm2, %v1648_v53 }
0x13f8   :  { %3520 = vmatpush3.bf16.xpose.msra.mxu0 %v1754_v54  ;;  %3521 = vmatprep.mubr.msk.bf16.mxu0 %vm3856_vm1, %v3855_v18 }
0x13f9   :  { %3531 = vmatprep.subr.bf16.mxu0 %v3855_v18 }
0x13fa   :  { %v3788_v57 = vpop.eup %3787 }
0x13fb   :  { %v1647_v58 = vmul.f32 %v3788_v57, %v3784_v36 }
0x13fd   :  { %v1649_v59 = vpack.c.bf16 %v1647_v58, %v1647_v58 }
0x13ff   :  { %3516 = vmatmul.mubr.msk.bf16.vlgmr.msra.gmra.mxu1 %vm176_vm2, %v1649_v59  ;;  %3522 = vmatmul.mubr.msk.bf16.vlgmr.msra.gmra.mxu0 %vm176_vm2, %v1747_v60 }
0x1400   :  { %3526 = vmatpush3.bf16.xpose.msra.mxu1 %v1804_v61  ;;  %3527 = vmatprep.mubr.msk.bf16.mxu1 %vm3856_vm1, %v3855_v18 }
0x1401   :  { %3537 = vmatprep.subr.bf16.mxu1 %v3855_v18  ;;  %3533 = vmatprep.mubr.msk.bf16.mxu0 %vm3856_vm1, %v3855_v18 }
0x1407   :  { %3528 = vmatmul.mubr.msk.bf16.vlgmr.msra.gmra.mxu1 %vm176_vm2, %v1797_v28 }
0x1408   :  { %3539 = vmatprep.mubr.msk.bf16.mxu1 %vm3856_vm1, %v3855_v18 }
0x14b7   :  { %v4382_v62 = vpop.f32.mrf.mxu0 }
0x14b9   :  { %v3511_v42 = vpop.f32.mrf.mxu0 }
0x14bb   :  { %v1695_v33 = vpop.f32.mrf.mxu0 }
0x14bd   :  { %v3512_v0 = vpop.f32.mrf.mxu0 }
0x14bf   :  { %v4384_v1 = vpop.f32.mrf.mxu1  ;;  %v1790_v5 = vpop.f32.mrf.mxu0 }
0x14c0   :  { %v1846_v7 = vmul.f32 0.35355338, %v1790_v5 }
0x14c1   :  { %v3517_v8 = vpop.f32.mrf.mxu1  ;;  %v3523_v10 = vpop.f32.mrf.mxu0 }
0x14c2   :  { %v1848_v11 = vsel %vm4024_vm3, %v1846_v7, -1e+30 }
0x14c3   :  { %v1743_v12 = vpop.f32.mrf.mxu1  ;;  %v1793_v3 = vpop.f32.mrf.mxu0  ;;  %v1850_v50 = vsel %vm176_vm2, %v1848_v11, -inf }
0x14c4   :  { %1851 = vmax.xlane.f32.xlu1 %v1850_v50 }
0x14c5   :  { %v3518_v41 = vpop.f32.mrf.mxu1  ;;  %v3524_v4 = vpop.f32.mrf.mxu0 }
0x14c7   :  { %v1840_v43 = vpop.f32.mrf.mxu1 }
0x14c8   :  { %v1847_v13 = vmul.f32 0.35355338, %v1840_v43 }
0x14c9   :  { %v3529_v15 = vpop.f32.mrf.mxu1 }
0x14ca   :  { %v1849_v16 = vsel %vm4024_vm3, %v1847_v13, -1e+30 }
0x14cb   :  { %v1843_v17 = vpop.f32.mrf.mxu1  ;;  %v1853_v19 = vsel %vm176_vm2, %v1849_v16, -inf }
0x14cc   :  { %1854 = vmax.xlane.f32.xlu0 %v1853_v19 }
0x14cd   :  { %v3530_v21 = vpop.f32.mrf.mxu1 }
0x14d5   :  { %1874 = vrot.lane.b32.xlu1 %v4322_v63, %s3861_s29 }
0x14d9   :  { %1972 = vrot.lane.b32.xlu1 %v4322_v63, %s3862_s30 }
0x14dd   :  { %2022 = vrot.lane.b32.xlu1 %v4326_v6, %s3862_s30  ;;  %s4660_s30 = smov 24  }
0x14e1   :  { %1970 = vrot.lane.b32.xlu1 %v4322_v63, %s3863_s15 }
0x154d   :  { %v1852_v29 = vpop.xlane.xlu1 %1851 }
0x154e   :  { %v1856_v22 = vsub.f32 %v1848_v11, %v1852_v29 }
0x1550   :  { %v1858_v2 = vmul.f32 1.442695, %v1856_v22 }
0x1551   :  { %v1875_v23 = vpop.permute.xlu1 %1874 }
0x1552   :  { %3789 = vpow2.f32 %v1858_v2  ;;  %v1880_v24 = vsel %vm307_vm4, %v1875_v23, 0 }
0x1553   :  { %3532 = vmatpush3.bf16.msra.mxu0 %v1880_v24 }
0x1554   :  { %3543 = vmatprep.subr.bf16.mxu0 %v3855_v18 }
0x1555   :  { %v1855_v25 = vpop.xlane.xlu0 %1854  ;;  %v1973_v47 = vpop.permute.xlu1 %1972 }
0x1556   :  { %v1857_v9 = vsub.f32 %v1849_v16, %v1855_v25  ;;  %v1978_v52 = vsel %vm176_vm2, %v1973_v47, 0 }
0x1558   :  { %v1860_v26 = vmul.f32 1.442695, %v1857_v9 }
0x1559   :  { %v2023_v53 = vpop.permute.xlu1 %2022 }
0x155a   :  { %3791 = vpow2.f32 %v1860_v26  ;;  %v2028_v59 = vsel %vm176_vm2, %v2023_v53, 0 }
0x155d   :  { %v1971_v58 = vpop.permute.xlu1 %1970 }
0x155f   :  { %v3790_v31 = vpop.eup %3789 }
0x1560   :  { %v1862_v32 = vsel %vm176_vm2, %v3790_v31, 0.0 }
0x1561   :  { %1863 = vadd.xlane.f32.xlu0 %v1862_v32 }
0x1567   :  { %v3792_v34 = vpop.eup %3791 }
0x1568   :  { %v1865_v35 = vsel %vm176_vm2, %v3792_v34, 0.0 }
0x1569   :  { %1866 = vadd.xlane.f32.xlu0 %v1865_v35 }
0x157f   :  { %1922 = vrot.lane.b32.xlu0 %v4326_v6, %s3861_s29 }
0x1583   :  { %2020 = vrot.lane.b32.xlu0 %v4326_v6, %s3863_s15 }
0x15ea   :  { %v1864_v36 = vpop.xlane.xlu0 %1863 }
0x15eb   :  { %3793 = vrcp.f32 %v1864_v36 }
0x15f2   :  { %v1867_v37 = vpop.xlane.xlu0 %1866 }
0x15f3   :  { %3795 = vrcp.f32 %v1867_v37 }
0x15f6   :  { %v1923_v39 = vpop.permute.xlu0 %1922 }
0x15f7   :  { %v1928_v40 = vsel %vm307_vm4, %v1923_v39, 0 }
0x15f8   :  { %v3794_v44 = vpop.eup %3793  ;;  %3538 = vmatpush3.bf16.msra.mxu1 %v1928_v40 }
0x15f9   :  { %v1870_v49 = vmul.f32 %v3794_v44, %v3790_v31  ;;  %3549 = vmatprep.subr.bf16.mxu1 %v3855_v18 }
0x15fa   :  { %v2021_v60 = vpop.permute.xlu0 %2020 }
0x15fb   :  { %v1872_v51 = vpack.c.bf16 %v1870_v49, %v1870_v49 }
0x15fd   :  { %3534 = vmatmul.mubr.msk.bf16.vlgmr.msra.gmra.mxu0 %vm176_vm2, %v1872_v51 }
0x15fe   :  { %3544 = vmatpush3.bf16.xpose.msra.mxu0 %v1978_v52  ;;  %3545 = vmatprep.mubr.msk.bf16.mxu0 %vm3856_vm1, %v3855_v18 }
0x15ff   :  { %3555 = vmatprep.subr.bf16.mxu0 %v3855_v18 }
0x1600   :  { %v3796_v54 = vpop.eup %3795 }
0x1601   :  { %v1871_v55 = vmul.f32 %v3796_v54, %v3792_v34 }
0x1603   :  { %v1873_v57 = vpack.c.bf16 %v1871_v55, %v1871_v55 }
0x1605   :  { %3540 = vmatmul.mubr.msk.bf16.vlgmr.msra.gmra.mxu1 %vm176_vm2, %v1873_v57  ;;  %3546 = vmatmul.mubr.msk.bf16.vlgmr.msra.gmra.mxu0 %vm176_vm2, %v1971_v58 }
0x1606   :  { %3550 = vmatpush3.bf16.xpose.msra.mxu1 %v2028_v59  ;;  %3551 = vmatprep.mubr.msk.bf16.mxu1 %vm3856_vm1, %v3855_v18 }
0x1607   :  { %3561 = vmatprep.subr.bf16.mxu1 %v3855_v18  ;;  %3557 = vmatprep.mubr.msk.bf16.mxu0 %vm3856_vm1, %v3855_v18 }
0x160d   :  { %3552 = vmatmul.mubr.msk.bf16.vlgmr.msra.gmra.mxu1 %vm176_vm2, %v2021_v60 }
0x160e   :  { %3563 = vmatprep.mubr.msk.bf16.mxu1 %vm3856_vm1, %v3855_v18 }
0x16bd   :  { %v4426_v61 = vpop.f32.mrf.mxu0 }
0x16bf   :  { %v3535_v28 = vpop.f32.mrf.mxu0 }
0x16c1   :  { %v1919_v42 = vpop.f32.mrf.mxu0 }
0x16c3   :  { %v3536_v33 = vpop.f32.mrf.mxu0 }
0x16c5   :  { %v4428_v0 = vpop.f32.mrf.mxu1  ;;  %v2014_v5 = vpop.f32.mrf.mxu0 }
0x16c6   :  { %v3684_v7 = vpack.i.bf16 %v4428_v0, %v4426_v61  ;;  %v2070_v8 = vmul.f32 0.35355338, %v2014_v5 }
0x16c7   :  { %v3541_v10 = vpop.f32.mrf.mxu1  ;;  %v3547_v11 = vpop.f32.mrf.mxu0 }
0x16c8   :  { %v2072_v12 = vsel %vm4024_vm3, %v2070_v8, -1e+30 }
0x16c9   :  { %v1967_v3 = vpop.f32.mrf.mxu1  ;;  %v2017_v50 = vpop.f32.mrf.mxu0  ;;  %v2074_v41 = vsel %vm176_vm2, %v2072_v12, -inf }
0x16ca   :  { %2075 = vmax.xlane.f32.xlu1 %v2074_v41 }
0x16cb   :  { %v3542_v4 = vpop.f32.mrf.mxu1  ;;  %v3548_v43 = vpop.f32.mrf.mxu0 }
0x16cd   :  { %v2064_v13 = vpop.f32.mrf.mxu1 }
0x16ce   :  { %v2071_v15 = vmul.f32 0.35355338, %v2064_v13 }
0x16cf   :  { %v3553_v16 = vpop.f32.mrf.mxu1 }
0x16d0   :  { %v2073_v17 = vsel %vm4024_vm3, %v2071_v15, -1e+30 }
0x16d1   :  { %v2067_v19 = vpop.f32.mrf.mxu1  ;;  %v2077_v21 = vsel %vm176_vm2, %v2073_v17, -inf }
0x16d2   :  { %2078 = vmax.xlane.f32.xlu0 %v2077_v21 }
0x16d3   :  { %v3554_v29 = vpop.f32.mrf.mxu1 }
0x16db   :  { %2098 = vrot.lane.b32.xlu1 %v4322_v63, %s3864_s16 }
0x16df   :  { %2196 = vrot.lane.b32.xlu1 %v4322_v63, %s3865_s17 }
0x16e3   :  { %2246 = vrot.lane.b32.xlu1 %v4326_v6, %s3865_s17 }
0x16e7   :  { %2194 = vrot.lane.b32.xlu1 %v4322_v63, %s3866_s18 }
0x1753   :  { %v2076_v22 = vpop.xlane.xlu1 %2075 }
0x1754   :  { %v2080_v2 = vsub.f32 %v2072_v12, %v2076_v22 }
0x1756   :  { %v2082_v23 = vmul.f32 1.442695, %v2080_v2 }
0x1757   :  { %v2099_v24 = vpop.permute.xlu1 %2098 }
0x1758   :  { %3797 = vpow2.f32 %v2082_v23  ;;  %v2104_v25 = vsel %vm307_vm4, %v2099_v24, 0 }
0x1759   :  { %3556 = vmatpush3.bf16.msra.mxu0 %v2104_v25 }
0x175a   :  { %3567 = vmatprep.subr.bf16.mxu0 %v3855_v18 }
0x175b   :  { %v2079_v9 = vpop.xlane.xlu0 %2078  ;;  %v2197_v49 = vpop.permute.xlu1 %2196 }
0x175c   :  { %v2081_v26 = vsub.f32 %v2073_v17, %v2079_v9  ;;  %v2202_v53 = vsel %vm176_vm2, %v2197_v49, 0 }
0x175e   :  { %v2084_v31 = vmul.f32 1.442695, %v2081_v26 }
0x175f   :  { %v2247_v54 = vpop.permute.xlu1 %2246 }
0x1760   :  { %3799 = vpow2.f32 %v2084_v31  ;;  %v2252_v60 = vsel %vm176_vm2, %v2247_v54, 0  ;;  %v3716_v54 = vld [vmem:[%s4645_s7 + $0x10] sm:$0xff]  }
0x1763   :  { %v2195_v59 = vpop.permute.xlu1 %2194 }
0x1765   :  { %v3798_v32 = vpop.eup %3797 }
0x1766   :  { %v2086_v34 = vsel %vm176_vm2, %v3798_v32, 0.0 }
0x1767   :  { %2087 = vadd.xlane.f32.xlu0 %v2086_v34 }
0x176d   :  { %v3800_v35 = vpop.eup %3799 }
0x176e   :  { %v2089_v36 = vsel %vm176_vm2, %v3800_v35, 0.0 }
0x176f   :  { %2090 = vadd.xlane.f32.xlu0 %v2089_v36 }
0x1785   :  { %2146 = vrot.lane.b32.xlu0 %v4326_v6, %s3864_s16 }
0x1789   :  { %2244 = vrot.lane.b32.xlu0 %v4326_v6, %s3866_s18 }
0x17f0   :  { %v2088_v37 = vpop.xlane.xlu0 %2087 }
0x17f1   :  { %3801 = vrcp.f32 %v2088_v37 }
0x17f8   :  { %v2091_v39 = vpop.xlane.xlu0 %2090 }
0x17f9   :  { %3803 = vrcp.f32 %v2091_v39 }
0x17fc   :  { %v2147_v40 = vpop.permute.xlu0 %2146 }
0x17fd   :  { %v2152_v44 = vsel %vm307_vm4, %v2147_v40, 0 }
0x17fe   :  { %v3802_v47 = vpop.eup %3801  ;;  %3562 = vmatpush3.bf16.msra.mxu1 %v2152_v44 }
0x17ff   :  { %v2094_v51 = vmul.f32 %v3802_v47, %v3798_v32  ;;  %3573 = vmatprep.subr.bf16.mxu1 %v3855_v18 }
0x1800   :  { %v2245_v28 = vpop.permute.xlu0 %2244 }
0x1801   :  { %v2096_v52 = vpack.c.bf16 %v2094_v51, %v2094_v51 }
0x1803   :  { %3558 = vmatmul.mubr.msk.bf16.vlgmr.msra.gmra.mxu0 %vm176_vm2, %v2096_v52 }
0x1804   :  { %3568 = vmatpush3.bf16.xpose.msra.mxu0 %v2202_v53  ;;  %3569 = vmatprep.mubr.msk.bf16.mxu0 %vm3856_vm1, %v3855_v18  ;;  %v3715_v53 = vld [vmem:[%s4645_s7 + $0x18] sm:$0xff]  }
0x1805   :  { %3579 = vmatprep.subr.bf16.mxu0 %v3855_v18 }
0x1806   :  { %v3804_v55 = vpop.eup %3803 }
0x1807   :  { %v2095_v57 = vmul.f32 %v3804_v55, %v3800_v35 }
0x1809   :  { %v2097_v58 = vpack.c.bf16 %v2095_v57, %v2095_v57 }
0x180b   :  { %3564 = vmatmul.mubr.msk.bf16.vlgmr.msra.gmra.mxu1 %vm176_vm2, %v2097_v58  ;;  %3570 = vmatmul.mubr.msk.bf16.vlgmr.msra.gmra.mxu0 %vm176_vm2, %v2195_v59 }
0x180c   :  { %3574 = vmatpush3.bf16.xpose.msra.mxu1 %v2252_v60  ;;  %3575 = vmatprep.mubr.msk.bf16.mxu1 %vm3856_vm1, %v3855_v18 }
0x180d   :  { %3585 = vmatprep.subr.bf16.mxu1 %v3855_v18  ;;  %3581 = vmatprep.mubr.msk.bf16.mxu0 %vm3856_vm1, %v3855_v18 }
0x1813   :  { %3576 = vmatmul.mubr.msk.bf16.vlgmr.msra.gmra.mxu1 %vm176_vm2, %v2245_v28 }
0x1814   :  { %3587 = vmatprep.mubr.msk.bf16.mxu1 %vm3856_vm1, %v3855_v18 }
0x18c3   :  { %v2140_v42 = vpop.f32.mrf.mxu0 }
0x18c5   :  { %v3559_v33 = vpop.f32.mrf.mxu0 }
0x18c7   :  { %v2143_v5 = vpop.f32.mrf.mxu0 }
0x18c9   :  { %v3560_v8 = vpop.f32.mrf.mxu0 }
0x18cb   :  { %v2188_v10 = vpop.f32.mrf.mxu1  ;;  %v2238_v11 = vpop.f32.mrf.mxu0 }
0x18cc   :  { %v2294_v12 = vmul.f32 0.35355338, %v2238_v11  ;;  %v3689_v24 = vpack.i.bf16 %v2188_v10, %v2140_v42 }
0x18cd   :  { %v3565_v3 = vpop.f32.mrf.mxu1  ;;  %v3571_v50 = vpop.f32.mrf.mxu0 }
0x18ce   :  { %v2296_v41 = vsel %vm4024_vm3, %v2294_v12, -1e+30 }
0x18cf   :  { %v2191_v4 = vpop.f32.mrf.mxu1  ;;  %v2241_v43 = vpop.f32.mrf.mxu0  ;;  %v2298_v13 = vsel %vm176_vm2, %v2296_v41, -inf }
0x18d0   :  { %2299 = vmax.xlane.f32.xlu1 %v2298_v13 }
0x18d1   :  { %v3566_v15 = vpop.f32.mrf.mxu1  ;;  %v3572_v16 = vpop.f32.mrf.mxu0 }
0x18d3   :  { %v2288_v17 = vpop.f32.mrf.mxu1 }
0x18d4   :  { %v2295_v19 = vmul.f32 0.35355338, %v2288_v17 }
0x18d5   :  { %v3577_v21 = vpop.f32.mrf.mxu1 }
0x18d6   :  { %v2297_v29 = vsel %vm4024_vm3, %v2295_v19, -1e+30 }
0x18d7   :  { %v2291_v22 = vpop.f32.mrf.mxu1  ;;  %v2301_v2 = vsel %vm176_vm2, %v2297_v29, -inf }
0x18d8   :  { %2302 = vmax.xlane.f32.xlu0 %v2301_v2 }
0x18d9   :  { %v3578_v23 = vpop.f32.mrf.mxu1 }
0x18e1   :  { %2322 = vrot.lane.b32.xlu1 %v4322_v63, %s3867_s0 }
0x18e5   :  { %3685 = vrot.lane.b32.xlu1 %v3684_v7, %s4658_s8 }
0x18e9   :  { %3690 = vrot.lane.b32.xlu1 %v3689_v24, %s4659_s25 }
0x1959   :  { %v2300_v25 = vpop.xlane.xlu1 %2299 }
0x195a   :  { %v2304_v9 = vsub.f32 %v2296_v41, %v2300_v25 }
0x195c   :  { %v2306_v56 = vmul.f32 1.442695, %v2304_v9 }
0x195d   :  { %v2323_v26 = vpop.permute.xlu1 %2322 }
0x195e   :  { %3805 = vpow2.f32 %v2306_v56  ;;  %v2328_v31 = vsel %vm307_vm4, %v2323_v26, 0 }
0x195f   :  { %3580 = vmatpush3.bf16.msra.mxu0 %v2328_v31 }
0x1960   :  { %3591 = vmatprep.subr.bf16.mxu0 %v3855_v18 }
0x1961   :  { %v2303_v32 = vpop.xlane.xlu0 %2302  ;;  %v3686_v8 = vpop.permute.xlu1 %3685 }
0x1962   :  { %v2305_v63 = vsub.f32 %v2297_v29, %v2303_v32  ;;  %v3688_v11 = vunpack.i.h.bf16 %v3686_v8  ;;  %v3687_v12 = vunpack.i.l.bf16 %v3686_v8  ;;  %v3723_v8 = vld [vmem:[%s4644_s6 + $0x58] sm:$0xff]  }
0x1964   :  { %v2308_v34 = vmul.f32 1.442695, %v2305_v63  ;;  %v2443_v4 = vsel %vm176_vm2, %v4384_v1, %v3688_v11  ;;  %v2442_v43 = vsel %vm176_vm2, %v4382_v62, %v3687_v12  ;;  %v2515_v62 = vrot.slane %v4308_v48, %v1168_v45  ;;  %v3725_v11 = vld [vmem:[%s4644_s6 + $0x48] sm:$0xff]   ;;  %v3726_v12 = vld [vmem:[%s4644_s6 + $0x40] sm:$0xff]  }
0x1965   :  { %v3691_v10 = vpop.permute.xlu1 %3690 }
0x1966   :  { %3807 = vpow2.f32 %v2308_v34  ;;  %v3693_v3 = vunpack.i.h.bf16 %v3691_v10  ;;  %v3692_v50 = vunpack.i.l.bf16 %v3691_v10  ;;  %v3724_v10 = vld [vmem:[%s4644_s6 + $0x50] sm:$0xff]  }
0x1968   :  { %v2444_v16 = vsel %vm1097_vm5, %v2442_v43, %v3692_v50  ;;  %v2445_v17 = vsel %vm1097_vm5, %v2443_v4, %v3693_v3  ;;  %v3202_v3 = vld [vmem:[%s4642_s4 + $0x1] ss:$0 sm:$0xff] }
0x196b   :  { %v3806_v35 = vpop.eup %3805 }
0x196c   :  { %v2310_v61 = vsel %vm176_vm2, %v3806_v35, 0.0 }
0x196d   :  { %2311 = vadd.xlane.f32.xlu0 %v2310_v61 }
0x1973   :  { %v3808_v0 = vpop.eup %3807 }
0x1974   :  { %v2313_v7 = vsel %vm176_vm2, %v3808_v0, 0.0 }
0x1975   :  { %2314 = vadd.xlane.f32.xlu0 %v2313_v7 }
0x198b   :  { %2370 = vrot.lane.b32.xlu0 %v4326_v6, %s3867_s0 }
0x19f6   :  { %v2312_v36 = vpop.xlane.xlu0 %2311 }
0x19f7   :  { %3809 = vrcp.f32 %v2312_v36  ;;  %v3717_v36 = vld [vmem:[%s4643_s5 + $0x18] sm:$0xff]  }
0x19fe   :  { %v2315_v37 = vpop.xlane.xlu0 %2314 }
0x19ff   :  { %3811 = vrcp.f32 %v2315_v37  ;;  %v3718_v37 = vld [vmem:[%s4643_s5 + $0x10] sm:$0xff]  }
0x1a02   :  { %v2371_v39 = vpop.permute.xlu0 %2370 }
0x1a03   :  { %v2376_v40 = vsel %vm307_vm4, %v2371_v39, 0 }
0x1a04   :  { %v3810_v44 = vpop.eup %3809  ;;  %3586 = vmatpush3.bf16.msra.mxu1 %v2376_v40 }
0x1a05   :  { %v2318_v47 = vmul.f32 %v3810_v44, %v3806_v35  ;;  %3599 = vmatprep.subr.bf16.mxu1 %v3855_v18 }
0x1a07   :  { %v2320_v49 = vpack.c.bf16 %v2318_v47, %v2318_v47 }
0x1a09   :  { %3582 = vmatmul.mubr.msk.bf16.vlgmr.msra.gmra.mxu0 %vm176_vm2, %v2320_v49 }
0x1a0a   :  { %3595 = vmatprep.mubr.msk.bf16.mxu0 %vm3856_vm1, %v3855_v18  ;;  %3592 = vmatpush3.bf16.msra.mxu0 %v3715_v53  ;;  %v2547_v53 = vrot.slane %v4308_v48, %v1200_v46  ;;  %v3719_v46 = vld [vmem:[%s4644_s6 + $0x78] sm:$0xff]  }
0x1a0b   :  { %3593 = vmatprep.subr.bf16.mxu0 %v3855_v18 }
0x1a0c   :  { %v3812_v51 = vpop.eup %3811 }
0x1a0d   :  { %v2319_v6 = vmul.f32 %v3812_v51, %v3808_v0 }
0x1a0e   :  { %3594 = vmatpush3.bf16.msra.mxu0 %v3716_v54 }
0x1a0f   :  { %v2321_v52 = vpack.c.bf16 %v2319_v6, %v2319_v6  ;;  %3607 = vmatprep.subr.bf16.mxu0 %v3855_v18 }
0x1a11   :  { %3588 = vmatmul.mubr.msk.bf16.vlgmr.msra.gmra.mxu1 %vm176_vm2, %v2321_v52 }
0x1a12   :  { %3603 = vmatprep.mubr.msk.bf16.mxu1 %vm3856_vm1, %v3855_v18  ;;  %3600 = vmatpush3.bf16.msra.mxu1 %v3717_v36 }
0x1a13   :  { %3601 = vmatprep.subr.bf16.mxu1 %v3855_v18 }
0x1a16   :  { %3602 = vmatpush3.bf16.msra.mxu1 %v3718_v37 }
0x1a17   :  { %3627 = vmatprep.subr.mxu1 %v3855_v18 }
0x1ac9   :  { %v2364_v55 = vpop.f32.mrf.mxu0 }
0x1acb   :  { %v3583_v57 = vpop.f32.mrf.mxu0 }
0x1acd   :  { %v2367_v58 = vpop.f32.mrf.mxu0 }
0x1ace   :  { %v2553_v58 = vrot.slane %v4308_v48, %v1206_v30  ;;  %v3720_v30 = vld [vmem:[%s4644_s6 + $0x70] sm:$0xff]  }
0x1acf   :  { %v3584_v59 = vpop.f32.mrf.mxu0 }
0x1ad1   :  { %v2412_v60 = vpop.f32.mrf.mxu1 }
0x1ad2   :  { %v3694_v28 = vpack.i.bf16 %v2412_v60, %v2364_v55 }
0x1ad3   :  { %v3589_v42 = vpop.f32.mrf.mxu1 }
0x1ad4   :  { %3695 = vrot.lane.b32.xlu1 %v3694_v28, %s4660_s30 }
0x1ad5   :  { %v2415_v33 = vpop.f32.mrf.mxu1 }
0x1ad6   :  { %v3721_v33 = vld [vmem:[%s4644_s6 + $0x68] sm:$0xff]  }
0x1ad7   :  { %v3590_v5 = vpop.f32.mrf.mxu1 }
0x1ad8   :  { %v3722_v5 = vld [vmem:[%s4644_s6 + $0x60] sm:$0xff]  }
0x1b46   :  { %v3696_v41 = vpop.permute.xlu1 %3695 }
0x1b47   :  { %v3698_v13 = vunpack.i.h.bf16 %v3696_v41  ;;  %v3697_v15 = vunpack.i.l.bf16 %v3696_v41 }
0x1b49   :  { %v2447_v19 = vsel %vm1100_vm6, %v2445_v17, %v3698_v13  ;;  %v2446_v21 = vsel %vm1100_vm6, %v2444_v16, %v3697_v15 }
0x1b4a   :  { %v2453_v29 = vpack.c.bf16 %v2447_v19, %v2446_v21 }
0x1b4c   :  { %3596 = vmatmul.mubr.msk.bf16.vlgmr.msra.gmra.mxu0 %vm61_vm0, %v2453_v29 }
0x1b4d   :  { %3623 = vmatprep.mubr.msk.bf16.mxu0 %vm3856_vm1, %v3855_v18  ;;  %3608 = vmatpush3.bf16.msra.mxu0 %v3719_v46 }
0x1b4e   :  { %3609 = vmatprep.subr.bf16.mxu0 %v3855_v18 }
0x1b51   :  { %3610 = vmatpush3.bf16.msra.mxu0 %v3720_v30 }
0x1b52   :  { %3611 = vmatprep.subr.bf16.mxu0 %v3855_v18 }
0x1b55   :  { %3612 = vmatpush3.bf16.msra.mxu0 %v3721_v33 }
0x1b56   :  { %3613 = vmatprep.subr.bf16.mxu0 %v3855_v18 }
0x1b59   :  { %3614 = vmatpush3.bf16.msra.mxu0 %v3722_v5  ;;  %v2800_v5 = vld [vmem:[%s4639_s1 + $0x1] sm:$0x1] }
0x1b5a   :  { %3615 = vmatprep.subr.bf16.mxu0 %v3855_v18 }
0x1b5d   :  { %3616 = vmatpush3.bf16.msra.mxu0 %v3723_v8  ;;  %v3727_v8 = vld [vmem:[%s4651_s13 + $0x8] sm:$0xff]  }
0x1b5e   :  { %3617 = vmatprep.subr.bf16.mxu0 %v3855_v18 }
0x1b61   :  { %3618 = vmatpush3.bf16.msra.mxu0 %v3724_v10  ;;  %v3728_v10 = vld [vmem:[%s4651_s13] sm:$0xff]  }
0x1b62   :  { %3619 = vmatprep.subr.bf16.mxu0 %v3855_v18 }
0x1b65   :  { %3620 = vmatpush3.bf16.msra.mxu0 %v3725_v11 }
0x1b66   :  { %3621 = vmatprep.subr.bf16.mxu0 %v3855_v18 }
0x1b69   :  { %3622 = vmatpush3.bf16.msra.mxu0 %v3726_v12 }
0x1c0c   :  { %v2503_v1 = vpop.f32.mrf.mxu0 }
0x1c0d   :  { %v2510_v22 = vadd.f32 %v2503_v1, %v4284_v14 }
0x1c0e   :  { %v3597_v2 = vpop.f32.mrf.mxu0 }
0x1c0f   :  { %v4523_v23 = vadd.f32 %v2515_v62, %v2510_v22 }
0x1c10   :  { %v2506_v24 = vpop.f32.mrf.mxu0 }
0x1c11   :  { %v2511_v25 = vadd.f32 %v2506_v24, %v4289_v20  ;;  %v2518_v9 = vsel %vm61_vm0, %v4523_v23, 0.0 }
0x1c12   :  { %2519 = vadd.xlane.f32.xlu0 %v2518_v9  ;;  %v3598_v56 = vpop.f32.mrf.mxu0 }
0x1c13   :  { %v4528_v26 = vadd.f32 %v2515_v62, %v2511_v25 }
0x1c15   :  { %v2521_v31 = vsel %vm61_vm0, %v4528_v26, 0.0 }
0x1c16   :  { %2522 = vadd.xlane.f32.xlu1 %v2521_v31  ;;  %v2756_v31 = vrot.slane %v4308_v48, %v1406_v38 }
0x1c9b   :  { %v2520_v45 = vpop.xlane.xlu0 %2519 }
0x1c9c   :  { %v2524_v32 = vmul.f32 0.03125, %v2520_v45 }
0x1c9e   :  { %v2526_v14 = vsub.f32 %v4523_v23, %v2524_v32 }
0x1c9f   :  { %v2523_v63 = vpop.xlane.xlu1 %2522 }
0x1ca0   :  { %v2525_v34 = vmul.f32 0.03125, %v2523_v63  ;;  %v2528_v35 = vmul.f32 %v2526_v14, %v2526_v14 }
0x1ca2   :  { %v2527_v20 = vsub.f32 %v4528_v26, %v2525_v34  ;;  %v2530_v61 = vsel %vm61_vm0, %v2528_v35, 0.0 }
0x1ca3   :  { %2531 = vadd.xlane.f32.xlu0 %v2530_v61 }
0x1ca4   :  { %v2529_v0 = vmul.f32 %v2527_v20, %v2527_v20 }
0x1ca6   :  { %v2533_v7 = vsel %vm61_vm0, %v2529_v0, 0.0 }
0x1ca7   :  { %2534 = vadd.xlane.f32.xlu0 %v2533_v7 }
0x1d2c   :  { %v2532_v39 = vpop.xlane.xlu0 %2531 }
0x1d2d   :  { %v2536_v40 = vmul.f32 0.03125, %v2532_v39 }
0x1d2f   :  { %v2538_v44 = vadd.f32 1e-05, %v2536_v40 }
0x1d30   :  { %v2535_v47 = vpop.xlane.xlu0 %2534 }
0x1d31   :  { %3813 = vrsqrt.f32 %v2538_v44  ;;  %v2537_v49 = vmul.f32 0.03125, %v2535_v47 }
0x1d33   :  { %v2539_v51 = vadd.f32 1e-05, %v2537_v49 }
0x1d35   :  { %3815 = vrsqrt.f32 %v2539_v51 }
0x1d3e   :  { %v3814_v6 = vpop.eup %3813 }
0x1d3f   :  { %v2542_v52 = vmul.f32 %v3814_v6, %v2526_v14 }
0x1d41   :  { %v2548_v57 = vmul.f32 %v2547_v53, %v2542_v52 }
0x1d42   :  { %v3816_v54 = vpop.eup %3815 }
0x1d43   :  { %v2543_v55 = vmul.f32 %v3816_v54, %v2527_v20  ;;  %v2554_v60 = vadd.f32 %v2553_v58, %v2548_v57 }
0x1d45   :  { %v2549_v59 = vmul.f32 %v2547_v53, %v2543_v55  ;;  %v3229_v55 = vld [vmem:[%s4649_s11] ss:$0 sm:$0xff] }
0x1d47   :  { %v2555_v28 = vadd.f32 %v2553_v58, %v2549_v59  ;;  %v3230_v58 = vld [vmem:[%s4649_s11 + $0x1] ss:$0 sm:$0xff] }
0x1d49   :  { %v2561_v42 = vpack.c.bf16 %v2555_v28, %v2554_v60 }
0x1d4b   :  { %3604 = vmatmul.mubr.msk.bf16.vlgmr.msra.gmra.mxu1 %vm61_vm0, %v2561_v42  ;;  %v2799_v42 = vld [vmem:[%s4639_s1] sm:$0x1] }
0x1d4c   :  { %3629 = vmatprep.mubr.msk.f32.mxu1 %vm3856_vm1, %v3855_v18 }
0x1e0b   :  { %v2611_v50 = vpop.f32.mrf.mxu1 }
0x1e0c   :  { %v2626_v41 = vadd.f32 %v3202_v3, %v2611_v50 }
0x1e0d   :  { %v3605_v4 = vpop.f32.mrf.mxu1 }
0x1e0e   :  { %v3203_v43 = vmul.f32 -1.702, %v2626_v41 }
0x1e0f   :  { %v2614_v13 = vpop.f32.mrf.mxu1 }
0x1e10   :  { %v2632_v15 = vmul.f32 1.442695, %v3203_v43  ;;  %v2627_v16 = vadd.f32 %v3202_v3, %v2614_v13 }
0x1e11   :  { %v3606_v17 = vpop.f32.mrf.mxu1 }
0x1e12   :  { %3817 = vpow2.f32 %v2632_v15  ;;  %v3204_v19 = vmul.f32 -1.702, %v2627_v16 }
0x1e14   :  { %v2634_v21 = vmul.f32 1.442695, %v3204_v19 }
0x1e16   :  { %3819 = vpow2.f32 %v2634_v21 }
0x1e1f   :  { %v3818_v29 = vpop.eup %3817 }
0x1e20   :  { %v2636_v62 = vadd.f32 1.0, %v3818_v29 }
0x1e22   :  { %3821 = vrcp.f32 %v2636_v62 }
0x1e23   :  { %v3820_v1 = vpop.eup %3819 }
0x1e24   :  { %v2637_v22 = vadd.f32 1.0, %v3820_v1 }
0x1e26   :  { %3823 = vrcp.f32 %v2637_v22 }
0x1e2f   :  { %v3822_v2 = vpop.eup %3821 }
0x1e30   :  { %v2642_v25 = vmul.f32 %v3822_v2, %v2626_v41  ;;  %v3102_v2 = vstv %s4641_s3  ;;  %s3871_s3 = smov [#allocation3]  }
0x1e31   :  { %s3116_s20 = sshll.u32 %s3871_s3, 4  ;;  %s3117_s20 = int_to_ptr.vmem [resolvable:$true] %s3116_s20 }
0x1e32   :  { %s3833_s21 = scalar_lea.vmem %s3117_s20, 32  ;;  %p3838_p1 = scmp.lt.s32.totalorder %s3117_s20, %s3117_s20 }
0x1e33   :  { %v3824_v24 = vpop.eup %3823  ;;  %p3834_p0 = scmp.ne.s32.totalorder %s3117_s20, %s3833_s21  ;;  %p3839_p2 = scmp.lt.s32.totalorder %s3833_s21, %s3833_s21 }
0x1e34   :  { %v2643_v9 = vmul.f32 %v3824_v24, %v2627_v16  ;;  %v3103_v24 = vmul.f32 1.442695, %v3102_v2 }
0x1e35   :  { %p3840_p3 = por %p3839_p2, %p3838_p1 }
0x1e36   :  { %v2661_v56 = vpack.c.bf16 %v2643_v9, %v2642_v25 }
0x1e37   :  { %p3841_p4 = pnand %p3840_p3, %p3834_p0 }
0x1e38   :  { %3624 = vmatmul.mubr.bf16.vlgmr.msra.gmra.mxu0 %v2661_v56 }
0x1ef8   :  { %v2744_v45 = vpop.f32.mrf.mxu0 }
0x1ef9   :  { %v2751_v32 = vadd.f32 %v2744_v45, %v4523_v23  ;;  %v3024_v45 = vld [vmem:[%s4640_s2] sm:$0x3] }
0x1efa   :  { %v3625_v14 = vpop.f32.mrf.mxu0 }
0x1efb   :  { %v2757_v63 = vadd.f32 %v2756_v31, %v2751_v32 }
0x1efc   :  { %v2747_v34 = vpop.f32.mrf.mxu0 }
0x1efd   :  { %v2752_v35 = vadd.f32 %v2747_v34, %v4528_v26  ;;  %v2761_v20 = vsel %vm61_vm0, %v2757_v63, 0.0 }
0x1efe   :  { %2762 = vadd.xlane.f32.xlu0 %v2761_v20  ;;  %v3626_v61 = vpop.f32.mrf.mxu0 }
0x1eff   :  { %v2758_v0 = vadd.f32 %v2756_v31, %v2752_v35 }
0x1f01   :  { %v2764_v7 = vsel %vm61_vm0, %v2758_v0, 0.0 }
0x1f02   :  { %2765 = vadd.xlane.f32.xlu1 %v2764_v7 }
0x1f87   :  { %v2763_v36 = vpop.xlane.xlu0 %2762 }
0x1f88   :  { %v2767_v27 = vmul.f32 0.03125, %v2763_v36 }
0x1f8a   :  { %v2769_v37 = vsub.f32 %v2757_v63, %v2767_v27 }
0x1f8b   :  { %v2766_v38 = vpop.xlane.xlu1 %2765 }
0x1f8c   :  { %v2768_v48 = vmul.f32 0.03125, %v2766_v38  ;;  %v2771_v39 = vmul.f32 %v2769_v37, %v2769_v37 }
0x1f8e   :  { %v2770_v23 = vsub.f32 %v2758_v0, %v2768_v48  ;;  %v2773_v40 = vsel %vm61_vm0, %v2771_v39, 0.0 }
0x1f8f   :  { %2774 = vadd.xlane.f32.xlu0 %v2773_v40 }
0x1f90   :  { %v2772_v44 = vmul.f32 %v2770_v23, %v2770_v23 }
0x1f92   :  { %v2776_v26 = vsel %vm61_vm0, %v2772_v44, 0.0 }
0x1f93   :  { %2777 = vadd.xlane.f32.xlu1 %v2776_v26 }
0x2018   :  { %v2775_v47 = vpop.xlane.xlu0 %2774 }
0x2019   :  { %v2779_v49 = vmul.f32 0.03125, %v2775_v47 }
0x201b   :  { %v2781_v51 = vadd.f32 1e-05, %v2779_v49 }
0x201c   :  { %v2778_v6 = vpop.xlane.xlu1 %2777 }
0x201d   :  { %3825 = vrsqrt.f32 %v2781_v51  ;;  %v2780_v52 = vmul.f32 0.03125, %v2778_v6 }
0x201f   :  { %v2782_v53 = vadd.f32 1e-05, %v2780_v52 }
0x2021   :  { %3827 = vrsqrt.f32 %v2782_v53 }
0x2022   :  { %3829 = vpow2.f32 %v3103_v24 }
0x202a   :  { %v3826_v54 = vpop.eup %3825 }
0x202b   :  { %v2785_v57 = vmul.f32 %v3826_v54, %v2769_v37 }
0x202d   :  { %v2791_v59 = vmul.f32 %v3229_v55, %v2785_v57 }
0x202e   :  { %v3828_v60 = vpop.eup %3827 }
0x202f   :  { %v2797_v28 = vadd.f32 %v3230_v58, %v2791_v59  ;;  %v2786_v46 = vmul.f32 %v3828_v60, %v2770_v23  ;;  %v3830_v25 = vpop.eup %3829 }
0x2030   :  { %3650 = vpush %v3830_v25 }
0x2031   :  { %3628 = vmatpush3.msra.mxu1 %v2797_v28  ;;  %v2792_v30 = vmul.f32 %v3229_v55, %v2786_v46 }
0x2032   :  { %3630 = vmatmul.mubr.msk.f32.vlgmr.msra.gmra.mxu1 %vm176_vm2, %v2799_v42  ;;  %3632 = vmatprep.subr.mxu1 %v3855_v18 }
0x2033   :  { %v2798_v33 = vadd.f32 %v3230_v58, %v2792_v30  ;;  %3634 = vmatprep.mubr.msk.f32.mxu1 %vm3856_vm1, %v3855_v18 }
0x2035   :  { %3633 = vmatpush3.msra.mxu1 %v2798_v33 }
0x2036   :  { %3635 = vmatmul.mubr.msk.f32.vlgmr.msra.gmra.mxu1 %vm176_vm2, %v2800_v5  ;;  %3637 = vmatprep.subr.bf16.mxu1 %v3855_v18 }
0x2037   :  { %3641 = vmatprep.mubr.msk.bf16.mxu1 %vm3856_vm1, %v3855_v18  ;;  %3638 = vmatpush3.bf16.msra.mxu1 %v3727_v8 }
0x2038   :  { %3639 = vmatprep.subr.bf16.mxu1 %v3855_v18 }
0x203b   :  { %3640 = vmatpush3.bf16.msra.mxu1 %v3728_v10 }
0x203c   :  { %3645 = vmatprep.subr.mxu1 %v3855_v18 }
0x2061   :  { %s3651_s12 = spop %3650 }
0x2062   :  { %v3106_v32 = vstv %s3651_s12 }
0x20f2   :  { %v2870_v11 = vpop.f32.mrf.mxu1 }
0x20f3   :  { %v2951_v50 = vpack.c.bf16 %v2870_v11, %v2870_v11 }
0x20f4   :  { %v3631_v12 = vpop.f32.mrf.mxu1 }
0x20f5   :  { %v2955_v13 = vunpack.c.l.b16 %v2951_v50 }
0x20f6   :  { %v2943_v3 = vpop.f32.mrf.mxu1 }
0x20f7   :  { %v2952_v41 = vpack.c.bf16 %v2943_v3, %v2943_v3 }
0x20f8   :  { %v3636_v4 = vpop.f32.mrf.mxu1 }
0x20f9   :  { %v2956_v43 = vunpack.c.l.b16 %v2952_v41 }
0x20fb   :  { %v2957_v15 = vrot.slane %v2956_v43, 7 }
0x20fd   :  { %v2959_v16 = vsel %vm2958_vm7, %v2957_v15, %v2955_v13 }
0x20fe   :  { %v2960_v17 = vpack.c.b16 %v2959_v16, %v2959_v16 }
0x2100   :  { %3642 = vmatmul.mubr.msk.bf16.vlgmr.msra.gmra.mxu1 %vm61_vm0, %v2960_v17 }
0x2101   :  { %3647 = vmatprep.mubr.msk.f32.mxu1 %vm3856_vm1, %v3855_v18 }
0x21c0   :  { %v3010_v19 = vpop.f32.mrf.mxu1 }
0x21c1   :  { %v3016_v21 = vmul.f32 %v3010_v19, %v3010_v19 }
0x21c2   :  { %v3643_v29 = vpop.f32.mrf.mxu1 }
0x21c3   :  { %v3018_v62 = vsel %vm3017_vm8, %v3016_v21, 0.0 }
0x21c4   :  { %3019 = vadd.xlane.f32.xlu0 %v3018_v62  ;;  %v3013_v1 = vpop.f32.mrf.mxu1 }
0x21c6   :  { %v3644_v22 = vpop.f32.mrf.mxu1 }
0x224d   :  { %v3020_v9 = vpop.xlane.xlu0 %3019 }
0x224e   :  { %v3021_v56 = vmax.f32 %v3020_v9, 1e-24 }
0x2250   :  { %3831 = vrsqrt.f32 %v3021_v56 }
0x225d   :  { %v3832_v18 = vpop.eup %3831 }
0x225e   :  { %v3023_v31 = vmul.f32 %v3832_v18, %v3010_v19 }
0x2260   :  { %3646 = vmatpush3.xpose.msk.msra.mxu1 %vm61_vm0, %v3023_v31 }
0x2263   :  { %3648 = vmatmul.mubr.msk.f32.vlgmr.msra.gmra.mxu1 %vm61_vm0, %v3024_v45 }
0x2323   :  { %v3097_v14 = vpop.f32.mrf.mxu1 }
0x2324   :  { %v3107_v63 = vmul.f32 %v3106_v32, %v3097_v14 }
0x2325   :  { %v3649_v34 = vpop.f32.mrf.mxu1 }
0x2326   :  { %3109 = vst.msk [vmem:[#allocation3] sm:$0x3] %vm3108_vm9, %v3107_v63 }
0x2327   :  { %3844 = shalt.err (!%p3841_p4)
}
0x2328   :  { %3119 = dma.vmem_to_hbm [thread:$0]  %s3117_s20, 32, %s4652_s14, [#allocation4]  }
0x2329   :  { %3853 = dma.done.wait [#allocation4], 32  }
0x232a   :  { %3854 = vsyncadd [#allocation4], 4294967264 }
0x232b   :  { %3123 = vsyncpa [#allocation4], 1 }

</bundles_post_ra>
